<compile_context>
chip_gen: v6e
topology: v6e:2x2x1
jax: 0.10.0
libtpu: 0.0.40
codegen_flags: <defaults>
</compile_context>

<pallas_src>
import functools

import numpy as np

import jax
import jax.numpy as jnp
from jax.experimental import pallas as pl
from jax.experimental.pallas import tpu as pltpu


_TCN_IN = 64
_TCN_CHANNELS = [64, 64, 128, 128]
_TCN_WIDTH = 128          # padded channel width inside the fused TCN section
_DOWN_BLOCK = next(
    i for i, (ci, co) in enumerate(
        zip([_TCN_IN] + _TCN_CHANNELS[:-1], _TCN_CHANNELS)) if ci != co)


def _vmem():
    return pl.BlockSpec(memory_space=pltpu.MemorySpace.VMEM)


# ---------------------------------------------------------------------------
# The single fused Pallas kernel
# ---------------------------------------------------------------------------
def _blinknet_kernel(x_ref, s1_ref, w1_ref, sh1_ref, s2_ref, w2_ref, sh2_ref,
                     s3_ref, w3_ref, sh3_ref, p_ref, g_ref, t_ref,
                     tw1_ref, tb1_ref, tw2_ref, tb2_ref, twd_ref, tbd_ref,
                     fw_ref, fb_ref, o_ref, *, down_block):
    """Whole BlinkNet forward.

    x_ref  : (N*H, W*Cin) bf16 input "lines" (rows = (frame, row), lanes = w*c).
    s*_ref : (4, N*Hout, N*Hin) bf16 one-hot row-selection matrices, one per
             vertical tap t = dy + kh in {0..3}; zero rows realise the 'same'
             top/bottom padding, so gathers are exact bf16 MXU matmuls.
    w*_ref : (6, W*Cin, (W//2)*Cout) bf16 banded block-Toeplitz conv weights,
             index = dx*3 + kh (dx = horizontal pooling phase, kh = vertical
             tap); BN scale is pre-folded, 'same' width padding is clipped in.
    sh*    : (1, (W//2)*Cout) f32 folded BN shift (conv bias included).
    p_ref  : (N, N*H3) bf16 per-frame row-sum matrix (GAP rows).
    g_ref  : (W3*64, 128) bf16 width-sum / spatial-count matrix (GAP lanes).
    t_ref  : (4, N, N) bf16 causal shift matrices (shift by 2**i inside each
             batch's T frames, zeros where t < dilation).
    tw1/tw2: (8, 128, 128) bf16, index 2*i + tap (tap0 = t-d, tap1 = t).
    tb1/tb2: (4, 1, 128) f32.  twd/tbd: 1x1 downsample conv of the single
             block whose channel count changes.  fw/fb: Linear padded to 128.
    o_ref  : (N, 128) f32; columns [0:3] are the logits.
    """
    f32, bf16 = jnp.float32, jnp.bfloat16

    def conv_bn_lrelu_pool(src, s_ref, w_ref, shift):
        # Vertical tap gather (4 one-hot matmuls), then the 4 pooling
        # quadrants as banded matmuls; max-pool in registers.
        lhs = [jnp.dot(s_ref[t], src, preferred_element_type=f32).astype(bf16)
               for t in range(4)]
        quad = []
        for dy in range(2):               # vertical pooling phase
            for dx in range(2):           # horizontal pooling phase
                acc = None
                for kh in range(3):       # vertical conv tap
                    part = jnp.dot(lhs[dy + kh], w_ref[dx * 3 + kh],
                                   preferred_element_type=f32)
                    acc = part if acc is None else acc + part
                quad.append(acc)
        # max-then-affine-then-LeakyReLU == pool(LeakyReLU(affine)) because the
        # folded BN scale is positive and the shift is shared per channel.
        m = jnp.maximum(jnp.maximum(quad[0], quad[1]),
                        jnp.maximum(quad[2], quad[3]))
        y = m + shift
        y = jnp.where(y >= 0.0, y, 0.01 * y)          # LeakyReLU, f32 epilogue
        return y.astype(bf16)

    # ---- CNNFeatureExtractor: 3x (conv3x3 + BN + LeakyReLU + maxpool 2x2) ----
    h = conv_bn_lrelu_pool(x_ref[...], s1_ref, w1_ref, sh1_ref[...])   # (N*H/2, 128)
    h = conv_bn_lrelu_pool(h, s2_ref, w2_ref, sh2_ref[...])            # (N*H/4, 128)
    h = conv_bn_lrelu_pool(h, s3_ref, w3_ref, sh3_ref[...])            # (N*H/8, 128)

    # ---- Global average pool (two small MXU matmuls) ----
    frame_sum = jnp.dot(p_ref[...], h, preferred_element_type=f32)     # (N, lanes)
    h = jnp.dot(frame_sum.astype(bf16), g_ref[...],
                preferred_element_type=f32)                            # (N, 128)

    # ---- TemporalConvNet (4 TemporalBlocks) ----
    num_blocks = tb1_ref.shape[0]
    for i in range(num_blocks):
        hb = h.astype(bf16)
        sh = t_ref[i]                                    # (N, N) causal shift
        # conv1 -> chomp -> relu -> dropout(id)
        prev1 = jnp.dot(sh, hb, preferred_element_type=f32).astype(bf16)
        c1 = (jnp.dot(prev1, tw1_ref[2 * i], preferred_element_type=f32)
              + jnp.dot(hb, tw1_ref[2 * i + 1], preferred_element_type=f32)
              + tb1_ref[i])
        c1b = jnp.maximum(c1, 0.0).astype(bf16)
        # conv2 -> chomp -> relu -> dropout(id)
        prev2 = jnp.dot(sh, c1b, preferred_element_type=f32).astype(bf16)
        c2 = (jnp.dot(prev2, tw2_ref[2 * i], preferred_element_type=f32)
              + jnp.dot(c1b, tw2_ref[2 * i + 1], preferred_element_type=f32)
              + tb2_ref[i])
        c2 = jnp.maximum(c2, 0.0)
        # residual (1x1 conv only where channel counts differ) + final relu
        if i == down_block:
            res = jnp.dot(hb, twd_ref[...], preferred_element_type=f32) + tbd_ref[...]
        else:
            res = h
        h = jnp.maximum(c2 + res, 0.0)

    # ---- fc: Linear(128, 3) zero-padded to 128 lanes (lane-dense store) ----
    o_ref[...] = (jnp.dot(h.astype(bf16), fw_ref[...], preferred_element_type=f32)
                  + fb_ref[...])


# ---------------------------------------------------------------------------
# Static (trace-time) constant matrices
# ---------------------------------------------------------------------------
def _tap_select_mats(N, H_src):
    """One-hot row selection for vertical tap t = dy + kh in {0..3}.

    Output row (frame f, pooled row j) reads 'same'-padded frame row 2j + t;
    padded rows 0 and H_src+1 map to zero rows (top/bottom zero padding)."""
    Ho = H_src // 2
    S = np.zeros((4, N * Ho, N * H_src), np.float32)
    for t in range(4):
        for f in range(N):
            for j in range(Ho):
                r = 2 * j + t
                if 1 <= r <= H_src:
                    S[t, f * Ho + j, f * H_src + (r - 1)] = 1.0
    return S


def _shift_mats(N, T, num_levels):
    """S[i] @ x shifts x forward in time by 2**i inside each length-T batch block."""
    S = np.zeros((num_levels, N, N), np.float32)
    for i in range(num_levels):
        d = 2 ** i
        for r in range(N):
            if (r % T) >= d:
                S[i, r, r - d] = 1.0
    return S


# ---------------------------------------------------------------------------
# Model forward (wrapper: one reshape+cast, one pallas_call, one slice)
# ---------------------------------------------------------------------------
def blinknet_forward(params, x):
    """x: (B, T, H, W, C) float32 -> (B, T, 3) float32.  Params must be built
    with init_params(width=W)."""
    B, T, H, W, C = x.shape
    N = B * T
    assert H % 8 == 0 and W % 8 == 0, "three 2x2 max-pools need H, W % 8 == 0"
    H1, H2, H3 = H // 2, H // 4, H // 8
    W3 = W // 8

    bf16 = jnp.bfloat16
    x_lines = x.reshape(N * H, W * C).astype(bf16)      # only XLA glue in the model

    # trace-time numpy constants (baked by jit, zero runtime cost)
    s1 = jnp.asarray(_tap_select_mats(N, H), bf16)      # (4, N*H1, N*H)
    s2 = jnp.asarray(_tap_select_mats(N, H1), bf16)     # (4, N*H2, N*H1)
    s3 = jnp.asarray(_tap_select_mats(N, H2), bf16)     # (4, N*H3, N*H2)

    p = np.zeros((N, N * H3), np.float32)               # per-frame row sum
    for f in range(N):
        p[f, f * H3:(f + 1) * H3] = 1.0
    p = jnp.asarray(p, bf16)

    g = np.zeros((W3 * _TCN_IN, _TCN_WIDTH), np.float32)   # width sum / count
    inv = 1.0 / float(H3 * W3)
    for w in range(W3):
        for c in range(_TCN_IN):
            g[w * _TCN_IN + c, c] = inv
    g = jnp.asarray(g, bf16)

    smats = jnp.asarray(_shift_mats(N, T, len(_TCN_CHANNELS)), bf16)

    out = pl.pallas_call(
        functools.partial(_blinknet_kernel, down_block=_DOWN_BLOCK),
        out_shape=jax.ShapeDtypeStruct((N, _TCN_WIDTH), jnp.float32),
        in_specs=[_vmem()] * 21,
        out_specs=_vmem(),
    )(x_lines, s1, params["cw0"], params["cshift0"],
      s2, params["cw1"], params["cshift1"],
      s3, params["cw2"], params["cshift2"],
      p, g, smats,
      params["tw1"], params["tb1"], params["tw2"], params["tb2"],
      params["twd"], params["tbd"], params["fcw"], params["fcb"])
    return out[:, :3].reshape(B, T, 3)


# ---------------------------------------------------------------------------
# Deterministic parameter construction (eval-mode, BN folded, weight_norm=raw)
# ---------------------------------------------------------------------------
def _conv_toeplitz(w_hwio, W):
    """Banded block-Toeplitz form of a 3x3 'same' conv for the lines layout.

    Returns (6, W*Cin, (W//2)*Cout); index = dx*3 + kh.  'same' zero padding in
    W is realised by clipping the band at the edges."""
    _, _, Cin, Cout = w_hwio.shape
    Wo = W // 2
    t = np.zeros((2, 3, W * Cin, Wo * Cout), np.float32)
    for dx in range(2):
        for kh in range(3):
            for j in range(Wo):
                for kw in range(3):
                    wi = 2 * j + dx + kw - 1
                    if 0 <= wi < W:
                        t[dx, kh, wi * Cin:(wi + 1) * Cin,
                          j * Cout:(j + 1) * Cout] = w_hwio[kh, kw]
    return t.reshape(6, W * Cin, Wo * Cout)


def init_params(key, width=16):
    k = [key]

    def nxt():
        k[0], sub = jax.random.split(k[0])
        return sub

    params = {}
    bn_eps = 1e-5

    # CNN: Conv2d(3->16), (16->32), (32->64), 3x3 pad 1, each + BatchNorm2d(eval).
    cin_list, cout_list = [3, 16, 32], [16, 32, 64]
    Wl = width
    for i, (ci, co) in enumerate(zip(cin_list, cout_list)):
        w = jax.random.normal(nxt(), (3, 3, ci, co), jnp.float32) * 0.05    # HWIO
        b = jax.random.normal(nxt(), (co,), jnp.float32) * 0.05
        gamma = jnp.ones((co,), jnp.float32)
        beta = jnp.zeros((co,), jnp.float32)
        rmean = jnp.zeros((co,), jnp.float32)
        rvar = jnp.ones((co,), jnp.float32)
        scale = gamma / jnp.sqrt(rvar + bn_eps)          # > 0, so pool commutes
        w_fold = np.asarray(w * scale)                   # fold BN scale into weights
        shift = beta + (b - rmean) * scale               # BN shift + conv bias
        params[f"cw{i}"] = jnp.asarray(_conv_toeplitz(w_fold, Wl), jnp.bfloat16)
        params[f"cshift{i}"] = jnp.tile(shift, Wl // 2).reshape(1, (Wl // 2) * co)
        Wl //= 2

    # TCN: num_inputs=64, channels [64, 64, 128, 128], kernel_size=2.
    # Everything is zero-padded to a uniform 128-lane width (padded channels
    # stay exactly zero through every block).
    CT = _TCN_WIDTH
    in_ch = _TCN_IN
    w1s, b1s, w2s, b2s = [], [], [], []
    wd = jnp.zeros((CT, CT), jnp.float32)
    bd = jnp.zeros((1, CT), jnp.float32)
    for oc in _TCN_CHANNELS:
        w1 = jax.random.normal(nxt(), (2, in_ch, oc), jnp.float32) * 0.01   # (tap, in, out)
        b1 = jax.random.normal(nxt(), (oc,), jnp.float32) * 0.01
        w2 = jax.random.normal(nxt(), (2, oc, oc), jnp.float32) * 0.01
        b2 = jax.random.normal(nxt(), (oc,), jnp.float32) * 0.01
        w1s.append(jnp.zeros((2, CT, CT), jnp.float32).at[:, :in_ch, :oc].set(w1))
        w2s.append(jnp.zeros((2, CT, CT), jnp.float32).at[:, :oc, :oc].set(w2))
        b1s.append(jnp.zeros((1, CT), jnp.float32).at[0, :oc].set(b1))
        b2s.append(jnp.zeros((1, CT), jnp.float32).at[0, :oc].set(b2))
        if in_ch != oc:
            wdr = jax.random.normal(nxt(), (in_ch, oc), jnp.float32) * 0.01
            bdr = jax.random.normal(nxt(), (oc,), jnp.float32) * 0.01
            wd = jnp.zeros((CT, CT), jnp.float32).at[:in_ch, :oc].set(wdr)
            bd = jnp.zeros((1, CT), jnp.float32).at[0, :oc].set(bdr)
        in_ch = oc
    params["tw1"] = jnp.concatenate(w1s, axis=0).astype(jnp.bfloat16)    # (8,128,128): 2*i+tap
    params["tw2"] = jnp.concatenate(w2s, axis=0).astype(jnp.bfloat16)
    params["tb1"] = jnp.stack(b1s, axis=0)                                # (4,1,128) f32
    params["tb2"] = jnp.stack(b2s, axis=0)
    params["twd"] = wd.astype(jnp.bfloat16)
    params["tbd"] = bd

    # fc: Linear(128, 3), zero-padded to 128 output lanes for a lane-dense store.
    fcw = jax.random.normal(nxt(), (128, 3), jnp.float32) * 0.1
    params["fcw"] = jnp.zeros((CT, CT), jnp.float32).at[:, :3].set(fcw).astype(jnp.bfloat16)
    params["fcb"] = jnp.zeros((1, CT), jnp.float32)
    return params


if __name__ == "__main__":
    key = jax.random.PRNGKey(0)
    pkey, xkey = jax.random.split(key)

    B, T, H, W, C = 2, 4, 16, 16, 3            # small shapes consistent with the module
    params = init_params(pkey, width=W)
    x = jax.random.normal(xkey, (B, T, H, W, C), jnp.float32)

    out = jax.jit(blinknet_forward)(params, x)
    out = jax.block_until_ready(out)
    assert out.shape == (B, T, 3) and out.dtype == jnp.float32
    print("KERNEL_OK")
</pallas_src>

<mosaic_0001>
module attributes {stable_mosaic.version = 11 : i64} {
  func.func @_blinknet_kernel(%arg0: memref<128x48xbf16, #tpu.memory_space<vmem>>, %arg1: memref<4x64x128xbf16, #tpu.memory_space<vmem>>, %arg2: memref<6x48x128xbf16, #tpu.memory_space<vmem>>, %arg3: memref<1x128xf32, #tpu.memory_space<vmem>>, %arg4: memref<4x32x64xbf16, #tpu.memory_space<vmem>>, %arg5: memref<6x128x128xbf16, #tpu.memory_space<vmem>>, %arg6: memref<1x128xf32, #tpu.memory_space<vmem>>, %arg7: memref<4x16x32xbf16, #tpu.memory_space<vmem>>, %arg8: memref<6x128x128xbf16, #tpu.memory_space<vmem>>, %arg9: memref<1x128xf32, #tpu.memory_space<vmem>>, %arg10: memref<8x16xbf16, #tpu.memory_space<vmem>>, %arg11: memref<128x128xbf16, #tpu.memory_space<vmem>>, %arg12: memref<4x8x8xbf16, #tpu.memory_space<vmem>>, %arg13: memref<8x128x128xbf16, #tpu.memory_space<vmem>>, %arg14: memref<4x1x128xf32, #tpu.memory_space<vmem>>, %arg15: memref<8x128x128xbf16, #tpu.memory_space<vmem>>, %arg16: memref<4x1x128xf32, #tpu.memory_space<vmem>>, %arg17: memref<128x128xbf16, #tpu.memory_space<vmem>>, %arg18: memref<1x128xf32, #tpu.memory_space<vmem>>, %arg19: memref<128x128xbf16, #tpu.memory_space<vmem>>, %arg20: memref<1x128xf32, #tpu.memory_space<vmem>>, %arg21: memref<8x128xf32, #tpu.memory_space<vmem>>) attributes {dimension_semantics = [], scalar_prefetch = 0 : i64, scratch_operands = 0 : i64, tpu.core_type = #tpu.core_type<tc>} {
    %c0 = arith.constant 0 : index
    %c0_0 = arith.constant 0 : index
    %0 = vector.load %arg0[%c0, %c0_0] : memref<128x48xbf16, #tpu.memory_space<vmem>>, vector<128x48xbf16>
    %c0_1 = arith.constant 0 : index
    %c0_2 = arith.constant 0 : index
    %1 = vector.load %arg3[%c0_1, %c0_2] : memref<1x128xf32, #tpu.memory_space<vmem>>, vector<1x128xf32>
    %c0_3 = arith.constant 0 : index
    %c0_4 = arith.constant 0 : index
    %c0_5 = arith.constant 0 : index
    %2 = vector.load %arg1[%c0_3, %c0_4, %c0_5] : memref<4x64x128xbf16, #tpu.memory_space<vmem>>, vector<1x64x128xbf16>
    %3 = vector.shape_cast %2 : vector<1x64x128xbf16> to vector<64x128xbf16>
    %cst = arith.constant dense<0.000000e+00> : vector<64x48xf32>
    %4 = tpu.matmul %3, %0, %cst {dimension_numbers = #tpu.dot_dimension_numbers<[1], [0], [0], [1], [0, 0, 1, 1], [], []>} : vector<64x128xbf16>, vector<128x48xbf16>, vector<64x48xf32> -> vector<64x48xf32>
    %5 = arith.truncf %4 : vector<64x48xf32> to vector<64x48xbf16>
    %c1 = arith.constant 1 : index
    %c0_6 = arith.constant 0 : index
    %c0_7 = arith.constant 0 : index
    %6 = vector.load %arg1[%c1, %c0_6, %c0_7] : memref<4x64x128xbf16, #tpu.memory_space<vmem>>, vector<1x64x128xbf16>
    %7 = vector.shape_cast %6 : vector<1x64x128xbf16> to vector<64x128xbf16>
    %cst_8 = arith.constant dense<0.000000e+00> : vector<64x48xf32>
    %8 = tpu.matmul %7, %0, %cst_8 {dimension_numbers = #tpu.dot_dimension_numbers<[1], [0], [0], [1], [0, 0, 1, 1], [], []>} : vector<64x128xbf16>, vector<128x48xbf16>, vector<64x48xf32> -> vector<64x48xf32>
    %9 = arith.truncf %8 : vector<64x48xf32> to vector<64x48xbf16>
    %c2 = arith.constant 2 : index
    %c0_9 = arith.constant 0 : index
    %c0_10 = arith.constant 0 : index
    %10 = vector.load %arg1[%c2, %c0_9, %c0_10] : memref<4x64x128xbf16, #tpu.memory_space<vmem>>, vector<1x64x128xbf16>
    %11 = vector.shape_cast %10 : vector<1x64x128xbf16> to vector<64x128xbf16>
    %cst_11 = arith.constant dense<0.000000e+00> : vector<64x48xf32>
    %12 = tpu.matmul %11, %0, %cst_11 {dimension_numbers = #tpu.dot_dimension_numbers<[1], [0], [0], [1], [0, 0, 1, 1], [], []>} : vector<64x128xbf16>, vector<128x48xbf16>, vector<64x48xf32> -> vector<64x48xf32>
    %13 = arith.truncf %12 : vector<64x48xf32> to vector<64x48xbf16>
    %c3 = arith.constant 3 : index
    %c0_12 = arith.constant 0 : index
    %c0_13 = arith.constant 0 : index
    %14 = vector.load %arg1[%c3, %c0_12, %c0_13] : memref<4x64x128xbf16, #tpu.memory_space<vmem>>, vector<1x64x128xbf16>
    %15 = vector.shape_cast %14 : vector<1x64x128xbf16> to vector<64x128xbf16>
    %cst_14 = arith.constant dense<0.000000e+00> : vector<64x48xf32>
    %16 = tpu.matmul %15, %0, %cst_14 {dimension_numbers = #tpu.dot_dimension_numbers<[1], [0], [0], [1], [0, 0, 1, 1], [], []>} : vector<64x128xbf16>, vector<128x48xbf16>, vector<64x48xf32> -> vector<64x48xf32>
    %17 = arith.truncf %16 : vector<64x48xf32> to vector<64x48xbf16>
    %c0_15 = arith.constant 0 : index
    %c0_16 = arith.constant 0 : index
    %c0_17 = arith.constant 0 : index
    %18 = vector.load %arg2[%c0_15, %c0_16, %c0_17] : memref<6x48x128xbf16, #tpu.memory_space<vmem>>, vector<1x48x128xbf16>
    %19 = vector.shape_cast %18 : vector<1x48x128xbf16> to vector<48x128xbf16>
    %cst_18 = arith.constant dense<0.000000e+00> : vector<64x128xf32>
    %20 = tpu.matmul %5, %19, %cst_18 {dimension_numbers = #tpu.dot_dimension_numbers<[1], [0], [0], [1], [0, 0, 1, 1], [], []>} : vector<64x48xbf16>, vector<48x128xbf16>, vector<64x128xf32> -> vector<64x128xf32>
    %c1_19 = arith.constant 1 : index
    %c0_20 = arith.constant 0 : index
    %c0_21 = arith.constant 0 : index
    %21 = vector.load %arg2[%c1_19, %c0_20, %c0_21] : memref<6x48x128xbf16, #tpu.memory_space<vmem>>, vector<1x48x128xbf16>
    %22 = vector.shape_cast %21 : vector<1x48x128xbf16> to vector<48x128xbf16>
    %cst_22 = arith.constant dense<0.000000e+00> : vector<64x128xf32>
    %23 = tpu.matmul %9, %22, %cst_22 {dimension_numbers = #tpu.dot_dimension_numbers<[1], [0], [0], [1], [0, 0, 1, 1], [], []>} : vector<64x48xbf16>, vector<48x128xbf16>, vector<64x128xf32> -> vector<64x128xf32>
    %24 = arith.addf %20, %23 : vector<64x128xf32>
    %c2_23 = arith.constant 2 : index
    %c0_24 = arith.constant 0 : index
    %c0_25 = arith.constant 0 : index
    %25 = vector.load %arg2[%c2_23, %c0_24, %c0_25] : memref<6x48x128xbf16, #tpu.memory_space<vmem>>, vector<1x48x128xbf16>
    %26 = vector.shape_cast %25 : vector<1x48x128xbf16> to vector<48x128xbf16>
    %cst_26 = arith.constant dense<0.000000e+00> : vector<64x128xf32>
    %27 = tpu.matmul %13, %26, %cst_26 {dimension_numbers = #tpu.dot_dimension_numbers<[1], [0], [0], [1], [0, 0, 1, 1], [], []>} : vector<64x48xbf16>, vector<48x128xbf16>, vector<64x128xf32> -> vector<64x128xf32>
    %28 = arith.addf %24, %27 : vector<64x128xf32>
    %c3_27 = arith.constant 3 : index
    %c0_28 = arith.constant 0 : index
    %c0_29 = arith.constant 0 : index
    %29 = vector.load %arg2[%c3_27, %c0_28, %c0_29] : memref<6x48x128xbf16, #tpu.memory_space<vmem>>, vector<1x48x128xbf16>
    %30 = vector.shape_cast %29 : vector<1x48x128xbf16> to vector<48x128xbf16>
    %cst_30 = arith.constant dense<0.000000e+00> : vector<64x128xf32>
    %31 = tpu.matmul %5, %30, %cst_30 {dimension_numbers = #tpu.dot_dimension_numbers<[1], [0], [0], [1], [0, 0, 1, 1], [], []>} : vector<64x48xbf16>, vector<48x128xbf16>, vector<64x128xf32> -> vector<64x128xf32>
    %c4 = arith.constant 4 : index
    %c0_31 = arith.constant 0 : index
    %c0_32 = arith.constant 0 : index
    %32 = vector.load %arg2[%c4, %c0_31, %c0_32] : memref<6x48x128xbf16, #tpu.memory_space<vmem>>, vector<1x48x128xbf16>
    %33 = vector.shape_cast %32 : vector<1x48x128xbf16> to vector<48x128xbf16>
    %cst_33 = arith.constant dense<0.000000e+00> : vector<64x128xf32>
    %34 = tpu.matmul %9, %33, %cst_33 {dimension_numbers = #tpu.dot_dimension_numbers<[1], [0], [0], [1], [0, 0, 1, 1], [], []>} : vector<64x48xbf16>, vector<48x128xbf16>, vector<64x128xf32> -> vector<64x128xf32>
    %35 = arith.addf %31, %34 : vector<64x128xf32>
    %c5 = arith.constant 5 : index
    %c0_34 = arith.constant 0 : index
    %c0_35 = arith.constant 0 : index
    %36 = vector.load %arg2[%c5, %c0_34, %c0_35] : memref<6x48x128xbf16, #tpu.memory_space<vmem>>, vector<1x48x128xbf16>
    %37 = vector.shape_cast %36 : vector<1x48x128xbf16> to vector<48x128xbf16>
    %cst_36 = arith.constant dense<0.000000e+00> : vector<64x128xf32>
    %38 = tpu.matmul %13, %37, %cst_36 {dimension_numbers = #tpu.dot_dimension_numbers<[1], [0], [0], [1], [0, 0, 1, 1], [], []>} : vector<64x48xbf16>, vector<48x128xbf16>, vector<64x128xf32> -> vector<64x128xf32>
    %39 = arith.addf %35, %38 : vector<64x128xf32>
    %c0_37 = arith.constant 0 : index
    %c0_38 = arith.constant 0 : index
    %c0_39 = arith.constant 0 : index
    %40 = vector.load %arg2[%c0_37, %c0_38, %c0_39] : memref<6x48x128xbf16, #tpu.memory_space<vmem>>, vector<1x48x128xbf16>
    %41 = vector.shape_cast %40 : vector<1x48x128xbf16> to vector<48x128xbf16>
    %cst_40 = arith.constant dense<0.000000e+00> : vector<64x128xf32>
    %42 = tpu.matmul %9, %41, %cst_40 {dimension_numbers = #tpu.dot_dimension_numbers<[1], [0], [0], [1], [0, 0, 1, 1], [], []>} : vector<64x48xbf16>, vector<48x128xbf16>, vector<64x128xf32> -> vector<64x128xf32>
    %c1_41 = arith.constant 1 : index
    %c0_42 = arith.constant 0 : index
    %c0_43 = arith.constant 0 : index
    %43 = vector.load %arg2[%c1_41, %c0_42, %c0_43] : memref<6x48x128xbf16, #tpu.memory_space<vmem>>, vector<1x48x128xbf16>
    %44 = vector.shape_cast %43 : vector<1x48x128xbf16> to vector<48x128xbf16>
    %cst_44 = arith.constant dense<0.000000e+00> : vector<64x128xf32>
    %45 = tpu.matmul %13, %44, %cst_44 {dimension_numbers = #tpu.dot_dimension_numbers<[1], [0], [0], [1], [0, 0, 1, 1], [], []>} : vector<64x48xbf16>, vector<48x128xbf16>, vector<64x128xf32> -> vector<64x128xf32>
    %46 = arith.addf %42, %45 : vector<64x128xf32>
    %c2_45 = arith.constant 2 : index
    %c0_46 = arith.constant 0 : index
    %c0_47 = arith.constant 0 : index
    %47 = vector.load %arg2[%c2_45, %c0_46, %c0_47] : memref<6x48x128xbf16, #tpu.memory_space<vmem>>, vector<1x48x128xbf16>
    %48 = vector.shape_cast %47 : vector<1x48x128xbf16> to vector<48x128xbf16>
    %cst_48 = arith.constant dense<0.000000e+00> : vector<64x128xf32>
    %49 = tpu.matmul %17, %48, %cst_48 {dimension_numbers = #tpu.dot_dimension_numbers<[1], [0], [0], [1], [0, 0, 1, 1], [], []>} : vector<64x48xbf16>, vector<48x128xbf16>, vector<64x128xf32> -> vector<64x128xf32>
    %50 = arith.addf %46, %49 : vector<64x128xf32>
    %c3_49 = arith.constant 3 : index
    %c0_50 = arith.constant 0 : index
    %c0_51 = arith.constant 0 : index
    %51 = vector.load %arg2[%c3_49, %c0_50, %c0_51] : memref<6x48x128xbf16, #tpu.memory_space<vmem>>, vector<1x48x128xbf16>
    %52 = vector.shape_cast %51 : vector<1x48x128xbf16> to vector<48x128xbf16>
    %cst_52 = arith.constant dense<0.000000e+00> : vector<64x128xf32>
    %53 = tpu.matmul %9, %52, %cst_52 {dimension_numbers = #tpu.dot_dimension_numbers<[1], [0], [0], [1], [0, 0, 1, 1], [], []>} : vector<64x48xbf16>, vector<48x128xbf16>, vector<64x128xf32> -> vector<64x128xf32>
    %c4_53 = arith.constant 4 : index
    %c0_54 = arith.constant 0 : index
    %c0_55 = arith.constant 0 : index
    %54 = vector.load %arg2[%c4_53, %c0_54, %c0_55] : memref<6x48x128xbf16, #tpu.memory_space<vmem>>, vector<1x48x128xbf16>
    %55 = vector.shape_cast %54 : vector<1x48x128xbf16> to vector<48x128xbf16>
    %cst_56 = arith.constant dense<0.000000e+00> : vector<64x128xf32>
    %56 = tpu.matmul %13, %55, %cst_56 {dimension_numbers = #tpu.dot_dimension_numbers<[1], [0], [0], [1], [0, 0, 1, 1], [], []>} : vector<64x48xbf16>, vector<48x128xbf16>, vector<64x128xf32> -> vector<64x128xf32>
    %57 = arith.addf %53, %56 : vector<64x128xf32>
    %c5_57 = arith.constant 5 : index
    %c0_58 = arith.constant 0 : index
    %c0_59 = arith.constant 0 : index
    %58 = vector.load %arg2[%c5_57, %c0_58, %c0_59] : memref<6x48x128xbf16, #tpu.memory_space<vmem>>, vector<1x48x128xbf16>
    %59 = vector.shape_cast %58 : vector<1x48x128xbf16> to vector<48x128xbf16>
    %cst_60 = arith.constant dense<0.000000e+00> : vector<64x128xf32>
    %60 = tpu.matmul %17, %59, %cst_60 {dimension_numbers = #tpu.dot_dimension_numbers<[1], [0], [0], [1], [0, 0, 1, 1], [], []>} : vector<64x48xbf16>, vector<48x128xbf16>, vector<64x128xf32> -> vector<64x128xf32>
    %61 = arith.addf %57, %60 : vector<64x128xf32>
    %62 = arith.maximumf %28, %39 : vector<64x128xf32>
    %63 = arith.maximumf %50, %61 : vector<64x128xf32>
    %64 = arith.maximumf %62, %63 : vector<64x128xf32>
    %65 = vector.broadcast %1 : vector<1x128xf32> to vector<64x128xf32>
    %66 = arith.addf %64, %65 : vector<64x128xf32>
    %cst_61 = arith.constant 0.000000e+00 : f32
    %67 = vector.broadcast %cst_61 : f32 to vector<64x128xf32>
    %68 = arith.cmpf oge, %66, %67 : vector<64x128xf32>
    %cst_62 = arith.constant 0.00999999977 : f32
    %69 = vector.broadcast %cst_62 : f32 to vector<64x128xf32>
    %70 = arith.mulf %69, %66 : vector<64x128xf32>
    %71 = arith.select %68, %66, %70 : vector<64x128xi1>, vector<64x128xf32>
    %72 = arith.truncf %71 : vector<64x128xf32> to vector<64x128xbf16>
    %c0_63 = arith.constant 0 : index
    %c0_64 = arith.constant 0 : index
    %73 = vector.load %arg6[%c0_63, %c0_64] : memref<1x128xf32, #tpu.memory_space<vmem>>, vector<1x128xf32>
    %c0_65 = arith.constant 0 : index
    %c0_66 = arith.constant 0 : index
    %c0_67 = arith.constant 0 : index
    %74 = vector.load %arg4[%c0_65, %c0_66, %c0_67] : memref<4x32x64xbf16, #tpu.memory_space<vmem>>, vector<1x32x64xbf16>
    %75 = vector.shape_cast %74 : vector<1x32x64xbf16> to vector<32x64xbf16>
    %cst_68 = arith.constant dense<0.000000e+00> : vector<32x128xf32>
    %76 = tpu.matmul %75, %72, %cst_68 {dimension_numbers = #tpu.dot_dimension_numbers<[1], [0], [0], [1], [0, 0, 1, 1], [], []>} : vector<32x64xbf16>, vector<64x128xbf16>, vector<32x128xf32> -> vector<32x128xf32>
    %77 = arith.truncf %76 : vector<32x128xf32> to vector<32x128xbf16>
    %c1_69 = arith.constant 1 : index
    %c0_70 = arith.constant 0 : index
    %c0_71 = arith.constant 0 : index
    %78 = vector.load %arg4[%c1_69, %c0_70, %c0_71] : memref<4x32x64xbf16, #tpu.memory_space<vmem>>, vector<1x32x64xbf16>
    %79 = vector.shape_cast %78 : vector<1x32x64xbf16> to vector<32x64xbf16>
    %cst_72 = arith.constant dense<0.000000e+00> : vector<32x128xf32>
    %80 = tpu.matmul %79, %72, %cst_72 {dimension_numbers = #tpu.dot_dimension_numbers<[1], [0], [0], [1], [0, 0, 1, 1], [], []>} : vector<32x64xbf16>, vector<64x128xbf16>, vector<32x128xf32> -> vector<32x128xf32>
    %81 = arith.truncf %80 : vector<32x128xf32> to vector<32x128xbf16>
    %c2_73 = arith.constant 2 : index
    %c0_74 = arith.constant 0 : index
    %c0_75 = arith.constant 0 : index
    %82 = vector.load %arg4[%c2_73, %c0_74, %c0_75] : memref<4x32x64xbf16, #tpu.memory_space<vmem>>, vector<1x32x64xbf16>
    %83 = vector.shape_cast %82 : vector<1x32x64xbf16> to vector<32x64xbf16>
    %cst_76 = arith.constant dense<0.000000e+00> : vector<32x128xf32>
    %84 = tpu.matmul %83, %72, %cst_76 {dimension_numbers = #tpu.dot_dimension_numbers<[1], [0], [0], [1], [0, 0, 1, 1], [], []>} : vector<32x64xbf16>, vector<64x128xbf16>, vector<32x128xf32> -> vector<32x128xf32>
    %85 = arith.truncf %84 : vector<32x128xf32> to vector<32x128xbf16>
    %c3_77 = arith.constant 3 : index
    %c0_78 = arith.constant 0 : index
    %c0_79 = arith.constant 0 : index
    %86 = vector.load %arg4[%c3_77, %c0_78, %c0_79] : memref<4x32x64xbf16, #tpu.memory_space<vmem>>, vector<1x32x64xbf16>
    %87 = vector.shape_cast %86 : vector<1x32x64xbf16> to vector<32x64xbf16>
    %cst_80 = arith.constant dense<0.000000e+00> : vector<32x128xf32>
    %88 = tpu.matmul %87, %72, %cst_80 {dimension_numbers = #tpu.dot_dimension_numbers<[1], [0], [0], [1], [0, 0, 1, 1], [], []>} : vector<32x64xbf16>, vector<64x128xbf16>, vector<32x128xf32> -> vector<32x128xf32>
    %89 = arith.truncf %88 : vector<32x128xf32> to vector<32x128xbf16>
    %c0_81 = arith.constant 0 : index
    %c0_82 = arith.constant 0 : index
    %c0_83 = arith.constant 0 : index
    %90 = vector.load %arg5[%c0_81, %c0_82, %c0_83] : memref<6x128x128xbf16, #tpu.memory_space<vmem>>, vector<1x128x128xbf16>
    %91 = vector.shape_cast %90 : vector<1x128x128xbf16> to vector<128x128xbf16>
    %cst_84 = arith.constant dense<0.000000e+00> : vector<32x128xf32>
    %92 = tpu.matmul %77, %91, %cst_84 {dimension_numbers = #tpu.dot_dimension_numbers<[1], [0], [0], [1], [0, 0, 1, 1], [], []>} : vector<32x128xbf16>, vector<128x128xbf16>, vector<32x128xf32> -> vector<32x128xf32>
    %c1_85 = arith.constant 1 : index
    %c0_86 = arith.constant 0 : index
    %c0_87 = arith.constant 0 : index
    %93 = vector.load %arg5[%c1_85, %c0_86, %c0_87] : memref<6x128x128xbf16, #tpu.memory_space<vmem>>, vector<1x128x128xbf16>
    %94 = vector.shape_cast %93 : vector<1x128x128xbf16> to vector<128x128xbf16>
    %cst_88 = arith.constant dense<0.000000e+00> : vector<32x128xf32>
    %95 = tpu.matmul %81, %94, %cst_88 {dimension_numbers = #tpu.dot_dimension_numbers<[1], [0], [0], [1], [0, 0, 1, 1], [], []>} : vector<32x128xbf16>, vector<128x128xbf16>, vector<32x128xf32> -> vector<32x128xf32>
    %96 = arith.addf %92, %95 : vector<32x128xf32>
    %c2_89 = arith.constant 2 : index
    %c0_90 = arith.constant 0 : index
    %c0_91 = arith.constant 0 : index
    %97 = vector.load %arg5[%c2_89, %c0_90, %c0_91] : memref<6x128x128xbf16, #tpu.memory_space<vmem>>, vector<1x128x128xbf16>
    %98 = vector.shape_cast %97 : vector<1x128x128xbf16> to vector<128x128xbf16>
    %cst_92 = arith.constant dense<0.000000e+00> : vector<32x128xf32>
    %99 = tpu.matmul %85, %98, %cst_92 {dimension_numbers = #tpu.dot_dimension_numbers<[1], [0], [0], [1], [0, 0, 1, 1], [], []>} : vector<32x128xbf16>, vector<128x128xbf16>, vector<32x128xf32> -> vector<32x128xf32>
    %100 = arith.addf %96, %99 : vector<32x128xf32>
    %c3_93 = arith.constant 3 : index
    %c0_94 = arith.constant 0 : index
    %c0_95 = arith.constant 0 : index
    %101 = vector.load %arg5[%c3_93, %c0_94, %c0_95] : memref<6x128x128xbf16, #tpu.memory_space<vmem>>, vector<1x128x128xbf16>
    %102 = vector.shape_cast %101 : vector<1x128x128xbf16> to vector<128x128xbf16>
    %cst_96 = arith.constant dense<0.000000e+00> : vector<32x128xf32>
    %103 = tpu.matmul %77, %102, %cst_96 {dimension_numbers = #tpu.dot_dimension_numbers<[1], [0], [0], [1], [0, 0, 1, 1], [], []>} : vector<32x128xbf16>, vector<128x128xbf16>, vector<32x128xf32> -> vector<32x128xf32>
    %c4_97 = arith.constant 4 : index
    %c0_98 = arith.constant 0 : index
    %c0_99 = arith.constant 0 : index
    %104 = vector.load %arg5[%c4_97, %c0_98, %c0_99] : memref<6x128x128xbf16, #tpu.memory_space<vmem>>, vector<1x128x128xbf16>
    %105 = vector.shape_cast %104 : vector<1x128x128xbf16> to vector<128x128xbf16>
    %cst_100 = arith.constant dense<0.000000e+00> : vector<32x128xf32>
    %106 = tpu.matmul %81, %105, %cst_100 {dimension_numbers = #tpu.dot_dimension_numbers<[1], [0], [0], [1], [0, 0, 1, 1], [], []>} : vector<32x128xbf16>, vector<128x128xbf16>, vector<32x128xf32> -> vector<32x128xf32>
    %107 = arith.addf %103, %106 : vector<32x128xf32>
    %c5_101 = arith.constant 5 : index
    %c0_102 = arith.constant 0 : index
    %c0_103 = arith.constant 0 : index
    %108 = vector.load %arg5[%c5_101, %c0_102, %c0_103] : memref<6x128x128xbf16, #tpu.memory_space<vmem>>, vector<1x128x128xbf16>
    %109 = vector.shape_cast %108 : vector<1x128x128xbf16> to vector<128x128xbf16>
    %cst_104 = arith.constant dense<0.000000e+00> : vector<32x128xf32>
    %110 = tpu.matmul %85, %109, %cst_104 {dimension_numbers = #tpu.dot_dimension_numbers<[1], [0], [0], [1], [0, 0, 1, 1], [], []>} : vector<32x128xbf16>, vector<128x128xbf16>, vector<32x128xf32> -> vector<32x128xf32>
    %111 = arith.addf %107, %110 : vector<32x128xf32>
    %c0_105 = arith.constant 0 : index
    %c0_106 = arith.constant 0 : index
    %c0_107 = arith.constant 0 : index
    %112 = vector.load %arg5[%c0_105, %c0_106, %c0_107] : memref<6x128x128xbf16, #tpu.memory_space<vmem>>, vector<1x128x128xbf16>
    %113 = vector.shape_cast %112 : vector<1x128x128xbf16> to vector<128x128xbf16>
    %cst_108 = arith.constant dense<0.000000e+00> : vector<32x128xf32>
    %114 = tpu.matmul %81, %113, %cst_108 {dimension_numbers = #tpu.dot_dimension_numbers<[1], [0], [0], [1], [0, 0, 1, 1], [], []>} : vector<32x128xbf16>, vector<128x128xbf16>, vector<32x128xf32> -> vector<32x128xf32>
    %c1_109 = arith.constant 1 : index
    %c0_110 = arith.constant 0 : index
    %c0_111 = arith.constant 0 : index
    %115 = vector.load %arg5[%c1_109, %c0_110, %c0_111] : memref<6x128x128xbf16, #tpu.memory_space<vmem>>, vector<1x128x128xbf16>
    %116 = vector.shape_cast %115 : vector<1x128x128xbf16> to vector<128x128xbf16>
    %cst_112 = arith.constant dense<0.000000e+00> : vector<32x128xf32>
    %117 = tpu.matmul %85, %116, %cst_112 {dimension_numbers = #tpu.dot_dimension_numbers<[1], [0], [0], [1], [0, 0, 1, 1], [], []>} : vector<32x128xbf16>, vector<128x128xbf16>, vector<32x128xf32> -> vector<32x128xf32>
    %118 = arith.addf %114, %117 : vector<32x128xf32>
    %c2_113 = arith.constant 2 : index
    %c0_114 = arith.constant 0 : index
    %c0_115 = arith.constant 0 : index
    %119 = vector.load %arg5[%c2_113, %c0_114, %c0_115] : memref<6x128x128xbf16, #tpu.memory_space<vmem>>, vector<1x128x128xbf16>
    %120 = vector.shape_cast %119 : vector<1x128x128xbf16> to vector<128x128xbf16>
    %cst_116 = arith.constant dense<0.000000e+00> : vector<32x128xf32>
    %121 = tpu.matmul %89, %120, %cst_116 {dimension_numbers = #tpu.dot_dimension_numbers<[1], [0], [0], [1], [0, 0, 1, 1], [], []>} : vector<32x128xbf16>, vector<128x128xbf16>, vector<32x128xf32> -> vector<32x128xf32>
    %122 = arith.addf %118, %121 : vector<32x128xf32>
    %c3_117 = arith.constant 3 : index
    %c0_118 = arith.constant 0 : index
    %c0_119 = arith.constant 0 : index
    %123 = vector.load %arg5[%c3_117, %c0_118, %c0_119] : memref<6x128x128xbf16, #tpu.memory_space<vmem>>, vector<1x128x128xbf16>
    %124 = vector.shape_cast %123 : vector<1x128x128xbf16> to vector<128x128xbf16>
    %cst_120 = arith.constant dense<0.000000e+00> : vector<32x128xf32>
    %125 = tpu.matmul %81, %124, %cst_120 {dimension_numbers = #tpu.dot_dimension_numbers<[1], [0], [0], [1], [0, 0, 1, 1], [], []>} : vector<32x128xbf16>, vector<128x128xbf16>, vector<32x128xf32> -> vector<32x128xf32>
    %c4_121 = arith.constant 4 : index
    %c0_122 = arith.constant 0 : index
    %c0_123 = arith.constant 0 : index
    %126 = vector.load %arg5[%c4_121, %c0_122, %c0_123] : memref<6x128x128xbf16, #tpu.memory_space<vmem>>, vector<1x128x128xbf16>
    %127 = vector.shape_cast %126 : vector<1x128x128xbf16> to vector<128x128xbf16>
    %cst_124 = arith.constant dense<0.000000e+00> : vector<32x128xf32>
    %128 = tpu.matmul %85, %127, %cst_124 {dimension_numbers = #tpu.dot_dimension_numbers<[1], [0], [0], [1], [0, 0, 1, 1], [], []>} : vector<32x128xbf16>, vector<128x128xbf16>, vector<32x128xf32> -> vector<32x128xf32>
    %129 = arith.addf %125, %128 : vector<32x128xf32>
    %c5_125 = arith.constant 5 : index
    %c0_126 = arith.constant 0 : index
    %c0_127 = arith.constant 0 : index
    %130 = vector.load %arg5[%c5_125, %c0_126, %c0_127] : memref<6x128x128xbf16, #tpu.memory_space<vmem>>, vector<1x128x128xbf16>
    %131 = vector.shape_cast %130 : vector<1x128x128xbf16> to vector<128x128xbf16>
    %cst_128 = arith.constant dense<0.000000e+00> : vector<32x128xf32>
    %132 = tpu.matmul %89, %131, %cst_128 {dimension_numbers = #tpu.dot_dimension_numbers<[1], [0], [0], [1], [0, 0, 1, 1], [], []>} : vector<32x128xbf16>, vector<128x128xbf16>, vector<32x128xf32> -> vector<32x128xf32>
    %133 = arith.addf %129, %132 : vector<32x128xf32>
    %134 = arith.maximumf %100, %111 : vector<32x128xf32>
    %135 = arith.maximumf %122, %133 : vector<32x128xf32>
    %136 = arith.maximumf %134, %135 : vector<32x128xf32>
    %137 = vector.broadcast %73 : vector<1x128xf32> to vector<32x128xf32>
    %138 = arith.addf %136, %137 : vector<32x128xf32>
    %cst_129 = arith.constant 0.000000e+00 : f32
    %139 = vector.broadcast %cst_129 : f32 to vector<32x128xf32>
    %140 = arith.cmpf oge, %138, %139 : vector<32x128xf32>
    %cst_130 = arith.constant 0.00999999977 : f32
    %141 = vector.broadcast %cst_130 : f32 to vector<32x128xf32>
    %142 = arith.mulf %141, %138 : vector<32x128xf32>
    %143 = arith.select %140, %138, %142 : vector<32x128xi1>, vector<32x128xf32>
    %144 = arith.truncf %143 : vector<32x128xf32> to vector<32x128xbf16>
    %c0_131 = arith.constant 0 : index
    %c0_132 = arith.constant 0 : index
    %145 = vector.load %arg9[%c0_131, %c0_132] : memref<1x128xf32, #tpu.memory_space<vmem>>, vector<1x128xf32>
    %c0_133 = arith.constant 0 : index
    %c0_134 = arith.constant 0 : index
    %c0_135 = arith.constant 0 : index
    %146 = vector.load %arg7[%c0_133, %c0_134, %c0_135] : memref<4x16x32xbf16, #tpu.memory_space<vmem>>, vector<1x16x32xbf16>
    %147 = vector.shape_cast %146 : vector<1x16x32xbf16> to vector<16x32xbf16>
    %cst_136 = arith.constant dense<0.000000e+00> : vector<16x128xf32>
    %148 = tpu.matmul %147, %144, %cst_136 {dimension_numbers = #tpu.dot_dimension_numbers<[1], [0], [0], [1], [0, 0, 1, 1], [], []>} : vector<16x32xbf16>, vector<32x128xbf16>, vector<16x128xf32> -> vector<16x128xf32>
    %149 = arith.truncf %148 : vector<16x128xf32> to vector<16x128xbf16>
    %c1_137 = arith.constant 1 : index
    %c0_138 = arith.constant 0 : index
    %c0_139 = arith.constant 0 : index
    %150 = vector.load %arg7[%c1_137, %c0_138, %c0_139] : memref<4x16x32xbf16, #tpu.memory_space<vmem>>, vector<1x16x32xbf16>
    %151 = vector.shape_cast %150 : vector<1x16x32xbf16> to vector<16x32xbf16>
    %cst_140 = arith.constant dense<0.000000e+00> : vector<16x128xf32>
    %152 = tpu.matmul %151, %144, %cst_140 {dimension_numbers = #tpu.dot_dimension_numbers<[1], [0], [0], [1], [0, 0, 1, 1], [], []>} : vector<16x32xbf16>, vector<32x128xbf16>, vector<16x128xf32> -> vector<16x128xf32>
    %153 = arith.truncf %152 : vector<16x128xf32> to vector<16x128xbf16>
    %c2_141 = arith.constant 2 : index
    %c0_142 = arith.constant 0 : index
    %c0_143 = arith.constant 0 : index
    %154 = vector.load %arg7[%c2_141, %c0_142, %c0_143] : memref<4x16x32xbf16, #tpu.memory_space<vmem>>, vector<1x16x32xbf16>
    %155 = vector.shape_cast %154 : vector<1x16x32xbf16> to vector<16x32xbf16>
    %cst_144 = arith.constant dense<0.000000e+00> : vector<16x128xf32>
    %156 = tpu.matmul %155, %144, %cst_144 {dimension_numbers = #tpu.dot_dimension_numbers<[1], [0], [0], [1], [0, 0, 1, 1], [], []>} : vector<16x32xbf16>, vector<32x128xbf16>, vector<16x128xf32> -> vector<16x128xf32>
    %157 = arith.truncf %156 : vector<16x128xf32> to vector<16x128xbf16>
    %c3_145 = arith.constant 3 : index
    %c0_146 = arith.constant 0 : index
    %c0_147 = arith.constant 0 : index
    %158 = vector.load %arg7[%c3_145, %c0_146, %c0_147] : memref<4x16x32xbf16, #tpu.memory_space<vmem>>, vector<1x16x32xbf16>
    %159 = vector.shape_cast %158 : vector<1x16x32xbf16> to vector<16x32xbf16>
    %cst_148 = arith.constant dense<0.000000e+00> : vector<16x128xf32>
    %160 = tpu.matmul %159, %144, %cst_148 {dimension_numbers = #tpu.dot_dimension_numbers<[1], [0], [0], [1], [0, 0, 1, 1], [], []>} : vector<16x32xbf16>, vector<32x128xbf16>, vector<16x128xf32> -> vector<16x128xf32>
    %161 = arith.truncf %160 : vector<16x128xf32> to vector<16x128xbf16>
    %c0_149 = arith.constant 0 : index
    %c0_150 = arith.constant 0 : index
    %c0_151 = arith.constant 0 : index
    %162 = vector.load %arg8[%c0_149, %c0_150, %c0_151] : memref<6x128x128xbf16, #tpu.memory_space<vmem>>, vector<1x128x128xbf16>
    %163 = vector.shape_cast %162 : vector<1x128x128xbf16> to vector<128x128xbf16>
    %cst_152 = arith.constant dense<0.000000e+00> : vector<16x128xf32>
    %164 = tpu.matmul %149, %163, %cst_152 {dimension_numbers = #tpu.dot_dimension_numbers<[1], [0], [0], [1], [0, 0, 1, 1], [], []>} : vector<16x128xbf16>, vector<128x128xbf16>, vector<16x128xf32> -> vector<16x128xf32>
    %c1_153 = arith.constant 1 : index
    %c0_154 = arith.constant 0 : index
    %c0_155 = arith.constant 0 : index
    %165 = vector.load %arg8[%c1_153, %c0_154, %c0_155] : memref<6x128x128xbf16, #tpu.memory_space<vmem>>, vector<1x128x128xbf16>
    %166 = vector.shape_cast %165 : vector<1x128x128xbf16> to vector<128x128xbf16>
    %cst_156 = arith.constant dense<0.000000e+00> : vector<16x128xf32>
    %167 = tpu.matmul %153, %166, %cst_156 {dimension_numbers = #tpu.dot_dimension_numbers<[1], [0], [0], [1], [0, 0, 1, 1], [], []>} : vector<16x128xbf16>, vector<128x128xbf16>, vector<16x128xf32> -> vector<16x128xf32>
    %168 = arith.addf %164, %167 : vector<16x128xf32>
    %c2_157 = arith.constant 2 : index
    %c0_158 = arith.constant 0 : index
    %c0_159 = arith.constant 0 : index
    %169 = vector.load %arg8[%c2_157, %c0_158, %c0_159] : memref<6x128x128xbf16, #tpu.memory_space<vmem>>, vector<1x128x128xbf16>
    %170 = vector.shape_cast %169 : vector<1x128x128xbf16> to vector<128x128xbf16>
    %cst_160 = arith.constant dense<0.000000e+00> : vector<16x128xf32>
    %171 = tpu.matmul %157, %170, %cst_160 {dimension_numbers = #tpu.dot_dimension_numbers<[1], [0], [0], [1], [0, 0, 1, 1], [], []>} : vector<16x128xbf16>, vector<128x128xbf16>, vector<16x128xf32> -> vector<16x128xf32>
    %172 = arith.addf %168, %171 : vector<16x128xf32>
    %c3_161 = arith.constant 3 : index
    %c0_162 = arith.constant 0 : index
    %c0_163 = arith.constant 0 : index
    %173 = vector.load %arg8[%c3_161, %c0_162, %c0_163] : memref<6x128x128xbf16, #tpu.memory_space<vmem>>, vector<1x128x128xbf16>
    %174 = vector.shape_cast %173 : vector<1x128x128xbf16> to vector<128x128xbf16>
    %cst_164 = arith.constant dense<0.000000e+00> : vector<16x128xf32>
    %175 = tpu.matmul %149, %174, %cst_164 {dimension_numbers = #tpu.dot_dimension_numbers<[1], [0], [0], [1], [0, 0, 1, 1], [], []>} : vector<16x128xbf16>, vector<128x128xbf16>, vector<16x128xf32> -> vector<16x128xf32>
    %c4_165 = arith.constant 4 : index
    %c0_166 = arith.constant 0 : index
    %c0_167 = arith.constant 0 : index
    %176 = vector.load %arg8[%c4_165, %c0_166, %c0_167] : memref<6x128x128xbf16, #tpu.memory_space<vmem>>, vector<1x128x128xbf16>
    %177 = vector.shape_cast %176 : vector<1x128x128xbf16> to vector<128x128xbf16>
    %cst_168 = arith.constant dense<0.000000e+00> : vector<16x128xf32>
    %178 = tpu.matmul %153, %177, %cst_168 {dimension_numbers = #tpu.dot_dimension_numbers<[1], [0], [0], [1], [0, 0, 1, 1], [], []>} : vector<16x128xbf16>, vector<128x128xbf16>, vector<16x128xf32> -> vector<16x128xf32>
    %179 = arith.addf %175, %178 : vector<16x128xf32>
    %c5_169 = arith.constant 5 : index
    %c0_170 = arith.constant 0 : index
    %c0_171 = arith.constant 0 : index
    %180 = vector.load %arg8[%c5_169, %c0_170, %c0_171] : memref<6x128x128xbf16, #tpu.memory_space<vmem>>, vector<1x128x128xbf16>
    %181 = vector.shape_cast %180 : vector<1x128x128xbf16> to vector<128x128xbf16>
    %cst_172 = arith.constant dense<0.000000e+00> : vector<16x128xf32>
    %182 = tpu.matmul %157, %181, %cst_172 {dimension_numbers = #tpu.dot_dimension_numbers<[1], [0], [0], [1], [0, 0, 1, 1], [], []>} : vector<16x128xbf16>, vector<128x128xbf16>, vector<16x128xf32> -> vector<16x128xf32>
    %183 = arith.addf %179, %182 : vector<16x128xf32>
    %c0_173 = arith.constant 0 : index
    %c0_174 = arith.constant 0 : index
    %c0_175 = arith.constant 0 : index
    %184 = vector.load %arg8[%c0_173, %c0_174, %c0_175] : memref<6x128x128xbf16, #tpu.memory_space<vmem>>, vector<1x128x128xbf16>
    %185 = vector.shape_cast %184 : vector<1x128x128xbf16> to vector<128x128xbf16>
    %cst_176 = arith.constant dense<0.000000e+00> : vector<16x128xf32>
    %186 = tpu.matmul %153, %185, %cst_176 {dimension_numbers = #tpu.dot_dimension_numbers<[1], [0], [0], [1], [0, 0, 1, 1], [], []>} : vector<16x128xbf16>, vector<128x128xbf16>, vector<16x128xf32> -> vector<16x128xf32>
    %c1_177 = arith.constant 1 : index
    %c0_178 = arith.constant 0 : index
    %c0_179 = arith.constant 0 : index
    %187 = vector.load %arg8[%c1_177, %c0_178, %c0_179] : memref<6x128x128xbf16, #tpu.memory_space<vmem>>, vector<1x128x128xbf16>
    %188 = vector.shape_cast %187 : vector<1x128x128xbf16> to vector<128x128xbf16>
    %cst_180 = arith.constant dense<0.000000e+00> : vector<16x128xf32>
    %189 = tpu.matmul %157, %188, %cst_180 {dimension_numbers = #tpu.dot_dimension_numbers<[1], [0], [0], [1], [0, 0, 1, 1], [], []>} : vector<16x128xbf16>, vector<128x128xbf16>, vector<16x128xf32> -> vector<16x128xf32>
    %190 = arith.addf %186, %189 : vector<16x128xf32>
    %c2_181 = arith.constant 2 : index
    %c0_182 = arith.constant 0 : index
    %c0_183 = arith.constant 0 : index
    %191 = vector.load %arg8[%c2_181, %c0_182, %c0_183] : memref<6x128x128xbf16, #tpu.memory_space<vmem>>, vector<1x128x128xbf16>
    %192 = vector.shape_cast %191 : vector<1x128x128xbf16> to vector<128x128xbf16>
    %cst_184 = arith.constant dense<0.000000e+00> : vector<16x128xf32>
    %193 = tpu.matmul %161, %192, %cst_184 {dimension_numbers = #tpu.dot_dimension_numbers<[1], [0], [0], [1], [0, 0, 1, 1], [], []>} : vector<16x128xbf16>, vector<128x128xbf16>, vector<16x128xf32> -> vector<16x128xf32>
    %194 = arith.addf %190, %193 : vector<16x128xf32>
    %c3_185 = arith.constant 3 : index
    %c0_186 = arith.constant 0 : index
    %c0_187 = arith.constant 0 : index
    %195 = vector.load %arg8[%c3_185, %c0_186, %c0_187] : memref<6x128x128xbf16, #tpu.memory_space<vmem>>, vector<1x128x128xbf16>
    %196 = vector.shape_cast %195 : vector<1x128x128xbf16> to vector<128x128xbf16>
    %cst_188 = arith.constant dense<0.000000e+00> : vector<16x128xf32>
    %197 = tpu.matmul %153, %196, %cst_188 {dimension_numbers = #tpu.dot_dimension_numbers<[1], [0], [0], [1], [0, 0, 1, 1], [], []>} : vector<16x128xbf16>, vector<128x128xbf16>, vector<16x128xf32> -> vector<16x128xf32>
    %c4_189 = arith.constant 4 : index
    %c0_190 = arith.constant 0 : index
    %c0_191 = arith.constant 0 : index
    %198 = vector.load %arg8[%c4_189, %c0_190, %c0_191] : memref<6x128x128xbf16, #tpu.memory_space<vmem>>, vector<1x128x128xbf16>
    %199 = vector.shape_cast %198 : vector<1x128x128xbf16> to vector<128x128xbf16>
    %cst_192 = arith.constant dense<0.000000e+00> : vector<16x128xf32>
    %200 = tpu.matmul %157, %199, %cst_192 {dimension_numbers = #tpu.dot_dimension_numbers<[1], [0], [0], [1], [0, 0, 1, 1], [], []>} : vector<16x128xbf16>, vector<128x128xbf16>, vector<16x128xf32> -> vector<16x128xf32>
    %201 = arith.addf %197, %200 : vector<16x128xf32>
    %c5_193 = arith.constant 5 : index
    %c0_194 = arith.constant 0 : index
    %c0_195 = arith.constant 0 : index
    %202 = vector.load %arg8[%c5_193, %c0_194, %c0_195] : memref<6x128x128xbf16, #tpu.memory_space<vmem>>, vector<1x128x128xbf16>
    %203 = vector.shape_cast %202 : vector<1x128x128xbf16> to vector<128x128xbf16>
    %cst_196 = arith.constant dense<0.000000e+00> : vector<16x128xf32>
    %204 = tpu.matmul %161, %203, %cst_196 {dimension_numbers = #tpu.dot_dimension_numbers<[1], [0], [0], [1], [0, 0, 1, 1], [], []>} : vector<16x128xbf16>, vector<128x128xbf16>, vector<16x128xf32> -> vector<16x128xf32>
    %205 = arith.addf %201, %204 : vector<16x128xf32>
    %206 = arith.maximumf %172, %183 : vector<16x128xf32>
    %207 = arith.maximumf %194, %205 : vector<16x128xf32>
    %208 = arith.maximumf %206, %207 : vector<16x128xf32>
    %209 = vector.broadcast %145 : vector<1x128xf32> to vector<16x128xf32>
    %210 = arith.addf %208, %209 : vector<16x128xf32>
    %cst_197 = arith.constant 0.000000e+00 : f32
    %211 = vector.broadcast %cst_197 : f32 to vector<16x128xf32>
    %212 = arith.cmpf oge, %210, %211 : vector<16x128xf32>
    %cst_198 = arith.constant 0.00999999977 : f32
    %213 = vector.broadcast %cst_198 : f32 to vector<16x128xf32>
    %214 = arith.mulf %213, %210 : vector<16x128xf32>
    %215 = arith.select %212, %210, %214 : vector<16x128xi1>, vector<16x128xf32>
    %216 = arith.truncf %215 : vector<16x128xf32> to vector<16x128xbf16>
    %c0_199 = arith.constant 0 : index
    %c0_200 = arith.constant 0 : index
    %217 = vector.load %arg10[%c0_199, %c0_200] : memref<8x16xbf16, #tpu.memory_space<vmem>>, vector<8x16xbf16>
    %cst_201 = arith.constant dense<0.000000e+00> : vector<8x128xf32>
    %218 = tpu.matmul %217, %216, %cst_201 {dimension_numbers = #tpu.dot_dimension_numbers<[1], [0], [0], [1], [0, 0, 1, 1], [], []>} : vector<8x16xbf16>, vector<16x128xbf16>, vector<8x128xf32> -> vector<8x128xf32>
    %219 = arith.truncf %218 : vector<8x128xf32> to vector<8x128xbf16>
    %c0_202 = arith.constant 0 : index
    %c0_203 = arith.constant 0 : index
    %220 = vector.load %arg11[%c0_202, %c0_203] : memref<128x128xbf16, #tpu.memory_space<vmem>>, vector<128x128xbf16>
    %cst_204 = arith.constant dense<0.000000e+00> : vector<8x128xf32>
    %221 = tpu.matmul %219, %220, %cst_204 {dimension_numbers = #tpu.dot_dimension_numbers<[1], [0], [0], [1], [0, 0, 1, 1], [], []>} : vector<8x128xbf16>, vector<128x128xbf16>, vector<8x128xf32> -> vector<8x128xf32>
    %222 = arith.truncf %221 : vector<8x128xf32> to vector<8x128xbf16>
    %c0_205 = arith.constant 0 : index
    %c0_206 = arith.constant 0 : index
    %c0_207 = arith.constant 0 : index
    %223 = vector.load %arg12[%c0_205, %c0_206, %c0_207] : memref<4x8x8xbf16, #tpu.memory_space<vmem>>, vector<1x8x8xbf16>
    %224 = vector.shape_cast %223 : vector<1x8x8xbf16> to vector<8x8xbf16>
    %cst_208 = arith.constant dense<0.000000e+00> : vector<8x128xf32>
    %225 = tpu.matmul %224, %222, %cst_208 {dimension_numbers = #tpu.dot_dimension_numbers<[1], [0], [0], [1], [0, 0, 1, 1], [], []>} : vector<8x8xbf16>, vector<8x128xbf16>, vector<8x128xf32> -> vector<8x128xf32>
    %226 = arith.truncf %225 : vector<8x128xf32> to vector<8x128xbf16>
    %c0_209 = arith.constant 0 : index
    %c0_210 = arith.constant 0 : index
    %c0_211 = arith.constant 0 : index
    %227 = vector.load %arg13[%c0_209, %c0_210, %c0_211] : memref<8x128x128xbf16, #tpu.memory_space<vmem>>, vector<1x128x128xbf16>
    %228 = vector.shape_cast %227 : vector<1x128x128xbf16> to vector<128x128xbf16>
    %cst_212 = arith.constant dense<0.000000e+00> : vector<8x128xf32>
    %229 = tpu.matmul %226, %228, %cst_212 {dimension_numbers = #tpu.dot_dimension_numbers<[1], [0], [0], [1], [0, 0, 1, 1], [], []>} : vector<8x128xbf16>, vector<128x128xbf16>, vector<8x128xf32> -> vector<8x128xf32>
    %c1_213 = arith.constant 1 : index
    %c0_214 = arith.constant 0 : index
    %c0_215 = arith.constant 0 : index
    %230 = vector.load %arg13[%c1_213, %c0_214, %c0_215] : memref<8x128x128xbf16, #tpu.memory_space<vmem>>, vector<1x128x128xbf16>
    %231 = vector.shape_cast %230 : vector<1x128x128xbf16> to vector<128x128xbf16>
    %cst_216 = arith.constant dense<0.000000e+00> : vector<8x128xf32>
    %232 = tpu.matmul %222, %231, %cst_216 {dimension_numbers = #tpu.dot_dimension_numbers<[1], [0], [0], [1], [0, 0, 1, 1], [], []>} : vector<8x128xbf16>, vector<128x128xbf16>, vector<8x128xf32> -> vector<8x128xf32>
    %233 = arith.addf %229, %232 : vector<8x128xf32>
    %c0_217 = arith.constant 0 : index
    %c0_218 = arith.constant 0 : index
    %c0_219 = arith.constant 0 : index
    %234 = vector.load %arg14[%c0_217, %c0_218, %c0_219] : memref<4x1x128xf32, #tpu.memory_space<vmem>>, vector<1x1x128xf32>
    %235 = vector.shape_cast %234 : vector<1x1x128xf32> to vector<1x128xf32>
    %236 = vector.broadcast %235 : vector<1x128xf32> to vector<8x128xf32>
    %237 = arith.addf %233, %236 : vector<8x128xf32>
    %cst_220 = arith.constant 0.000000e+00 : f32
    %238 = vector.broadcast %cst_220 : f32 to vector<8x128xf32>
    %239 = arith.maximumf %237, %238 : vector<8x128xf32>
    %240 = arith.truncf %239 : vector<8x128xf32> to vector<8x128xbf16>
    %cst_221 = arith.constant dense<0.000000e+00> : vector<8x128xf32>
    %241 = tpu.matmul %224, %240, %cst_221 {dimension_numbers = #tpu.dot_dimension_numbers<[1], [0], [0], [1], [0, 0, 1, 1], [], []>} : vector<8x8xbf16>, vector<8x128xbf16>, vector<8x128xf32> -> vector<8x128xf32>
    %242 = arith.truncf %241 : vector<8x128xf32> to vector<8x128xbf16>
    %c0_222 = arith.constant 0 : index
    %c0_223 = arith.constant 0 : index
    %c0_224 = arith.constant 0 : index
    %243 = vector.load %arg15[%c0_222, %c0_223, %c0_224] : memref<8x128x128xbf16, #tpu.memory_space<vmem>>, vector<1x128x128xbf16>
    %244 = vector.shape_cast %243 : vector<1x128x128xbf16> to vector<128x128xbf16>
    %cst_225 = arith.constant dense<0.000000e+00> : vector<8x128xf32>
    %245 = tpu.matmul %242, %244, %cst_225 {dimension_numbers = #tpu.dot_dimension_numbers<[1], [0], [0], [1], [0, 0, 1, 1], [], []>} : vector<8x128xbf16>, vector<128x128xbf16>, vector<8x128xf32> -> vector<8x128xf32>
    %c1_226 = arith.constant 1 : index
    %c0_227 = arith.constant 0 : index
    %c0_228 = arith.constant 0 : index
    %246 = vector.load %arg15[%c1_226, %c0_227, %c0_228] : memref<8x128x128xbf16, #tpu.memory_space<vmem>>, vector<1x128x128xbf16>
    %247 = vector.shape_cast %246 : vector<1x128x128xbf16> to vector<128x128xbf16>
    %cst_229 = arith.constant dense<0.000000e+00> : vector<8x128xf32>
    %248 = tpu.matmul %240, %247, %cst_229 {dimension_numbers = #tpu.dot_dimension_numbers<[1], [0], [0], [1], [0, 0, 1, 1], [], []>} : vector<8x128xbf16>, vector<128x128xbf16>, vector<8x128xf32> -> vector<8x128xf32>
    %249 = arith.addf %245, %248 : vector<8x128xf32>
    %c0_230 = arith.constant 0 : index
    %c0_231 = arith.constant 0 : index
    %c0_232 = arith.constant 0 : index
    %250 = vector.load %arg16[%c0_230, %c0_231, %c0_232] : memref<4x1x128xf32, #tpu.memory_space<vmem>>, vector<1x1x128xf32>
    %251 = vector.shape_cast %250 : vector<1x1x128xf32> to vector<1x128xf32>
    %252 = vector.broadcast %251 : vector<1x128xf32> to vector<8x128xf32>
    %253 = arith.addf %249, %252 : vector<8x128xf32>
    %cst_233 = arith.constant 0.000000e+00 : f32
    %254 = vector.broadcast %cst_233 : f32 to vector<8x128xf32>
    %255 = arith.maximumf %253, %254 : vector<8x128xf32>
    %256 = arith.addf %255, %221 : vector<8x128xf32>
    %cst_234 = arith.constant 0.000000e+00 : f32
    %257 = vector.broadcast %cst_234 : f32 to vector<8x128xf32>
    %258 = arith.maximumf %256, %257 : vector<8x128xf32>
    %259 = arith.truncf %258 : vector<8x128xf32> to vector<8x128xbf16>
    %c1_235 = arith.constant 1 : index
    %c0_236 = arith.constant 0 : index
    %c0_237 = arith.constant 0 : index
    %260 = vector.load %arg12[%c1_235, %c0_236, %c0_237] : memref<4x8x8xbf16, #tpu.memory_space<vmem>>, vector<1x8x8xbf16>
    %261 = vector.shape_cast %260 : vector<1x8x8xbf16> to vector<8x8xbf16>
    %cst_238 = arith.constant dense<0.000000e+00> : vector<8x128xf32>
    %262 = tpu.matmul %261, %259, %cst_238 {dimension_numbers = #tpu.dot_dimension_numbers<[1], [0], [0], [1], [0, 0, 1, 1], [], []>} : vector<8x8xbf16>, vector<8x128xbf16>, vector<8x128xf32> -> vector<8x128xf32>
    %263 = arith.truncf %262 : vector<8x128xf32> to vector<8x128xbf16>
    %c2_239 = arith.constant 2 : index
    %c0_240 = arith.constant 0 : index
    %c0_241 = arith.constant 0 : index
    %264 = vector.load %arg13[%c2_239, %c0_240, %c0_241] : memref<8x128x128xbf16, #tpu.memory_space<vmem>>, vector<1x128x128xbf16>
    %265 = vector.shape_cast %264 : vector<1x128x128xbf16> to vector<128x128xbf16>
    %cst_242 = arith.constant dense<0.000000e+00> : vector<8x128xf32>
    %266 = tpu.matmul %263, %265, %cst_242 {dimension_numbers = #tpu.dot_dimension_numbers<[1], [0], [0], [1], [0, 0, 1, 1], [], []>} : vector<8x128xbf16>, vector<128x128xbf16>, vector<8x128xf32> -> vector<8x128xf32>
    %c3_243 = arith.constant 3 : index
    %c0_244 = arith.constant 0 : index
    %c0_245 = arith.constant 0 : index
    %267 = vector.load %arg13[%c3_243, %c0_244, %c0_245] : memref<8x128x128xbf16, #tpu.memory_space<vmem>>, vector<1x128x128xbf16>
    %268 = vector.shape_cast %267 : vector<1x128x128xbf16> to vector<128x128xbf16>
    %cst_246 = arith.constant dense<0.000000e+00> : vector<8x128xf32>
    %269 = tpu.matmul %259, %268, %cst_246 {dimension_numbers = #tpu.dot_dimension_numbers<[1], [0], [0], [1], [0, 0, 1, 1], [], []>} : vector<8x128xbf16>, vector<128x128xbf16>, vector<8x128xf32> -> vector<8x128xf32>
    %270 = arith.addf %266, %269 : vector<8x128xf32>
    %c1_247 = arith.constant 1 : index
    %c0_248 = arith.constant 0 : index
    %c0_249 = arith.constant 0 : index
    %271 = vector.load %arg14[%c1_247, %c0_248, %c0_249] : memref<4x1x128xf32, #tpu.memory_space<vmem>>, vector<1x1x128xf32>
    %272 = vector.shape_cast %271 : vector<1x1x128xf32> to vector<1x128xf32>
    %273 = vector.broadcast %272 : vector<1x128xf32> to vector<8x128xf32>
    %274 = arith.addf %270, %273 : vector<8x128xf32>
    %cst_250 = arith.constant 0.000000e+00 : f32
    %275 = vector.broadcast %cst_250 : f32 to vector<8x128xf32>
    %276 = arith.maximumf %274, %275 : vector<8x128xf32>
    %277 = arith.truncf %276 : vector<8x128xf32> to vector<8x128xbf16>
    %cst_251 = arith.constant dense<0.000000e+00> : vector<8x128xf32>
    %278 = tpu.matmul %261, %277, %cst_251 {dimension_numbers = #tpu.dot_dimension_numbers<[1], [0], [0], [1], [0, 0, 1, 1], [], []>} : vector<8x8xbf16>, vector<8x128xbf16>, vector<8x128xf32> -> vector<8x128xf32>
    %279 = arith.truncf %278 : vector<8x128xf32> to vector<8x128xbf16>
    %c2_252 = arith.constant 2 : index
    %c0_253 = arith.constant 0 : index
    %c0_254 = arith.constant 0 : index
    %280 = vector.load %arg15[%c2_252, %c0_253, %c0_254] : memref<8x128x128xbf16, #tpu.memory_space<vmem>>, vector<1x128x128xbf16>
    %281 = vector.shape_cast %280 : vector<1x128x128xbf16> to vector<128x128xbf16>
    %cst_255 = arith.constant dense<0.000000e+00> : vector<8x128xf32>
    %282 = tpu.matmul %279, %281, %cst_255 {dimension_numbers = #tpu.dot_dimension_numbers<[1], [0], [0], [1], [0, 0, 1, 1], [], []>} : vector<8x128xbf16>, vector<128x128xbf16>, vector<8x128xf32> -> vector<8x128xf32>
    %c3_256 = arith.constant 3 : index
    %c0_257 = arith.constant 0 : index
    %c0_258 = arith.constant 0 : index
    %283 = vector.load %arg15[%c3_256, %c0_257, %c0_258] : memref<8x128x128xbf16, #tpu.memory_space<vmem>>, vector<1x128x128xbf16>
    %284 = vector.shape_cast %283 : vector<1x128x128xbf16> to vector<128x128xbf16>
    %cst_259 = arith.constant dense<0.000000e+00> : vector<8x128xf32>
    %285 = tpu.matmul %277, %284, %cst_259 {dimension_numbers = #tpu.dot_dimension_numbers<[1], [0], [0], [1], [0, 0, 1, 1], [], []>} : vector<8x128xbf16>, vector<128x128xbf16>, vector<8x128xf32> -> vector<8x128xf32>
    %286 = arith.addf %282, %285 : vector<8x128xf32>
    %c1_260 = arith.constant 1 : index
    %c0_261 = arith.constant 0 : index
    %c0_262 = arith.constant 0 : index
    %287 = vector.load %arg16[%c1_260, %c0_261, %c0_262] : memref<4x1x128xf32, #tpu.memory_space<vmem>>, vector<1x1x128xf32>
    %288 = vector.shape_cast %287 : vector<1x1x128xf32> to vector<1x128xf32>
    %289 = vector.broadcast %288 : vector<1x128xf32> to vector<8x128xf32>
    %290 = arith.addf %286, %289 : vector<8x128xf32>
    %cst_263 = arith.constant 0.000000e+00 : f32
    %291 = vector.broadcast %cst_263 : f32 to vector<8x128xf32>
    %292 = arith.maximumf %290, %291 : vector<8x128xf32>
    %293 = arith.addf %292, %258 : vector<8x128xf32>
    %cst_264 = arith.constant 0.000000e+00 : f32
    %294 = vector.broadcast %cst_264 : f32 to vector<8x128xf32>
    %295 = arith.maximumf %293, %294 : vector<8x128xf32>
    %296 = arith.truncf %295 : vector<8x128xf32> to vector<8x128xbf16>
    %c2_265 = arith.constant 2 : index
    %c0_266 = arith.constant 0 : index
    %c0_267 = arith.constant 0 : index
    %297 = vector.load %arg12[%c2_265, %c0_266, %c0_267] : memref<4x8x8xbf16, #tpu.memory_space<vmem>>, vector<1x8x8xbf16>
    %298 = vector.shape_cast %297 : vector<1x8x8xbf16> to vector<8x8xbf16>
    %cst_268 = arith.constant dense<0.000000e+00> : vector<8x128xf32>
    %299 = tpu.matmul %298, %296, %cst_268 {dimension_numbers = #tpu.dot_dimension_numbers<[1], [0], [0], [1], [0, 0, 1, 1], [], []>} : vector<8x8xbf16>, vector<8x128xbf16>, vector<8x128xf32> -> vector<8x128xf32>
    %300 = arith.truncf %299 : vector<8x128xf32> to vector<8x128xbf16>
    %c4_269 = arith.constant 4 : index
    %c0_270 = arith.constant 0 : index
    %c0_271 = arith.constant 0 : index
    %301 = vector.load %arg13[%c4_269, %c0_270, %c0_271] : memref<8x128x128xbf16, #tpu.memory_space<vmem>>, vector<1x128x128xbf16>
    %302 = vector.shape_cast %301 : vector<1x128x128xbf16> to vector<128x128xbf16>
    %cst_272 = arith.constant dense<0.000000e+00> : vector<8x128xf32>
    %303 = tpu.matmul %300, %302, %cst_272 {dimension_numbers = #tpu.dot_dimension_numbers<[1], [0], [0], [1], [0, 0, 1, 1], [], []>} : vector<8x128xbf16>, vector<128x128xbf16>, vector<8x128xf32> -> vector<8x128xf32>
    %c5_273 = arith.constant 5 : index
    %c0_274 = arith.constant 0 : index
    %c0_275 = arith.constant 0 : index
    %304 = vector.load %arg13[%c5_273, %c0_274, %c0_275] : memref<8x128x128xbf16, #tpu.memory_space<vmem>>, vector<1x128x128xbf16>
    %305 = vector.shape_cast %304 : vector<1x128x128xbf16> to vector<128x128xbf16>
    %cst_276 = arith.constant dense<0.000000e+00> : vector<8x128xf32>
    %306 = tpu.matmul %296, %305, %cst_276 {dimension_numbers = #tpu.dot_dimension_numbers<[1], [0], [0], [1], [0, 0, 1, 1], [], []>} : vector<8x128xbf16>, vector<128x128xbf16>, vector<8x128xf32> -> vector<8x128xf32>
    %307 = arith.addf %303, %306 : vector<8x128xf32>
    %c2_277 = arith.constant 2 : index
    %c0_278 = arith.constant 0 : index
    %c0_279 = arith.constant 0 : index
    %308 = vector.load %arg14[%c2_277, %c0_278, %c0_279] : memref<4x1x128xf32, #tpu.memory_space<vmem>>, vector<1x1x128xf32>
    %309 = vector.shape_cast %308 : vector<1x1x128xf32> to vector<1x128xf32>
    %310 = vector.broadcast %309 : vector<1x128xf32> to vector<8x128xf32>
    %311 = arith.addf %307, %310 : vector<8x128xf32>
    %cst_280 = arith.constant 0.000000e+00 : f32
    %312 = vector.broadcast %cst_280 : f32 to vector<8x128xf32>
    %313 = arith.maximumf %311, %312 : vector<8x128xf32>
    %314 = arith.truncf %313 : vector<8x128xf32> to vector<8x128xbf16>
    %cst_281 = arith.constant dense<0.000000e+00> : vector<8x128xf32>
    %315 = tpu.matmul %298, %314, %cst_281 {dimension_numbers = #tpu.dot_dimension_numbers<[1], [0], [0], [1], [0, 0, 1, 1], [], []>} : vector<8x8xbf16>, vector<8x128xbf16>, vector<8x128xf32> -> vector<8x128xf32>
    %316 = arith.truncf %315 : vector<8x128xf32> to vector<8x128xbf16>
    %c4_282 = arith.constant 4 : index
    %c0_283 = arith.constant 0 : index
    %c0_284 = arith.constant 0 : index
    %317 = vector.load %arg15[%c4_282, %c0_283, %c0_284] : memref<8x128x128xbf16, #tpu.memory_space<vmem>>, vector<1x128x128xbf16>
    %318 = vector.shape_cast %317 : vector<1x128x128xbf16> to vector<128x128xbf16>
    %cst_285 = arith.constant dense<0.000000e+00> : vector<8x128xf32>
    %319 = tpu.matmul %316, %318, %cst_285 {dimension_numbers = #tpu.dot_dimension_numbers<[1], [0], [0], [1], [0, 0, 1, 1], [], []>} : vector<8x128xbf16>, vector<128x128xbf16>, vector<8x128xf32> -> vector<8x128xf32>
    %c5_286 = arith.constant 5 : index
    %c0_287 = arith.constant 0 : index
    %c0_288 = arith.constant 0 : index
    %320 = vector.load %arg15[%c5_286, %c0_287, %c0_288] : memref<8x128x128xbf16, #tpu.memory_space<vmem>>, vector<1x128x128xbf16>
    %321 = vector.shape_cast %320 : vector<1x128x128xbf16> to vector<128x128xbf16>
    %cst_289 = arith.constant dense<0.000000e+00> : vector<8x128xf32>
    %322 = tpu.matmul %314, %321, %cst_289 {dimension_numbers = #tpu.dot_dimension_numbers<[1], [0], [0], [1], [0, 0, 1, 1], [], []>} : vector<8x128xbf16>, vector<128x128xbf16>, vector<8x128xf32> -> vector<8x128xf32>
    %323 = arith.addf %319, %322 : vector<8x128xf32>
    %c2_290 = arith.constant 2 : index
    %c0_291 = arith.constant 0 : index
    %c0_292 = arith.constant 0 : index
    %324 = vector.load %arg16[%c2_290, %c0_291, %c0_292] : memref<4x1x128xf32, #tpu.memory_space<vmem>>, vector<1x1x128xf32>
    %325 = vector.shape_cast %324 : vector<1x1x128xf32> to vector<1x128xf32>
    %326 = vector.broadcast %325 : vector<1x128xf32> to vector<8x128xf32>
    %327 = arith.addf %323, %326 : vector<8x128xf32>
    %cst_293 = arith.constant 0.000000e+00 : f32
    %328 = vector.broadcast %cst_293 : f32 to vector<8x128xf32>
    %329 = arith.maximumf %327, %328 : vector<8x128xf32>
    %c0_294 = arith.constant 0 : index
    %c0_295 = arith.constant 0 : index
    %330 = vector.load %arg17[%c0_294, %c0_295] : memref<128x128xbf16, #tpu.memory_space<vmem>>, vector<128x128xbf16>
    %cst_296 = arith.constant dense<0.000000e+00> : vector<8x128xf32>
    %331 = tpu.matmul %296, %330, %cst_296 {dimension_numbers = #tpu.dot_dimension_numbers<[1], [0], [0], [1], [0, 0, 1, 1], [], []>} : vector<8x128xbf16>, vector<128x128xbf16>, vector<8x128xf32> -> vector<8x128xf32>
    %c0_297 = arith.constant 0 : index
    %c0_298 = arith.constant 0 : index
    %332 = vector.load %arg18[%c0_297, %c0_298] : memref<1x128xf32, #tpu.memory_space<vmem>>, vector<1x128xf32>
    %333 = vector.broadcast %332 : vector<1x128xf32> to vector<8x128xf32>
    %334 = arith.addf %331, %333 : vector<8x128xf32>
    %335 = arith.addf %329, %334 : vector<8x128xf32>
    %cst_299 = arith.constant 0.000000e+00 : f32
    %336 = vector.broadcast %cst_299 : f32 to vector<8x128xf32>
    %337 = arith.maximumf %335, %336 : vector<8x128xf32>
    %338 = arith.truncf %337 : vector<8x128xf32> to vector<8x128xbf16>
    %c3_300 = arith.constant 3 : index
    %c0_301 = arith.constant 0 : index
    %c0_302 = arith.constant 0 : index
    %339 = vector.load %arg12[%c3_300, %c0_301, %c0_302] : memref<4x8x8xbf16, #tpu.memory_space<vmem>>, vector<1x8x8xbf16>
    %340 = vector.shape_cast %339 : vector<1x8x8xbf16> to vector<8x8xbf16>
    %cst_303 = arith.constant dense<0.000000e+00> : vector<8x128xf32>
    %341 = tpu.matmul %340, %338, %cst_303 {dimension_numbers = #tpu.dot_dimension_numbers<[1], [0], [0], [1], [0, 0, 1, 1], [], []>} : vector<8x8xbf16>, vector<8x128xbf16>, vector<8x128xf32> -> vector<8x128xf32>
    %342 = arith.truncf %341 : vector<8x128xf32> to vector<8x128xbf16>
    %c6 = arith.constant 6 : index
    %c0_304 = arith.constant 0 : index
    %c0_305 = arith.constant 0 : index
    %343 = vector.load %arg13[%c6, %c0_304, %c0_305] : memref<8x128x128xbf16, #tpu.memory_space<vmem>>, vector<1x128x128xbf16>
    %344 = vector.shape_cast %343 : vector<1x128x128xbf16> to vector<128x128xbf16>
    %cst_306 = arith.constant dense<0.000000e+00> : vector<8x128xf32>
    %345 = tpu.matmul %342, %344, %cst_306 {dimension_numbers = #tpu.dot_dimension_numbers<[1], [0], [0], [1], [0, 0, 1, 1], [], []>} : vector<8x128xbf16>, vector<128x128xbf16>, vector<8x128xf32> -> vector<8x128xf32>
    %c7 = arith.constant 7 : index
    %c0_307 = arith.constant 0 : index
    %c0_308 = arith.constant 0 : index
    %346 = vector.load %arg13[%c7, %c0_307, %c0_308] : memref<8x128x128xbf16, #tpu.memory_space<vmem>>, vector<1x128x128xbf16>
    %347 = vector.shape_cast %346 : vector<1x128x128xbf16> to vector<128x128xbf16>
    %cst_309 = arith.constant dense<0.000000e+00> : vector<8x128xf32>
    %348 = tpu.matmul %338, %347, %cst_309 {dimension_numbers = #tpu.dot_dimension_numbers<[1], [0], [0], [1], [0, 0, 1, 1], [], []>} : vector<8x128xbf16>, vector<128x128xbf16>, vector<8x128xf32> -> vector<8x128xf32>
    %349 = arith.addf %345, %348 : vector<8x128xf32>
    %c3_310 = arith.constant 3 : index
    %c0_311 = arith.constant 0 : index
    %c0_312 = arith.constant 0 : index
    %350 = vector.load %arg14[%c3_310, %c0_311, %c0_312] : memref<4x1x128xf32, #tpu.memory_space<vmem>>, vector<1x1x128xf32>
    %351 = vector.shape_cast %350 : vector<1x1x128xf32> to vector<1x128xf32>
    %352 = vector.broadcast %351 : vector<1x128xf32> to vector<8x128xf32>
    %353 = arith.addf %349, %352 : vector<8x128xf32>
    %cst_313 = arith.constant 0.000000e+00 : f32
    %354 = vector.broadcast %cst_313 : f32 to vector<8x128xf32>
    %355 = arith.maximumf %353, %354 : vector<8x128xf32>
    %356 = arith.truncf %355 : vector<8x128xf32> to vector<8x128xbf16>
    %cst_314 = arith.constant dense<0.000000e+00> : vector<8x128xf32>
    %357 = tpu.matmul %340, %356, %cst_314 {dimension_numbers = #tpu.dot_dimension_numbers<[1], [0], [0], [1], [0, 0, 1, 1], [], []>} : vector<8x8xbf16>, vector<8x128xbf16>, vector<8x128xf32> -> vector<8x128xf32>
    %358 = arith.truncf %357 : vector<8x128xf32> to vector<8x128xbf16>
    %c6_315 = arith.constant 6 : index
    %c0_316 = arith.constant 0 : index
    %c0_317 = arith.constant 0 : index
    %359 = vector.load %arg15[%c6_315, %c0_316, %c0_317] : memref<8x128x128xbf16, #tpu.memory_space<vmem>>, vector<1x128x128xbf16>
    %360 = vector.shape_cast %359 : vector<1x128x128xbf16> to vector<128x128xbf16>
    %cst_318 = arith.constant dense<0.000000e+00> : vector<8x128xf32>
    %361 = tpu.matmul %358, %360, %cst_318 {dimension_numbers = #tpu.dot_dimension_numbers<[1], [0], [0], [1], [0, 0, 1, 1], [], []>} : vector<8x128xbf16>, vector<128x128xbf16>, vector<8x128xf32> -> vector<8x128xf32>
    %c7_319 = arith.constant 7 : index
    %c0_320 = arith.constant 0 : index
    %c0_321 = arith.constant 0 : index
    %362 = vector.load %arg15[%c7_319, %c0_320, %c0_321] : memref<8x128x128xbf16, #tpu.memory_space<vmem>>, vector<1x128x128xbf16>
    %363 = vector.shape_cast %362 : vector<1x128x128xbf16> to vector<128x128xbf16>
    %cst_322 = arith.constant dense<0.000000e+00> : vector<8x128xf32>
    %364 = tpu.matmul %356, %363, %cst_322 {dimension_numbers = #tpu.dot_dimension_numbers<[1], [0], [0], [1], [0, 0, 1, 1], [], []>} : vector<8x128xbf16>, vector<128x128xbf16>, vector<8x128xf32> -> vector<8x128xf32>
    %365 = arith.addf %361, %364 : vector<8x128xf32>
    %c3_323 = arith.constant 3 : index
    %c0_324 = arith.constant 0 : index
    %c0_325 = arith.constant 0 : index
    %366 = vector.load %arg16[%c3_323, %c0_324, %c0_325] : memref<4x1x128xf32, #tpu.memory_space<vmem>>, vector<1x1x128xf32>
    %367 = vector.shape_cast %366 : vector<1x1x128xf32> to vector<1x128xf32>
    %368 = vector.broadcast %367 : vector<1x128xf32> to vector<8x128xf32>
    %369 = arith.addf %365, %368 : vector<8x128xf32>
    %cst_326 = arith.constant 0.000000e+00 : f32
    %370 = vector.broadcast %cst_326 : f32 to vector<8x128xf32>
    %371 = arith.maximumf %369, %370 : vector<8x128xf32>
    %372 = arith.addf %371, %337 : vector<8x128xf32>
    %cst_327 = arith.constant 0.000000e+00 : f32
    %373 = vector.broadcast %cst_327 : f32 to vector<8x128xf32>
    %374 = arith.maximumf %372, %373 : vector<8x128xf32>
    %375 = arith.truncf %374 : vector<8x128xf32> to vector<8x128xbf16>
    %c0_328 = arith.constant 0 : index
    %c0_329 = arith.constant 0 : index
    %376 = vector.load %arg19[%c0_328, %c0_329] : memref<128x128xbf16, #tpu.memory_space<vmem>>, vector<128x128xbf16>
    %cst_330 = arith.constant dense<0.000000e+00> : vector<8x128xf32>
    %377 = tpu.matmul %375, %376, %cst_330 {dimension_numbers = #tpu.dot_dimension_numbers<[1], [0], [0], [1], [0, 0, 1, 1], [], []>} : vector<8x128xbf16>, vector<128x128xbf16>, vector<8x128xf32> -> vector<8x128xf32>
    %c0_331 = arith.constant 0 : index
    %c0_332 = arith.constant 0 : index
    %378 = vector.load %arg20[%c0_331, %c0_332] : memref<1x128xf32, #tpu.memory_space<vmem>>, vector<1x128xf32>
    %379 = vector.broadcast %378 : vector<1x128xf32> to vector<8x128xf32>
    %380 = arith.addf %377, %379 : vector<8x128xf32>
    %c0_333 = arith.constant 0 : index
    %c0_334 = arith.constant 0 : index
    %381 = vector.load %arg21[%c0_333, %c0_334] : memref<8x128xf32, #tpu.memory_space<vmem>>, vector<8x128xf32>
    tpu.vector_store %arg21[%c0_333, %c0_334], %380 {strides = array<i32>} : memref<8x128xf32, #tpu.memory_space<vmem>>, vector<8x128xf32>,
    return
  }
}

</mosaic_0001>

<bundles_post_ra>
// kernel: blinknet_forward.1
= control target key start
LH: loop header
LB: loop body
LE: loop exit
PB: predicated region body
PF: predicated region fallthrough
CT: control target
= control target key end

     0   :  { %s11749_s0 = inlined_call_operand.vmem [shape: bf16[128,48], index: 0, kind: input, shape index: {}]   ;;  %s11750_s1 = inlined_call_operand.hbm [shape: bf16[4,64,128], index: 1, kind: input, shape index: {}]   ;;  %s11751_s2 = inlined_call_operand.vmem [shape: bf16[6,48,128], index: 2, kind: input, shape index: {}]   ;;  %s11752_s3 = inlined_call_operand.hbm [shape: f32[1,128], index: 3, kind: input, shape index: {}]   ;;  %s11753_s4 = inlined_call_operand.hbm [shape: bf16[4,32,64], index: 4, kind: input, shape index: {}]   ;;  %s11754_s5 = inlined_call_operand.hbm [shape: bf16[6,128,128], index: 5, kind: input, shape index: {}]   ;;  %s11755_s6 = inlined_call_operand.hbm [shape: f32[1,128], index: 6, kind: input, shape index: {}]   ;;  %s11756_s7 = inlined_call_operand.vmem [shape: bf16[4,16,32], index: 7, kind: input, shape index: {}]   ;;  %s11757_s8 = inlined_call_operand.hbm [shape: bf16[6,128,128], index: 8, kind: input, shape index: {}]   ;;  %s11758_s9 = inlined_call_operand.hbm [shape: f32[1,128], index: 9, kind: input, shape index: {}]   ;;  %s11759_s10 = inlined_call_operand.vmem [shape: bf16[8,16], index: 10, kind: input, shape index: {}]   ;;  %s11760_s11 = inlined_call_operand.hbm [shape: bf16[128,128], index: 11, kind: input, shape index: {}]   ;;  %s11761_s12 = inlined_call_operand.vmem [shape: bf16[4,8,8], index: 12, kind: input, shape index: {}]   ;;  %s11762_s13 = inlined_call_operand.vmem [shape: bf16[8,128,128], index: 13, kind: input, shape index: {}]   ;;  %s11763_s14 = inlined_call_operand.vmem [shape: f32[4,1,128], index: 14, kind: input, shape index: {}]   ;;  %s11764_s15 = inlined_call_operand.vmem [shape: bf16[8,128,128], index: 15, kind: input, shape index: {}]   ;;  %s11765_s16 = inlined_call_operand.vmem [shape: f32[4,1,128], index: 16, kind: input, shape index: {}]   ;;  %s11766_s17 = inlined_call_operand.vmem [shape: bf16[128,128], index: 17, kind: input, shape index: {}]   ;;  %s11767_s18 = inlined_call_operand.vmem [shape: f32[1,128], index: 18, kind: input, shape index: {}]   ;;  %s11768_s19 = inlined_call_operand.hbm [shape: bf16[128,128], index: 19, kind: input, shape index: {}]   ;;  %s11769_s20 = inlined_call_operand.hbm [shape: f32[1,128], index: 20, kind: input, shape index: {}]   ;;  %s11770_s21 = inlined_call_operand.vmem [shape: f32[8,128], index: 21, kind: output, shape index: {}]  }
   0x1   :  { %11779 = sst [smem:[#allocation34_spill]] %s11749_s0 }
   0x2   :  { %11780 = sst [smem:[#allocation35_spill]] %s11750_s1 }
   0x3   :  { %11781 = sst [smem:[#allocation36_spill]] %s11751_s2 }
   0x4   :  { %11782 = sst [smem:[#allocation37_spill]] %s11752_s3 }
   0x5   :  { %11783 = sst [smem:[#allocation38_spill]] %s11753_s4 }
   0x6   :  { %11784 = sst [smem:[#allocation39_spill]] %s11754_s5 }
   0x7   :  { %26 = vsyncpa [#allocation3], 0 }
   0x8   :  { %27 = vsyncpa [#allocation5], 0 }
   0x9   :  { %28 = vsyncpa [#allocation8], 0 }
   0xa   :  { %29 = vsyncpa [#allocation11], 0 }
   0xb   :  { %30 = vsyncpa [#allocation14], 0 }
   0xc   :  { %31 = vsyncpa [#allocation17], 0  ;;  %s9740_s2 = smov [#allocation4]  }
   0xd   :  { %s54_s25 = sshll.u32 %s9740_s2, 4  ;;  %s55_s25 = int_to_ptr.vmem [resolvable:$true] %s54_s25 }
   0xe   :  { %s9536_s26 = scalar_lea.vmem %s55_s25, 16  ;;  %s9540_s27 = scalar_lea.vmem %s55_s25, 32 }
   0xf   :  { %p9537_p0 = scmp.ne.s32.totalorder %s55_s25, %s9536_s26  ;;  %p9541_p1 = scmp.lt.s32.totalorder %s55_s25, %s55_s25 }
  0x10   :  { %p9542_p2 = scmp.lt.s32.totalorder %s9540_s27, %s9536_s26 }
  0x12   :  { %p9543_p3 = por %p9542_p2, %p9541_p1 }
  0x14   :  { %p9544_p4 = pnand %p9543_p3, %p9537_p0 }
  0x16   :  { %9547 = shalt.err (!%p9544_p4)
}
  0x17   :  { %s11785_s29 = sld [smem:[#allocation37_spill]]  ;;  %s9741_s0 = smov [#allocation7]  }
  0x18   :  { %s75_s4 = sshll.u32 %s9741_s0, 4  ;;  %s9742_s30 = smov [#allocation10]   ;;  %s76_s4 = int_to_ptr.vmem [resolvable:$true] %s75_s4 }
  0x19   :  { %s99_s5 = sshll.u32 %s9742_s30, 4  ;;  %s9556_s22 = scalar_lea.vmem %s76_s4, 6144  ;;  %s100_s5 = int_to_ptr.vmem [resolvable:$true] %s99_s5 }
  0x1a   :  { %p9557_p5 = scmp.ne.s32.totalorder %s76_s4, %s9556_s22  ;;  %p9561_p6 = scmp.lt.s32.totalorder %s76_s4, %s76_s4 }
  0x1b   :  { %p9562_p7 = scmp.lt.s32.totalorder %s9556_s22, %s9556_s22 }
  0x1d   :  { %57 = dma.hbm_to_vmem [thread:$0]  %s11785_s29, 16, %s55_s25, [#allocation5]  }
  0x1e   :  { %p9563_p8 = por %p9562_p7, %p9561_p6 }
  0x20   :  { %p9564_p9 = pnand %p9563_p8, %p9557_p5 }
  0x22   :  { %9567 = shalt.err (!%p9564_p9)
}
  0x23   :  { %s9743_s23 = smov 64   ;;  %s9744_s1 = smov 4  }
  0x24   :  { %s11786_s25 = sld [smem:[#allocation39_spill]]  ;;  %s9576_s26 = scalar_lea.vmem %s100_s5, 6144 }
  0x25   :  { %p9577_p10 = scmp.ne.s32.totalorder %s100_s5, %s9576_s26  ;;  %p9581_p11 = scmp.lt.s32.totalorder %s100_s5, %s100_s5 }
  0x26   :  { %p9582_p12 = scmp.lt.s32.totalorder %s9576_s26, %s9576_s26 }
  0x28   :  { %p9583_p13 = por %p9582_p12, %p9581_p11 }
  0x2a   :  { %81 = dma.hbm_to_vmem [thread:$0]  %s11786_s25, 6144, %s76_s4, [#allocation8], %s9743_s23, %s9743_s23, %s9744_s1  }
  0x2b   :  { %p9584_p0 = pnand %p9583_p13, %p9577_p10 }
  0x2d   :  { %9587 = shalt.err (!%p9584_p0)
}
  0x2e   :  { %105 = dma.hbm_to_vmem [thread:$0]  %s11757_s8, 6144, %s100_s5, [#allocation11], %s9743_s23, %s9743_s23, %s9744_s1  }
  0x2f   :  { %s9745_s28 = smov [#allocation13]   ;;  %s9746_s0 = smov [#allocation2]  }
  0x30   :  { %s123_s29 = sshll.u32 %s9745_s28, 4  ;;  %s39_s4 = sshll.u32 %s9746_s0, 4  ;;  %s124_s29 = int_to_ptr.vmem [resolvable:$true] %s123_s29  ;;  %s40_s4 = int_to_ptr.vmem [resolvable:$true] %s39_s4 }
  0x31   :  { %s9596_s30 = scalar_lea.vmem %s124_s29, 1024  ;;  %p9601_p2 = scmp.lt.s32.totalorder %s124_s29, %s124_s29 }
  0x32   :  { %p9597_p1 = scmp.ne.s32.totalorder %s124_s29, %s9596_s30  ;;  %p9602_p3 = scmp.lt.s32.totalorder %s9596_s30, %s9596_s30 }
  0x34   :  { %p9603_p4 = por %p9602_p3, %p9601_p2 }
  0x36   :  { %p9604_p5 = pnand %p9603_p4, %p9597_p1 }
  0x38   :  { %9607 = shalt.err (!%p9604_p5)
}
  0x39   :  { %129 = dma.hbm_to_vmem [thread:$0]  %s11760_s11, 1024, %s124_s29, [#allocation14], %s9743_s23, %s9743_s23, %s9744_s1  }
  0x3a   :  { %s9616_s8 = scalar_lea.vmem %s40_s4, 2048  ;;  %p9621_p7 = scmp.lt.s32.totalorder %s40_s4, %s40_s4 }
  0x3b   :  { %p9617_p6 = scmp.ne.s32.totalorder %s40_s4, %s9616_s8  ;;  %p9622_p8 = scmp.lt.s32.totalorder %s9616_s8, %s9616_s8 }
  0x3d   :  { %p9623_p9 = por %p9622_p8, %p9621_p7 }
  0x3f   :  { %p9624_p10 = pnand %p9623_p9, %p9617_p6 }
  0x41   :  { %9627 = shalt.err (!%p9624_p10)
}
  0x42   :  { %s11787_s25 = sld [smem:[#allocation35_spill]]  ;;  %s9747_s26 = smov [#allocation6]  }
  0x43   :  { %s63_s27 = sshll.u32 %s9747_s26, 4  ;;  %s9748_s3 = smov [#allocation9]   ;;  %s64_s27 = int_to_ptr.vmem [resolvable:$true] %s63_s27 }
  0x44   :  { %s88_s11 = sshll.u32 %s9748_s3, 4  ;;  %s9636_s28 = scalar_lea.vmem %s64_s27, 1024  ;;  %s89_s11 = int_to_ptr.vmem [resolvable:$true] %s88_s11 }
  0x45   :  { %p9637_p11 = scmp.ne.s32.totalorder %s64_s27, %s9636_s28  ;;  %p9641_p12 = scmp.lt.s32.totalorder %s64_s27, %s64_s27 }
  0x46   :  { %p9642_p13 = scmp.lt.s32.totalorder %s9636_s28, %s9636_s28 }
  0x48   :  { %45 = dma.hbm_to_vmem [thread:$0]  %s11787_s25, 2048, %s40_s4, [#allocation3], %s9743_s23, %s9743_s23, %s9744_s1  }
  0x49   :  { %p9643_p0 = por %p9642_p13, %p9641_p12 }
  0x4b   :  { %p9644_p1 = pnand %p9643_p0, %p9637_p11 }
  0x4d   :  { %9647 = shalt.err (!%p9644_p1)
}
  0x4e   :  { %s11788_s30 = sld [smem:[#allocation38_spill]]  ;;  %s9656_s4 = scalar_lea.vmem %s89_s11, 16 }
  0x4f   :  { %p9657_p2 = scmp.ne.s32.totalorder %s89_s11, %s9656_s4  ;;  %s9660_s22 = scalar_lea.vmem %s89_s11, 32 }
  0x50   :  { %p9661_p3 = scmp.lt.s32.totalorder %s89_s11, %s89_s11  ;;  %p9662_p4 = scmp.lt.s32.totalorder %s9660_s22, %s9656_s4 }
  0x52   :  { %p9663_p5 = por %p9662_p4, %p9661_p3 }
  0x54   :  { %69 = dma.hbm_to_vmem [thread:$0]  %s11788_s30, 1024, %s64_s27, [#allocation5], %s9743_s23, %s9743_s23, %s9744_s1  }
  0x55   :  { %p9664_p6 = pnand %p9663_p5, %p9657_p2 }
  0x57   :  { %9667 = shalt.err (!%p9664_p6)
}
  0x58   :  { %91 = dma.hbm_to_vmem [thread:$0]  %s11755_s6, 16, %s89_s11, [#allocation8]  }
  0x59   :  { %s9749_s5 = smov [#allocation12]   ;;  %s9750_s25 = smov [#allocation15]  }
  0x5a   :  { %s112_s2 = sshll.u32 %s9749_s5, 4  ;;  %s149_s26 = sshll.u32 %s9750_s25, 4  ;;  %s113_s2 = int_to_ptr.vmem [resolvable:$true] %s112_s2  ;;  %s150_s26 = int_to_ptr.vmem [resolvable:$true] %s149_s26 }
  0x5b   :  { %s9676_s3 = scalar_lea.vmem %s113_s2, 16  ;;  %s9680_s27 = scalar_lea.vmem %s113_s2, 32 }
  0x5c   :  { %p9677_p7 = scmp.ne.s32.totalorder %s113_s2, %s9676_s3  ;;  %p9681_p8 = scmp.lt.s32.totalorder %s113_s2, %s113_s2 }
  0x5d   :  { %p9682_p9 = scmp.lt.s32.totalorder %s9680_s27, %s9676_s3 }
  0x5f   :  { %p9683_p10 = por %p9682_p9, %p9681_p8 }
  0x61   :  { %p9684_p11 = pnand %p9683_p10, %p9677_p7 }
  0x63   :  { %9687 = shalt.err (!%p9684_p11)
}
  0x64   :  { %115 = dma.hbm_to_vmem [thread:$0]  %s11758_s9, 16, %s113_s2, [#allocation11]  }
  0x65   :  { %s9696_s0 = scalar_lea.vmem %s150_s26, 1024  ;;  %p9701_p13 = scmp.lt.s32.totalorder %s150_s26, %s150_s26 }
  0x66   :  { %p9697_p12 = scmp.ne.s32.totalorder %s150_s26, %s9696_s0  ;;  %p9702_p0 = scmp.lt.s32.totalorder %s9696_s0, %s9696_s0 }
  0x68   :  { %p9703_p1 = por %p9702_p0, %p9701_p13 }
  0x6a   :  { %p9704_p2 = pnand %p9703_p1, %p9697_p12 }
  0x6c   :  { %9707 = shalt.err (!%p9704_p2)
}
  0x6d   :  { %155 = dma.hbm_to_vmem [thread:$0]  %s11768_s19, 1024, %s150_s26, [#allocation14], %s9743_s23, %s9743_s23, %s9744_s1  }
  0x6e   :  { %s9751_s30 = smov [#allocation16]  }
  0x6f   :  { %s162_s4 = sshll.u32 %s9751_s30, 4  ;;  %s163_s4 = int_to_ptr.vmem [resolvable:$true] %s162_s4 }
  0x70   :  { %s9716_s22 = scalar_lea.vmem %s163_s4, 16  ;;  %s9720_s9 = scalar_lea.vmem %s163_s4, 32 }
  0x71   :  { %p9717_p3 = scmp.ne.s32.totalorder %s163_s4, %s9716_s22  ;;  %p9721_p4 = scmp.lt.s32.totalorder %s163_s4, %s163_s4 }
  0x72   :  { %p9722_p5 = scmp.lt.s32.totalorder %s9720_s9, %s9716_s22 }
  0x74   :  { %p9723_p6 = por %p9722_p5, %p9721_p4 }
  0x76   :  { %p9724_p7 = pnand %p9723_p6, %p9717_p3 }
  0x78   :  { %9727 = shalt.err (!%p9724_p7)
}
  0x79   :  { %165 = dma.hbm_to_vmem [thread:$0]  %s11769_s20, 16, %s163_s4, [#allocation17]  }
  0x7a   :  { %9728 = dma.done.wait [#allocation3], 2048  }
  0x7b   :  { %9729 = vsyncadd [#allocation3], 4294965248 }
  0x7c   :  { %9730 = dma.done.wait [#allocation5], 1040  }
  0x7d   :  { %9731 = vsyncadd [#allocation5], 4294966256 }
  0x7e   :  { %9732 = dma.done.wait [#allocation8], 6160  }
  0x7f   :  { %9733 = vsyncadd [#allocation8], 4294961136 }
  0x80   :  { %9734 = dma.done.wait [#allocation11], 6160  }
  0x81   :  { %9735 = vsyncadd [#allocation11], 4294961136 }
  0x82   :  { %9736 = dma.done.wait [#allocation14], 2048  }
  0x83   :  { %9737 = vsyncadd [#allocation14], 4294965248 }
  0x84   :  { %9738 = dma.done.wait [#allocation17], 16  }
  0x85   :  { %9739 = vsyncadd [#allocation17], 4294967280  ;;  %s11789_s1 = sld [smem:[#allocation34_spill]]  ;;  %v9233_v4 = vld [vmem:[#allocation2] sm:$0xff]   ;;  %v9235_v10 = vld [vmem:[#allocation2 + $0x8] sm:$0xff]   ;;  %vm700_vm0 = vcmask 392192  }
  0x86   :  { %v9234_v5 = vld [vmem:[#allocation2 + $0x20] sm:$0xff]   ;;  %7969 = vmatprep.mubr.bf16.mxu0 %v9233_v4  ;;  %v9236_v11 = vld [vmem:[#allocation2 + $0x28] sm:$0xff]   ;;  %v9237_v12 = vld [vmem:[#allocation2 + $0x30] sm:$0xff]   ;;  %s11790_s24 = sld [smem:[#allocation36_spill]]  ;;  %vm1760_vm1 = vcmask 523264   ;;  %vm9753_vm10 = vmmov 0  }
  0x87   :  { %7993 = vmatprep.mubr.bf16.mxu1 %v9234_v5  ;;  %v9239_v13 = vld [vmem:[#allocation2 + $0x10] sm:$0xff]   ;;  %v9238_v14 = vld [vmem:[#allocation2 + $0x38] sm:$0xff]   ;;  %v9241_v16 = vld [vmem:[#allocation2 + $0x40] sm:$0xff]   ;;  %vm3071_vm15 = vcmask 261120  }
  0x88   :  { %v9240_v15 = vld [vmem:[#allocation2 + $0x18] sm:$0xff]   ;;  %v9245_v17 = vld [vmem:[#allocation2 + $0x60] sm:$0xff]   ;;  %v9242_v18 = vld [vmem:[#allocation2 + $0x48] sm:$0xff]  }
  0x89   :  { %v9243_v20 = vld [vmem:[#allocation2 + $0x50] sm:$0xff]   ;;  %v9246_v21 = vld [vmem:[#allocation2 + $0x68] sm:$0xff]   ;;  %v9244_v23 = vld [vmem:[#allocation2 + $0x58] sm:$0xff]  }
  0x8a   :  { %v9247_v22 = vld [vmem:[#allocation2 + $0x70] sm:$0xff]   ;;  %v9248_v24 = vld [vmem:[#allocation2 + $0x78] sm:$0xff]  }
  0x8b   :  { %v9225_v0 = vld [vmem:[%s11789_s1 + $0x38] sm:$0xff]   ;;  %v9226_v1 = vld [vmem:[%s11789_s1 + $0x30] sm:$0xff]   ;;  %v9227_v2 = vld [vmem:[%s11789_s1 + $0x28] sm:$0xff]  }
  0x8c   :  { %7953 = vmatprep.subr.bf16.mxu0 %v9225_v0  ;;  %7977 = vmatprep.subr.bf16.mxu1 %v9225_v0  ;;  %v9924_v3 = vld [vmem:[%s11789_s1 + $0x20] sm:$0xff]   ;;  %v9229_v6 = vld [vmem:[%s11789_s1 + $0x18] sm:$0xff]   ;;  %v9230_v7 = vld [vmem:[%s11789_s1 + $0x10] sm:$0xff]  }
  0x8d   :  { %7954 = vmatpush3.bf16.msra.mxu0 %v9225_v0  ;;  %7978 = vmatpush3.bf16.msra.mxu1 %v9225_v0  ;;  %v9231_v8 = vld [vmem:[%s11789_s1 + $0x8] sm:$0xff]   ;;  %v9232_v9 = vld [vmem:[%s11789_s1] sm:$0xff]   ;;  %v9959_v26 = vld [vmem:[%s11790_s24 + $0x18] sm:$0xff]  }
  0x8e   :  { %7955 = vmatprep.subr.bf16.mxu0 %v9226_v1  ;;  %7979 = vmatprep.subr.bf16.mxu1 %v9226_v1  ;;  %v9249_v19 = vld [vmem:[%s11790_s24 + $0x28] sm:$0xff]   ;;  %v9952_v25 = vld [vmem:[%s11790_s24 + $0x20] sm:$0xff]   ;;  %v9966_v27 = vld [vmem:[%s11790_s24 + $0x10] sm:$0xff]  }
  0x8f   :  { %v9972_v28 = vld [vmem:[%s11790_s24 + $0x40] sm:$0xff]   ;;  %v9979_v29 = vld [vmem:[%s11790_s24 + $0x38] sm:$0xff]   ;;  %v9986_v30 = vld [vmem:[%s11790_s24 + $0x30] sm:$0xff]  }
  0x90   :  { %v9993_v31 = vld [vmem:[%s11790_s24 + $0x58] sm:$0xff]   ;;  %v10003_v44 = vld [vmem:[%s11790_s24 + $0x8] sm:$0xff]   ;;  %v10014_v48 = vld [vmem:[%s11790_s24] sm:$0xff]  }
  0x91   :  { %7956 = vmatpush3.bf16.msra.mxu0 %v9226_v1  ;;  %7980 = vmatpush3.bf16.msra.mxu1 %v9226_v1  ;;  %v10025_v53 = vld [vmem:[%s11790_s24 + $0x70] sm:$0xff]   ;;  %v10037_v58 = vld [vmem:[%s11790_s24 + $0x68] sm:$0xff]   ;;  %v10046_v59 = vld [vmem:[%s11790_s24 + $0x60] sm:$0xff]  }
  0x92   :  { %7957 = vmatprep.subr.bf16.mxu0 %v9227_v2  ;;  %7981 = vmatprep.subr.bf16.mxu1 %v9227_v2  ;;  %v10053_v62 = vld [vmem:[%s11790_s24 + $0x88] sm:$0xff]   ;;  %v10067_v5 = vld [vmem:[%s11790_s24 + $0x50] sm:$0xff]  }
  0x95   :  { %7958 = vmatpush3.bf16.msra.mxu0 %v9227_v2  ;;  %7982 = vmatpush3.bf16.msra.mxu1 %v9227_v2 }
  0x96   :  { %7959 = vmatprep.subr.bf16.mxu0 %v9924_v3  ;;  %7983 = vmatprep.subr.bf16.mxu1 %v9924_v3 }
  0x99   :  { %7960 = vmatpush3.bf16.msra.mxu0 %v9924_v3  ;;  %7984 = vmatpush3.bf16.msra.mxu1 %v9924_v3 }
  0x9a   :  { %7961 = vmatprep.subr.bf16.mxu0 %v9229_v6  ;;  %7985 = vmatprep.subr.bf16.mxu1 %v9229_v6 }
  0x9d   :  { %7962 = vmatpush3.bf16.msra.mxu0 %v9229_v6  ;;  %7986 = vmatpush3.bf16.msra.mxu1 %v9229_v6 }
  0x9e   :  { %7963 = vmatprep.subr.bf16.mxu0 %v9230_v7  ;;  %7987 = vmatprep.subr.bf16.mxu1 %v9230_v7 }
  0xa1   :  { %7964 = vmatpush3.bf16.msra.mxu0 %v9230_v7  ;;  %7988 = vmatpush3.bf16.msra.mxu1 %v9230_v7 }
  0xa2   :  { %7965 = vmatprep.subr.bf16.mxu0 %v9231_v8  ;;  %7989 = vmatprep.subr.bf16.mxu1 %v9231_v8 }
  0xa5   :  { %7966 = vmatpush3.bf16.msra.mxu0 %v9231_v8  ;;  %7990 = vmatpush3.bf16.msra.mxu1 %v9231_v8 }
  0xa6   :  { %7967 = vmatprep.subr.bf16.mxu0 %v9232_v9  ;;  %7991 = vmatprep.subr.bf16.mxu1 %v9232_v9 }
  0xa9   :  { %7968 = vmatpush3.bf16.msra.mxu0 %v9232_v9  ;;  %7992 = vmatpush3.bf16.msra.mxu1 %v9232_v9 }
  0xaa   :  { %8001 = vmatprep.subr.bf16.mxu0 %v9225_v0  ;;  %8025 = vmatprep.subr.bf16.mxu1 %v9225_v0 }
  0xac   :  { %7970 = vmatmul.mubr.bf16.vlgmr.msra.gmra.mxu0 %v9235_v10  ;;  %7994 = vmatmul.mubr.bf16.vlgmr.msra.gmra.mxu1 %v9236_v11  ;;  %v10094_v10 = vld [vmem:[%s11790_s24 + $0x78] sm:$0xff]  }
  0xad   :  { %8002 = vmatpush3.bf16.msra.mxu0 %v9225_v0  ;;  %7997 = vmatprep.mubr.bf16.mxu1 %v9237_v12 }
  0xae   :  { %8003 = vmatprep.subr.bf16.mxu0 %v9226_v1  ;;  %7973 = vmatprep.mubr.bf16.mxu0 %v9239_v13 }
  0xaf   :  { %8026 = vmatpush3.bf16.msra.mxu1 %v9225_v0 }
  0xb0   :  { %8027 = vmatprep.subr.bf16.mxu1 %v9226_v1 }
  0xb1   :  { %8004 = vmatpush3.bf16.msra.mxu0 %v9226_v1 }
  0xb2   :  { %8005 = vmatprep.subr.bf16.mxu0 %v9227_v2 }
  0xb3   :  { %8028 = vmatpush3.bf16.msra.mxu1 %v9226_v1 }
  0xb4   :  { %7998 = vmatmul.mubr.bf16.gmra.mxu1 %v9238_v14  ;;  %7974 = vmatmul.mubr.bf16.gmra.mxu0 %v9240_v15  ;;  %v9527_v14 = vld [vmem:[%s11790_s24 + $0x28] sm:$0xff]  }
  0xb5   :  { %8006 = vmatpush3.bf16.msra.mxu0 %v9227_v2  ;;  %8017 = vmatprep.mubr.bf16.mxu0 %v9241_v16 }
  0xb6   :  { %8007 = vmatprep.subr.bf16.mxu0 %v9924_v3  ;;  %8029 = vmatprep.subr.bf16.mxu1 %v9227_v2 }
  0xb7   :  { %8030 = vmatpush3.bf16.msra.mxu1 %v9227_v2  ;;  %8041 = vmatprep.mubr.bf16.mxu1 %v9245_v17 }
  0xb8   :  { %8031 = vmatprep.subr.bf16.mxu1 %v9924_v3 }
  0xb9   :  { %8008 = vmatpush3.bf16.msra.mxu0 %v9924_v3 }
  0xba   :  { %8009 = vmatprep.subr.bf16.mxu0 %v9229_v6 }
  0xbb   :  { %8032 = vmatpush3.bf16.msra.mxu1 %v9924_v3 }
  0xbc   :  { %8033 = vmatprep.subr.bf16.mxu1 %v9229_v6 }
  0xbd   :  { %8010 = vmatpush3.bf16.msra.mxu0 %v9229_v6 }
  0xbe   :  { %8011 = vmatprep.subr.bf16.mxu0 %v9230_v7 }
  0xbf   :  { %8034 = vmatpush3.bf16.msra.mxu1 %v9229_v6  ;;  %v10074_v6 = vld [vmem:[%s11790_s24 + $0x80] sm:$0xff]  }
  0xc0   :  { %8035 = vmatprep.subr.bf16.mxu1 %v9230_v7 }
  0xc1   :  { %8012 = vmatpush3.bf16.msra.mxu0 %v9230_v7 }
  0xc2   :  { %8013 = vmatprep.subr.bf16.mxu0 %v9231_v8 }
  0xc3   :  { %8036 = vmatpush3.bf16.msra.mxu1 %v9230_v7 }
  0xc4   :  { %8037 = vmatprep.subr.bf16.mxu1 %v9231_v8 }
  0xc5   :  { %8014 = vmatpush3.bf16.msra.mxu0 %v9231_v8 }
  0xc6   :  { %8015 = vmatprep.subr.bf16.mxu0 %v9232_v9 }
  0xc7   :  { %8038 = vmatpush3.bf16.msra.mxu1 %v9231_v8 }
  0xc8   :  { %8039 = vmatprep.subr.bf16.mxu1 %v9232_v9 }
  0xc9   :  { %8016 = vmatpush3.bf16.msra.mxu0 %v9232_v9 }
  0xca   :  { %8077 = vmatprep.subr.bf16.mxu0 %v9972_v28 }
  0xcb   :  { %8040 = vmatpush3.bf16.msra.mxu1 %v9232_v9  ;;  %v10088_v9 = vld [vmem:[%s11790_s24 + $0x48] sm:$0xff]  }
  0xcc   :  { %8018 = vmatmul.mubr.bf16.vlgmr.msra.gmra.mxu0 %v9242_v18  ;;  %8049 = vmatprep.subr.bf16.mxu1 %v9249_v19 }
  0xcd   :  { %8021 = vmatprep.mubr.bf16.mxu0 %v9243_v20  ;;  %8078 = vmatpush3.bf16.msra.mxu0 %v9972_v28 }
  0xce   :  { %8042 = vmatmul.mubr.bf16.vlgmr.msra.gmra.mxu1 %v9246_v21  ;;  %8079 = vmatprep.subr.bf16.mxu0 %v9979_v29 }
  0xcf   :  { %8045 = vmatprep.mubr.bf16.mxu1 %v9247_v22  ;;  %8050 = vmatpush3.bf16.msra.mxu1 %v9249_v19 }
  0xd0   :  { %8051 = vmatprep.subr.bf16.mxu1 %v9952_v25 }
  0xd1   :  { %8080 = vmatpush3.bf16.msra.mxu0 %v9979_v29 }
  0xd2   :  { %8081 = vmatprep.subr.bf16.mxu0 %v9986_v30 }
  0xd3   :  { %8052 = vmatpush3.bf16.msra.mxu1 %v9952_v25 }
  0xd4   :  { %8022 = vmatmul.mubr.bf16.gmra.mxu0 %v9244_v23  ;;  %8053 = vmatprep.subr.bf16.mxu1 %v9959_v26 }
  0xd5   :  { %8082 = vmatpush3.bf16.msra.mxu0 %v9986_v30 }
  0xd6   :  { %8046 = vmatmul.mubr.bf16.gmra.mxu1 %v9248_v24  ;;  %8105 = vmatprep.subr.bf16.mxu0 %v9993_v31 }
  0xd7   :  { %8054 = vmatpush3.bf16.msra.mxu1 %v9959_v26 }
  0xd8   :  { %8063 = vmatprep.subr.bf16.mxu1 %v9966_v27 }
 0x16c   :  { %v7971_v32 = vpop.f32.mrf.mxu0  ;;  %v7995_v33 = vpop.f32.mrf.mxu1 }
 0x16e   :  { %v328_v34 = vpop.f32.mrf.mxu0  ;;  %v430_v35 = vpop.f32.mrf.mxu1 }
 0x170   :  { %v7972_v36 = vpop.f32.mrf.mxu0  ;;  %v7996_v37 = vpop.f32.mrf.mxu1 }
 0x171   :  { %v9998_v41 = vpack.c.bf16 %v7996_v37, %v7995_v33  ;;  %v360_v57 = vpack.c.bf16 %v7972_v36, %v7971_v32  ;;  %v9267_v33 = vld [vmem:[#allocation6] sm:$0xff]  }
 0x172   :  { %v331_v38 = vpop.f32.mrf.mxu0  ;;  %v433_v39 = vpop.f32.mrf.mxu1 }
 0x173   :  { %v9996_v40 = vpack.c.bf16 %v433_v39, %v430_v35  ;;  %v359_v54 = vpack.c.bf16 %v331_v38, %v328_v34  ;;  %v9268_v34 = vld [vmem:[#allocation6 + $0x10] sm:$0xff]  }
 0x174   :  { %v7999_v42 = vpop.f32.mrf.mxu1  ;;  %v7975_v43 = vpop.f32.mrf.mxu0 }
 0x175   :  { %8055 = vmatprep.mubr.msk.bf16.mxu1 %vm700_vm0, %v9996_v40 }
 0x176   :  { %v446_v45 = vpop.f32.mrf.mxu1  ;;  %8056 = vmatmul.mubr.msk.bf16.vlgmr.msra.gmra.mxu1 %vm700_vm0, %v9998_v41  ;;  %v344_v47 = vpop.f32.mrf.mxu0 }
 0x177   :  { %8064 = vmatpush3.bf16.msra.mxu1 %v9966_v27 }
 0x178   :  { %v8000_v46 = vpop.f32.mrf.mxu1  ;;  %8065 = vmatprep.subr.bf16.mxu1 %v10003_v44  ;;  %v7976_v52 = vpop.f32.mrf.mxu0 }
 0x179   :  { %v10019_v51 = vpack.c.bf16 %v8000_v46, %v7999_v42  ;;  %v362_v60 = vpack.c.bf16 %v7976_v52, %v7975_v43 }
 0x17a   :  { %v449_v49 = vpop.f32.mrf.mxu1  ;;  %v347_v55 = vpop.f32.mrf.mxu0 }
 0x17b   :  { %v10016_v50 = vpack.c.bf16 %v449_v49, %v446_v45  ;;  %8066 = vmatpush3.bf16.msra.mxu1 %v10003_v44  ;;  %v361_v56 = vpack.c.bf16 %v347_v55, %v344_v47 }
 0x17c   :  { %8067 = vmatprep.subr.bf16.mxu1 %v10014_v48 }
 0x17d   :  { %8059 = vmatprep.mubr.msk.bf16.mxu1 %vm700_vm0, %v10016_v50 }
 0x17e   :  { %8060 = vmatmul.mubr.msk.bf16.gmra.mxu1 %vm700_vm0, %v10019_v51 }
 0x17f   :  { %8069 = vmatprep.mubr.msk.bf16.mxu1 %vm700_vm0, %v359_v54  ;;  %8068 = vmatpush3.bf16.msra.mxu1 %v10014_v48 }
 0x180   :  { %8091 = vmatprep.subr.bf16.mxu1 %v10025_v53 }
 0x186   :  { %8070 = vmatmul.mubr.msk.bf16.vlgmr.msra.gmra.mxu1 %vm700_vm0, %v360_v57 }
 0x187   :  { %8073 = vmatprep.mubr.msk.bf16.mxu1 %vm700_vm0, %v361_v56  ;;  %8092 = vmatpush3.bf16.msra.mxu1 %v10025_v53 }
 0x188   :  { %8093 = vmatprep.subr.bf16.mxu1 %v10037_v58 }
 0x18b   :  { %8094 = vmatpush3.bf16.msra.mxu1 %v10037_v58 }
 0x18c   :  { %v8019_v61 = vpop.f32.mrf.mxu0  ;;  %8095 = vmatprep.subr.bf16.mxu1 %v10046_v59 }
 0x18e   :  { %v532_v63 = vpop.f32.mrf.mxu0  ;;  %8074 = vmatmul.mubr.msk.bf16.gmra.mxu1 %vm700_vm0, %v362_v60  ;;  %v8043_v15 = vpop.f32.mrf.mxu1 }
 0x18f   :  { %8097 = vmatprep.mubr.msk.bf16.mxu1 %vm700_vm0, %v9996_v40  ;;  %8096 = vmatpush3.bf16.msra.mxu1 %v10046_v59 }
 0x190   :  { %v8020_v0 = vpop.f32.mrf.mxu0  ;;  %8119 = vmatprep.subr.bf16.mxu1 %v10053_v62  ;;  %v634_v16 = vpop.f32.mrf.mxu1 }
 0x191   :  { %v10062_v3 = vpack.c.bf16 %v8020_v0, %v8019_v61 }
 0x192   :  { %v535_v1 = vpop.f32.mrf.mxu0  ;;  %v8044_v17 = vpop.f32.mrf.mxu1 }
 0x193   :  { %v10060_v2 = vpack.c.bf16 %v535_v1, %v532_v63 }
 0x194   :  { %v8023_v4 = vpop.f32.mrf.mxu0  ;;  %v637_v18 = vpop.f32.mrf.mxu1 }
 0x195   :  { %8083 = vmatprep.mubr.msk.bf16.mxu0 %vm700_vm0, %v10060_v2  ;;  %v665_v21 = vpack.c.bf16 %v637_v18, %v634_v16 }
 0x196   :  { %v548_v7 = vpop.f32.mrf.mxu0  ;;  %8084 = vmatmul.mubr.msk.bf16.vlgmr.msra.gmra.mxu0 %vm700_vm0, %v10062_v3  ;;  %8098 = vmatmul.mubr.msk.bf16.vlgmr.msra.gmra.mxu1 %vm700_vm0, %v9998_v41  ;;  %v8047_v19 = vpop.f32.mrf.mxu1 }
 0x197   :  { %8101 = vmatprep.mubr.msk.bf16.mxu1 %vm700_vm0, %v10016_v50  ;;  %8106 = vmatpush3.bf16.msra.mxu0 %v9993_v31 }
 0x198   :  { %v8024_v8 = vpop.f32.mrf.mxu0  ;;  %8120 = vmatpush3.bf16.msra.mxu1 %v10053_v62  ;;  %8107 = vmatprep.subr.bf16.mxu0 %v10067_v5  ;;  %v650_v20 = vpop.f32.mrf.mxu1 }
 0x199   :  { %8121 = vmatprep.subr.bf16.mxu1 %v10074_v6  ;;  %v10099_v13 = vpack.c.bf16 %v8024_v8, %v8023_v4 }
 0x19a   :  { %v551_v11 = vpop.f32.mrf.mxu0  ;;  %v8048_v22 = vpop.f32.mrf.mxu1 }
 0x19b   :  { %v10096_v12 = vpack.c.bf16 %v551_v11, %v548_v7  ;;  %8108 = vmatpush3.bf16.msra.mxu0 %v10067_v5 }
 0x19c   :  { %8122 = vmatpush3.bf16.msra.mxu1 %v10074_v6  ;;  %8109 = vmatprep.subr.bf16.mxu0 %v10088_v9  ;;  %v653_v23 = vpop.f32.mrf.mxu1 }
 0x19d   :  { %8087 = vmatprep.mubr.msk.bf16.mxu0 %vm700_vm0, %v10096_v12  ;;  %8123 = vmatprep.subr.bf16.mxu1 %v10094_v10  ;;  %v667_v24 = vpack.c.bf16 %v653_v23, %v650_v20 }
 0x19e   :  { %8088 = vmatmul.mubr.msk.bf16.gmra.mxu0 %vm700_vm0, %v10099_v13  ;;  %8102 = vmatmul.mubr.msk.bf16.gmra.mxu1 %vm700_vm0, %v10019_v51 }
 0x19f   :  { %8111 = vmatprep.mubr.msk.bf16.mxu0 %vm700_vm0, %v359_v54  ;;  %8125 = vmatprep.mubr.msk.bf16.mxu1 %vm700_vm0, %v10060_v2 }
 0x1a0   :  { %8110 = vmatpush3.bf16.msra.mxu0 %v10088_v9  ;;  %8124 = vmatpush3.bf16.msra.mxu1 %v10094_v10 }
 0x1a1   :  { %8133 = vmatprep.subr.bf16.mxu0 %v9527_v14  ;;  %8147 = vmatprep.subr.bf16.mxu1 %v9966_v27 }
 0x1a6   :  { %8112 = vmatmul.mubr.msk.bf16.vlgmr.msra.gmra.mxu0 %vm700_vm0, %v360_v57  ;;  %8126 = vmatmul.mubr.msk.bf16.vlgmr.msra.gmra.mxu1 %vm700_vm0, %v10062_v3 }
 0x1a7   :  { %8115 = vmatprep.mubr.msk.bf16.mxu0 %vm700_vm0, %v361_v56  ;;  %8129 = vmatprep.mubr.msk.bf16.mxu1 %vm700_vm0, %v10096_v12 }
 0x1a8   :  { %8134 = vmatpush3.bf16.msra.mxu0 %v9527_v14  ;;  %8148 = vmatpush3.bf16.msra.mxu1 %v9966_v27 }
 0x1a9   :  { %8135 = vmatprep.subr.bf16.mxu0 %v9952_v25  ;;  %8149 = vmatprep.subr.bf16.mxu1 %v10003_v44 }
 0x1ac   :  { %8136 = vmatpush3.bf16.msra.mxu0 %v9952_v25  ;;  %8150 = vmatpush3.bf16.msra.mxu1 %v10003_v44  ;;  %v666_v25 = vpack.c.bf16 %v8044_v17, %v8043_v15 }
 0x1ad   :  { %8137 = vmatprep.subr.bf16.mxu0 %v9959_v26  ;;  %8151 = vmatprep.subr.bf16.mxu1 %v10014_v48 }
 0x1ae   :  { %8116 = vmatmul.mubr.msk.bf16.gmra.mxu0 %vm700_vm0, %v362_v60  ;;  %8130 = vmatmul.mubr.msk.bf16.gmra.mxu1 %vm700_vm0, %v10099_v13 }
 0x1af   :  { %8139 = vmatprep.mubr.msk.bf16.mxu0 %vm700_vm0, %v10060_v2  ;;  %8153 = vmatprep.mubr.msk.bf16.mxu1 %vm700_vm0, %v9996_v40 }
 0x1b0   :  { %8138 = vmatpush3.bf16.msra.mxu0 %v9959_v26  ;;  %8152 = vmatpush3.bf16.msra.mxu1 %v10014_v48  ;;  %v668_v26 = vpack.c.bf16 %v8048_v22, %v8047_v19 }
 0x1b1   :  { %8161 = vmatprep.subr.bf16.mxu0 %v9972_v28  ;;  %8175 = vmatprep.subr.bf16.mxu1 %v10025_v53 }
 0x1b6   :  { %8140 = vmatmul.mubr.msk.bf16.vlgmr.msra.gmra.mxu0 %vm700_vm0, %v10062_v3  ;;  %8154 = vmatmul.mubr.msk.bf16.vlgmr.msra.gmra.mxu1 %vm700_vm0, %v9998_v41 }
 0x1b7   :  { %8143 = vmatprep.mubr.msk.bf16.mxu0 %vm700_vm0, %v10096_v12  ;;  %8157 = vmatprep.mubr.msk.bf16.mxu1 %vm700_vm0, %v10016_v50 }
 0x1b8   :  { %8162 = vmatpush3.bf16.msra.mxu0 %v9972_v28  ;;  %8176 = vmatpush3.bf16.msra.mxu1 %v10025_v53 }
 0x1b9   :  { %8163 = vmatprep.subr.bf16.mxu0 %v9979_v29  ;;  %8177 = vmatprep.subr.bf16.mxu1 %v10037_v58 }
 0x1bc   :  { %8164 = vmatpush3.bf16.msra.mxu0 %v9979_v29  ;;  %8178 = vmatpush3.bf16.msra.mxu1 %v10037_v58 }
 0x1bd   :  { %8165 = vmatprep.subr.bf16.mxu0 %v9986_v30  ;;  %8179 = vmatprep.subr.bf16.mxu1 %v10046_v59 }
 0x1be   :  { %8144 = vmatmul.mubr.msk.bf16.gmra.mxu0 %vm700_vm0, %v10099_v13  ;;  %8158 = vmatmul.mubr.msk.bf16.gmra.mxu1 %vm700_vm0, %v10019_v51 }
 0x1bf   :  { %8167 = vmatprep.mubr.msk.bf16.mxu0 %vm700_vm0, %v665_v21  ;;  %8181 = vmatprep.mubr.msk.bf16.mxu1 %vm700_vm0, %v10060_v2 }
 0x1c0   :  { %8166 = vmatpush3.bf16.msra.mxu0 %v9986_v30  ;;  %8180 = vmatpush3.bf16.msra.mxu1 %v10046_v59 }
 0x1c1   :  { %8189 = vmatprep.subr.bf16.mxu0 %v9993_v31  ;;  %8203 = vmatprep.subr.bf16.mxu1 %v10053_v62 }
 0x1c6   :  { %8168 = vmatmul.mubr.msk.bf16.vlgmr.msra.gmra.mxu0 %vm700_vm0, %v666_v25  ;;  %8182 = vmatmul.mubr.msk.bf16.vlgmr.msra.gmra.mxu1 %vm700_vm0, %v10062_v3 }
 0x1c7   :  { %8171 = vmatprep.mubr.msk.bf16.mxu0 %vm700_vm0, %v667_v24  ;;  %8185 = vmatprep.mubr.msk.bf16.mxu1 %vm700_vm0, %v10096_v12 }
 0x1c8   :  { %8190 = vmatpush3.bf16.msra.mxu0 %v9993_v31  ;;  %8204 = vmatpush3.bf16.msra.mxu1 %v10053_v62 }
 0x1c9   :  { %8191 = vmatprep.subr.bf16.mxu0 %v10067_v5  ;;  %8205 = vmatprep.subr.bf16.mxu1 %v10074_v6 }
 0x1cc   :  { %8192 = vmatpush3.bf16.msra.mxu0 %v10067_v5  ;;  %8206 = vmatpush3.bf16.msra.mxu1 %v10074_v6 }
 0x1cd   :  { %8193 = vmatprep.subr.bf16.mxu0 %v10088_v9  ;;  %8207 = vmatprep.subr.bf16.mxu1 %v10094_v10 }
 0x1ce   :  { %8172 = vmatmul.mubr.msk.bf16.gmra.mxu0 %vm700_vm0, %v668_v26  ;;  %8186 = vmatmul.mubr.msk.bf16.gmra.mxu1 %vm700_vm0, %v10099_v13 }
 0x1cf   :  { %8195 = vmatprep.mubr.msk.bf16.mxu0 %vm700_vm0, %v9996_v40  ;;  %8209 = vmatprep.mubr.msk.bf16.mxu1 %vm700_vm0, %v665_v21 }
 0x1d0   :  { %8194 = vmatpush3.bf16.msra.mxu0 %v10088_v9  ;;  %8208 = vmatpush3.bf16.msra.mxu1 %v10094_v10 }
 0x1d6   :  { %8196 = vmatmul.mubr.msk.bf16.vlgmr.msra.gmra.mxu0 %vm700_vm0, %v9998_v41  ;;  %8210 = vmatmul.mubr.msk.bf16.vlgmr.msra.gmra.mxu1 %vm700_vm0, %v666_v25 }
 0x1d7   :  { %8199 = vmatprep.mubr.msk.bf16.mxu0 %vm700_vm0, %v10016_v50  ;;  %8213 = vmatprep.mubr.msk.bf16.mxu1 %vm700_vm0, %v667_v24 }
 0x1de   :  { %8200 = vmatmul.mubr.msk.bf16.gmra.mxu0 %vm700_vm0, %v10019_v51  ;;  %8214 = vmatmul.mubr.msk.bf16.gmra.mxu1 %vm700_vm0, %v668_v26 }
 0x1df   :  { %8225 = vmatprep.mubr.msk.bf16.mxu0 %vm1760_vm1, %v9267_v33  ;;  %8237 = vmatprep.mubr.msk.bf16.mxu1 %vm1760_vm1, %v9268_v34 }
 0x236   :  { %v8057_v27 = vpop.f32.mrf.mxu1 }
 0x238   :  { %v747_v28 = vpop.f32.mrf.mxu1 }
 0x23a   :  { %v8058_v29 = vpop.f32.mrf.mxu1 }
 0x23c   :  { %v10201_v30 = vpop.f32.mrf.mxu1 }
 0x23e   :  { %v8061_v31 = vpop.f32.mrf.mxu1 }
 0x240   :  { %v763_v32 = vpop.f32.mrf.mxu1 }
 0x242   :  { %v8062_v35 = vpop.f32.mrf.mxu1 }
 0x244   :  { %v10205_v36 = vpop.f32.mrf.mxu1 }
 0x246   :  { %v8071_v37 = vpop.f32.mrf.mxu1 }
 0x247   :  { %v851_v38 = vadd.f32 %v8071_v37, %v8057_v27 }
 0x248   :  { %v842_v39 = vpop.f32.mrf.mxu1 }
 0x249   :  { %v843_v40 = vadd.f32 %v842_v39, %v747_v28 }
 0x24a   :  { %v8072_v41 = vpop.f32.mrf.mxu1 }
 0x24b   :  { %v854_v42 = vadd.f32 %v8072_v41, %v8058_v29 }
 0x24c   :  { %v10207_v43 = vpop.f32.mrf.mxu1 }
 0x24e   :  { %v8075_v44 = vpop.f32.mrf.mxu1 }
 0x24f   :  { %v867_v45 = vadd.f32 %v8075_v44, %v8061_v31 }
 0x250   :  { %v858_v46 = vpop.f32.mrf.mxu1 }
 0x251   :  { %v859_v47 = vadd.f32 %v858_v46, %v763_v32 }
 0x252   :  { %v8076_v48 = vpop.f32.mrf.mxu1 }
 0x253   :  { %v870_v49 = vadd.f32 %v8076_v48, %v8062_v35 }
 0x254   :  { %v10209_v50 = vpop.f32.mrf.mxu1 }
 0x256   :  { %v8085_v51 = vpop.f32.mrf.mxu0  ;;  %v8099_v52 = vpop.f32.mrf.mxu1 }
 0x257   :  { %v10211_v53 = vadd.f32 %v8085_v51, %v851_v38 }
 0x258   :  { %v944_v54 = vpop.f32.mrf.mxu0  ;;  %v1049_v55 = vpop.f32.mrf.mxu1 }
 0x259   :  { %v10213_v56 = vadd.f32 %v944_v54, %v843_v40 }
 0x25a   :  { %v8086_v57 = vpop.f32.mrf.mxu0  ;;  %v8100_v58 = vpop.f32.mrf.mxu1 }
 0x25b   :  { %11791 = vst [vmem:[#allocation24_spill] sm:$0xff] %v10213_v56  ;;  %v10215_v59 = vadd.f32 %v8086_v57, %v854_v42 }
 0x25c   :  { %v10217_v60 = vpop.f32.mrf.mxu0  ;;  %v10219_v61 = vpop.f32.mrf.mxu1 }
 0x25e   :  { %v8089_v62 = vpop.f32.mrf.mxu0  ;;  %v8103_v63 = vpop.f32.mrf.mxu1 }
 0x25f   :  { %v10221_v0 = vadd.f32 %v8089_v62, %v867_v45 }
 0x260   :  { %v960_v1 = vpop.f32.mrf.mxu0  ;;  %v1065_v2 = vpop.f32.mrf.mxu1 }
 0x261   :  { %11792 = vst [vmem:[#allocation25_spill] sm:$0xff] %v10221_v0  ;;  %v10223_v3 = vadd.f32 %v960_v1, %v859_v47 }
 0x262   :  { %v8090_v4 = vpop.f32.mrf.mxu0  ;;  %v10225_v5 = vpop.f32.mrf.mxu1 }
 0x263   :  { %11793 = vst [vmem:[#allocation26_spill] sm:$0xff] %v10223_v3  ;;  %v10227_v6 = vadd.f32 %v8090_v4, %v870_v49 }
 0x264   :  { %v10229_v7 = vpop.f32.mrf.mxu0  ;;  %v10231_v8 = vpop.f32.mrf.mxu1 }
 0x266   :  { %v8113_v9 = vpop.f32.mrf.mxu0  ;;  %v8127_v10 = vpop.f32.mrf.mxu1 }
 0x267   :  { %v1141_v11 = vadd.f32 %v8113_v9, %v8099_v52 }
 0x268   :  { %v1132_v12 = vpop.f32.mrf.mxu0  ;;  %v1222_v13 = vpop.f32.mrf.mxu1 }
 0x269   :  { %v10233_v14 = vadd.f32 %v8127_v10, %v1141_v11  ;;  %v1133_v15 = vadd.f32 %v1132_v12, %v1049_v55 }
 0x26a   :  { %v8114_v16 = vpop.f32.mrf.mxu0  ;;  %v8128_v17 = vpop.f32.mrf.mxu1 }
 0x26b   :  { %v10237_v19 = vadd.f32 %v1222_v13, %v1133_v15  ;;  %v1144_v20 = vadd.f32 %v8114_v16, %v8100_v58 }
 0x26c   :  { %v1135_v21 = vpop.f32.mrf.mxu0  ;;  %v10239_v22 = vpop.f32.mrf.mxu1 }
 0x26d   :  { %11794 = vst [vmem:[#allocation27_spill] sm:$0xff] %v10237_v19  ;;  %v10243_v24 = vadd.f32 %v8128_v17, %v1144_v20  ;;  %v1136_v3 = vadd.f32 %v1135_v21, %v10219_v61 }
 0x26e   :  { %v8117_v25 = vpop.f32.mrf.mxu0  ;;  %v8131_v26 = vpop.f32.mrf.mxu1 }
 0x26f   :  { %v1157_v28 = vadd.f32 %v8117_v25, %v8103_v63 }
 0x270   :  { %v1148_v29 = vpop.f32.mrf.mxu0  ;;  %v1238_v31 = vpop.f32.mrf.mxu1 }
 0x271   :  { %v10247_v32 = vadd.f32 %v8131_v26, %v1157_v28  ;;  %v1149_v33 = vadd.f32 %v1148_v29, %v1065_v2 }
 0x272   :  { %v8118_v34 = vpop.f32.mrf.mxu0  ;;  %v8132_v35 = vpop.f32.mrf.mxu1 }
 0x273   :  { %11795 = vst [vmem:[#allocation28_spill] sm:$0xff] %v10247_v32  ;;  %v10251_v38 = vadd.f32 %v1238_v31, %v1149_v33  ;;  %v1160_v33 = vadd.f32 %v8118_v34, %v10225_v5 }
 0x274   :  { %v1151_v39 = vpop.f32.mrf.mxu0  ;;  %v10253_v40 = vpop.f32.mrf.mxu1 }
 0x275   :  { %11796 = vst [vmem:[#allocation29_spill] sm:$0xff] %v10251_v38  ;;  %v1152_v32 = vadd.f32 %v1151_v39, %v10231_v8  ;;  %v11801_v8 = vmax.f32 %v10211_v53, %v10233_v14 }
 0x276   :  { %v8141_v42 = vpop.f32.mrf.mxu0  ;;  %v8155_v44 = vpop.f32.mrf.mxu1 }
 0x277   :  { %v1369_v37 = vadd.f32 %v8155_v44, %v8141_v42  ;;  %v10278_v42 = vld [vmem:[#allocation4] ss:$0 sm:$0xff] }
 0x278   :  { %v10257_v45 = vpop.f32.mrf.mxu0  ;;  %v10259_v46 = vpop.f32.mrf.mxu1 }
 0x279   :  { %v1361_v53 = vadd.f32 %v10259_v46, %v10257_v45 }
 0x27a   :  { %v8142_v47 = vpop.f32.mrf.mxu0  ;;  %v8156_v48 = vpop.f32.mrf.mxu1 }
 0x27b   :  { %v1372_v5 = vadd.f32 %v8156_v48, %v8142_v47 }
 0x27c   :  { %v1298_v49 = vpop.f32.mrf.mxu0  ;;  %v1363_v51 = vpop.f32.mrf.mxu1 }
 0x27e   :  { %v8145_v52 = vpop.f32.mrf.mxu0  ;;  %v8159_v54 = vpop.f32.mrf.mxu1 }
 0x27f   :  { %v1385_v14 = vadd.f32 %v8159_v54, %v8145_v52 }
 0x280   :  { %v1311_v55 = vpop.f32.mrf.mxu0  ;;  %v1376_v57 = vpop.f32.mrf.mxu1 }
 0x281   :  { %v1377_v47 = vadd.f32 %v1376_v57, %v1311_v55 }
 0x282   :  { %v8146_v58 = vpop.f32.mrf.mxu0  ;;  %v8160_v62 = vpop.f32.mrf.mxu1 }
 0x284   :  { %v1314_v63 = vpop.f32.mrf.mxu0  ;;  %v1379_v1 = vpop.f32.mrf.mxu1 }
 0x286   :  { %v8169_v2 = vpop.f32.mrf.mxu0  ;;  %v8183_v4 = vpop.f32.mrf.mxu1 }
 0x287   :  { %v1470_v56 = vadd.f32 %v8169_v2, %v1369_v37  ;;  %v1380_v2 = vadd.f32 %v1379_v1, %v1314_v63 }
 0x288   :  { %v10261_v9 = vpop.f32.mrf.mxu0  ;;  %v1510_v10 = vpop.f32.mrf.mxu1 }
 0x289   :  { %11797 = vst [vmem:[#allocation30_spill] sm:$0xff] %v10261_v9  ;;  %v10271_v9 = vadd.f32 %v8132_v35, %v1160_v33 }
 0x28a   :  { %v8170_v11 = vpop.f32.mrf.mxu0  ;;  %v8184_v12 = vpop.f32.mrf.mxu1 }
 0x28b   :  { %v1471_v21 = vadd.f32 %v8170_v11, %v1372_v5 }
 0x28c   :  { %v1440_v13 = vpop.f32.mrf.mxu0  ;;  %v1513_v15 = vpop.f32.mrf.mxu1 }
 0x28e   :  { %v8173_v16 = vpop.f32.mrf.mxu0  ;;  %v8187_v17 = vpop.f32.mrf.mxu1 }
 0x290   :  { %v1453_v20 = vpop.f32.mrf.mxu0  ;;  %v1526_v25 = vpop.f32.mrf.mxu1 }
 0x292   :  { %v10263_v26 = vpop.f32.mrf.mxu0  ;;  %v8188_v28 = vpop.f32.mrf.mxu1 }
 0x293   :  { %11798 = vst [vmem:[#allocation31_spill] sm:$0xff] %v10263_v26 }
 0x294   :  { %v10265_v29 = vpop.f32.mrf.mxu0  ;;  %v10267_v31 = vpop.f32.mrf.mxu1 }
 0x295   :  { %11799 = vst [vmem:[#allocation32_spill] sm:$0xff] %v10265_v29  ;;  %11800 = vst [vmem:[#allocation33_spill] sm:$0xff] %v10267_v31  ;;  %v846_v31 = vadd.f32 %v10207_v43, %v10201_v30  ;;  %v1254_v43 = vadd.f32 %v10239_v22, %v1136_v3  ;;  %v1388_v22 = vadd.f32 %v8160_v62, %v8146_v58 }
 0x296   :  { %v8197_v23 = vpop.f32.mrf.mxu0  ;;  %v8211_v41 = vpop.f32.mrf.mxu1 }
 0x297   :  { %v1584_v27 = vadd.f32 %v8197_v23, %v8183_v4  ;;  %v862_v23 = vadd.f32 %v10209_v50, %v10205_v36  ;;  %v10281_v61 = vadd.f32 %v10217_v60, %v846_v31  ;;  %v1686_v36 = vmax.f32 %v10227_v6, %v10271_v9 }
 0x298   :  { %v1575_v18 = vpop.f32.mrf.mxu0  ;;  %v1640_v19 = vpop.f32.mrf.mxu1  ;;  %v1258_v50 = vadd.f32 %v10253_v40, %v1152_v32  ;;  %v11802_v32 = vmax.f32 %v10215_v59, %v10243_v24 }
 0x299   :  { %v1673_v38 = vadd.f32 %v8211_v41, %v1584_v27  ;;  %v980_v30 = vadd.f32 %v10229_v7, %v862_v23  ;;  %v11809_v23 = vld [vmem:[#allocation30_spill] sm:$0xff] }
 0x29a   :  { %v8198_v0 = vpop.f32.mrf.mxu0  ;;  %v8212_v29 = vpop.f32.mrf.mxu1  ;;  %v11803_v62 = vld [vmem:[#allocation31_spill] sm:$0xff] }
 0x29b   :  { %v1689_v34 = vmax.f32 %v1470_v56, %v1673_v38  ;;  %v1587_v26 = vadd.f32 %v8198_v0, %v8184_v12  ;;  %v1364_v38 = vadd.f32 %v1363_v51, %v1298_v49  ;;  %v1474_v49 = vadd.f32 %v8173_v16, %v1385_v14 }
 0x29c   :  { %v1578_v27 = vpop.f32.mrf.mxu0  ;;  %v1643_v37 = vpop.f32.mrf.mxu1  ;;  %v1576_v51 = vadd.f32 %v1575_v18, %v1510_v10  ;;  %v1475_v63 = vadd.f32 %v11803_v62, %v1388_v22  ;;  %v11804_v24 = vld [vmem:[#allocation33_spill] sm:$0xff]  ;;  %v10334_v62 = vld [vmem:[#allocation7 + $0x38] sm:$0xff]  }
 0x29d   :  { %v1697_v35 = vmax.f32 %v11801_v8, %v1689_v34  ;;  %v1674_v39 = vadd.f32 %v8212_v29, %v1587_v26  ;;  %v1579_v44 = vadd.f32 %v1578_v27, %v1513_v15  ;;  %v1469_v6 = vadd.f32 %v1440_v13, %v1364_v38  ;;  %v11805_v10 = vld [vmem:[#allocation25_spill] sm:$0xff]  ;;  %v11806_v13 = vld [vmem:[#allocation28_spill] sm:$0xff]  ;;  %v11810_v8 = vld [vmem:[#allocation26_spill] sm:$0xff] }
 0x29e   :  { %v8201_v56 = vpop.f32.mrf.mxu0  ;;  %v8215_v0 = vpop.f32.mrf.mxu1  ;;  %v1472_v15 = vadd.f32 %v1453_v20, %v1377_v47  ;;  %v1671_v1 = vadd.f32 %v1640_v19, %v1576_v51  ;;  %v11807_v16 = vmax.f32 %v11805_v10, %v11806_v13  ;;  %v11808_v29 = vld [vmem:[#allocation32_spill] sm:$0xff]  ;;  %v1684_v34 = vmax.f32 %v980_v30, %v1258_v50 }
 0x29f   :  { %v1711_v60 = vadd.f32 %v10278_v42, %v1697_v35  ;;  %v1690_v41 = vmax.f32 %v1471_v21, %v1674_v39  ;;  %v1600_v7 = vadd.f32 %v8201_v56, %v8187_v17  ;;  %v1672_v52 = vadd.f32 %v1643_v37, %v1579_v44  ;;  %v11811_v35 = vld [vmem:[#allocation29_spill] sm:$0xff]  ;;  %v10356_v13 = vld [vmem:[#allocation7 + $0x60] sm:$0xff]  }
 0x2a0   :  { %v1591_v48 = vpop.f32.mrf.mxu0  ;;  %v1656_v3 = vpop.f32.mrf.mxu1  ;;  %v1473_v31 = vadd.f32 %v11808_v29, %v1380_v2  ;;  %v1468_v27 = vadd.f32 %v11809_v23, %v1361_v53  ;;  %v11812_v39 = vmax.f32 %v11810_v8, %v11811_v35  ;;  %v1680_v44 = vmax.f32 %v10281_v61, %v1254_v43  ;;  %v10350_v10 = vld [vmem:[#allocation7 + $0x28] sm:$0xff]  }
 0x2a1   :  { %v1698_v40 = vmax.f32 %v11802_v32, %v1690_v41  ;;  %v1677_v4 = vadd.f32 %v8215_v0, %v1600_v7  ;;  %v1592_v9 = vadd.f32 %v1591_v48, %v1526_v25  ;;  %v1727_v45 = vmul.f32 0.01, %v1711_v60  ;;  %v11813_v48 = vld [vmem:[#allocation24_spill] sm:$0xff] }
 0x2a2   :  { %v8202_v11 = vpop.f32.mrf.mxu0  ;;  %v8216_v12 = vpop.f32.mrf.mxu1  ;;  %vm1719_vm2 = vcmp.ge.f32.partialorder %v1711_v60, 0.0  ;;  %v1688_v21 = vmax.f32 %v1469_v6, %v1672_v52  ;;  %v1687_v41 = vmax.f32 %v1468_v27, %v1671_v1  ;;  %v9269_v52 = vld [vmem:[#allocation6 + $0x8] sm:$0xff]  }
 0x2a3   :  { %v1712_v46 = vadd.f32 %v10278_v42, %v1698_v40  ;;  %v1693_v54 = vmax.f32 %v1474_v49, %v1677_v4  ;;  %v1675_v55 = vadd.f32 %v1656_v3, %v1592_v9  ;;  %v1603_v57 = vadd.f32 %v8202_v11, %v8188_v28  ;;  %v11814_v3 = vld [vmem:[#allocation27_spill] sm:$0xff]  ;;  %v10348_v1 = vld [vmem:[#allocation7 + $0x68] sm:$0xff]  }
 0x2a4   :  { %v1594_v58 = vpop.f32.mrf.mxu0  ;;  %v1659_v26 = vpop.f32.mrf.mxu1  ;;  %v1735_v33 = vsel %vm1719_vm2, %v1711_v60, %v1727_v45  ;;  %v1696_v50 = vmax.f32 %v1680_v44, %v1688_v21  ;;  %v11815_v22 = vmax.f32 %v11813_v48, %v11814_v3  ;;  %v10382_v29 = vld [vmem:[#allocation7 + $0x48] sm:$0xff]   ;;  %v10412_v44 = vld [vmem:[#allocation7 + $0xb0] sm:$0xff]   ;;  %v10441_v48 = vld [vmem:[#allocation7 + $0x98] sm:$0xff]   ;;  %vm4187_vm2 = vcmask 130048  }
 0x2a5   :  { %vm1720_vm3 = vcmp.ge.f32.partialorder %v1712_v46, 0.0  ;;  %v1728_v59 = vmul.f32 0.01, %v1712_v46  ;;  %v1595_v18 = vadd.f32 %v1594_v58, %v11804_v24  ;;  %v1701_v17 = vmax.f32 %v11807_v16, %v1693_v54  ;;  %v9270_v54 = vld [vmem:[#allocation6 + $0x18] sm:$0xff]   ;;  %v10338_v24 = vld [vmem:[#allocation7 + $0x70] sm:$0xff]   ;;  %v10358_v16 = vld [vmem:[#allocation7 + $0x20] sm:$0xff]  }
 0x2a6   :  { %v1691_v20 = vmax.f32 %v1472_v15, %v1675_v55  ;;  %v1678_v25 = vadd.f32 %v8216_v12, %v1603_v57  ;;  %v1695_v2 = vmax.f32 %v11815_v22, %v1687_v41  ;;  %v1710_v43 = vadd.f32 %v10278_v42, %v1696_v50  ;;  %v9271_v55 = vld [vmem:[#allocation6 + $0x20] sm:$0xff]   ;;  %v9273_v57 = vld [vmem:[#allocation6 + $0x30] sm:$0xff]   ;;  %v10332_v58 = vld [vmem:[#allocation7 + $0x78] sm:$0xff]  }
 0x2a7   :  { %v1736_v5 = vsel %vm1720_vm3, %v1712_v46, %v1728_v59  ;;  %v1676_v28 = vadd.f32 %v1659_v26, %v1595_v18  ;;  %v1715_v19 = vadd.f32 %v10278_v42, %v1701_v17  ;;  %v9274_v59 = vld [vmem:[#allocation6 + $0x38] sm:$0xff]   ;;  %v10340_v18 = vld [vmem:[#allocation7 + $0x30] sm:$0xff]   ;;  %v10433_v50 = vld [vmem:[#allocation7 + $0xa0] sm:$0xff]   ;;  %vm4342_vm3 = vcmask 1043456  }
 0x2a8   :  { %v10305_v37 = vpack.c.bf16 %v1736_v5, %v1735_v33  ;;  %v1699_v56 = vmax.f32 %v11812_v39, %v1691_v20  ;;  %v1694_v0 = vmax.f32 %v1475_v63, %v1678_v25  ;;  %v1709_v9 = vadd.f32 %v10278_v42, %v1695_v2  ;;  %v9272_v63 = vld [vmem:[#allocation6 + $0x28] sm:$0xff]   ;;  %v10364_v17 = vld [vmem:[#allocation7 + $0x58] sm:$0xff]   ;;  %v10372_v25 = vld [vmem:[#allocation7 + $0x50] sm:$0xff]  }
 0x2a9   :  { %v1692_v38 = vmax.f32 %v1473_v31, %v1676_v28  ;;  %v1731_v53 = vmul.f32 0.01, %v1715_v19  ;;  %vm1723_vm4 = vcmp.ge.f32.partialorder %v1715_v19, 0.0  ;;  %v1726_v12 = vmul.f32 0.01, %v1710_v43  ;;  %v10366_v20 = vld [vmem:[#allocation7 + $0x18] sm:$0xff]  }
 0x2aa   :  { %v1713_v60 = vadd.f32 %v10278_v42, %v1699_v56  ;;  %v1702_v14 = vmax.f32 %v1686_v36, %v1694_v0  ;;  %vm1718_vm8 = vcmp.ge.f32.partialorder %v1710_v43, 0.0  ;;  %v1725_v15 = vmul.f32 0.01, %v1709_v9  ;;  %v10374_v26 = vld [vmem:[#allocation7 + $0x10] sm:$0xff]   ;;  %v10384_v31 = vld [vmem:[#allocation7 + $0x8] sm:$0xff]   ;;  %v10390_v33 = vld [vmem:[#allocation7 + $0x40] sm:$0xff]  }
 0x2ab   :  { %v1700_v30 = vmax.f32 %v1684_v34, %v1692_v38  ;;  %v1739_v36 = vsel %vm1723_vm4, %v1715_v19, %v1731_v53  ;;  %vm1717_vm9 = vcmp.ge.f32.partialorder %v1709_v9, 0.0  ;;  %v1734_v45 = vsel %vm1718_vm8, %v1710_v43, %v1726_v12  ;;  %v10392_v5 = vld [vmem:[#allocation7] sm:$0xff]   ;;  %v10398_v28 = vld [vmem:[#allocation7 + $0xb8] sm:$0xff]   ;;  %v10460_v43 = vld [vmem:[#allocation7 + $0x88] sm:$0xff]  }
 0x2ac   :  { %v1716_v47 = vadd.f32 %v10278_v42, %v1702_v14  ;;  %v1729_v6 = vmul.f32 0.01, %v1713_v60  ;;  %vm1721_vm5 = vcmp.ge.f32.partialorder %v1713_v60, 0.0  ;;  %v1733_v46 = vsel %vm1717_vm9, %v1709_v9, %v1725_v15  ;;  %v10400_v34 = vld [vmem:[#allocation7 + $0x138] sm:$0xff]   ;;  %v10424_v14 = vld [vmem:[#allocation7 + $0xa8] sm:$0xff]   ;;  %v10435_v53 = vld [vmem:[#allocation7 + $0x120] sm:$0xff]  }
 0x2ad   :  { %v1714_v7 = vadd.f32 %v10278_v42, %v1700_v30  ;;  %v1741_v42 = vpack.c.bf16 %v1734_v45, %v1733_v46  ;;  %v10426_v30 = vld [vmem:[#allocation7 + $0x128] sm:$0xff]   ;;  %v10443_v3 = vld [vmem:[#allocation7 + $0x118] sm:$0xff]   ;;  %v10488_v12 = vld [vmem:[#allocation7 + $0x170] sm:$0xff]   ;;  %vm4338_vm4 = vcmask 64512  }
 0x2ae   :  { %vm1724_vm6 = vcmp.ge.f32.partialorder %v1716_v47, 0.0  ;;  %v1732_v32 = vmul.f32 0.01, %v1716_v47  ;;  %v1737_v49 = vsel %vm1721_vm5, %v1713_v60, %v1729_v6  ;;  %v10416_v60 = vld [vmem:[#allocation7 + $0x130] sm:$0xff]   ;;  %v10496_v15 = vld [vmem:[#allocation7 + $0xe8] sm:$0xff]   ;;  %v10505_v46 = vld [vmem:[#allocation7 + $0xe0] sm:$0xff]  }
 0x2af   :  { %vm1722_vm7 = vcmp.ge.f32.partialorder %v1714_v7, 0.0  ;;  %v1730_v61 = vmul.f32 0.01, %v1714_v7  ;;  %v10500_v45 = vld [vmem:[#allocation7 + $0x168] sm:$0xff]  }
 0x2b0   :  { %v1740_v40 = vsel %vm1724_vm6, %v1716_v47, %v1732_v32  ;;  %v10451_v32 = vld [vmem:[#allocation7 + $0x90] sm:$0xff]  }
 0x2b1   :  { %v1744_v51 = vpack.c.bf16 %v1740_v40, %v1739_v36  ;;  %v1738_v4 = vsel %vm1722_vm7, %v1714_v7, %v1730_v61  ;;  %v10453_v61 = vld [vmem:[#allocation7 + $0x110] sm:$0xff]   ;;  %v10462_v36 = vld [vmem:[#allocation7 + $0x108] sm:$0xff]   ;;  %v10468_v40 = vld [vmem:[#allocation7 + $0x80] sm:$0xff]  }
 0x2b2   :  { %v1743_v11 = vpack.c.bf16 %v1738_v4, %v1737_v49  ;;  %v10470_v49 = vld [vmem:[#allocation7 + $0x100] sm:$0xff]   ;;  %v10478_v4 = vld [vmem:[#allocation7 + $0x178] sm:$0xff]  }
 0x2b3   :  { %8217 = vmatprep.subr.bf16.mxu0 %v1744_v51  ;;  %8229 = vmatprep.subr.bf16.mxu1 %v1744_v51 }
 0x2b4   :  { %8218 = vmatpush3.bf16.msra.mxu0 %v1744_v51  ;;  %8230 = vmatpush3.bf16.msra.mxu1 %v1744_v51 }
 0x2b5   :  { %8219 = vmatprep.subr.bf16.mxu0 %v1743_v11  ;;  %8231 = vmatprep.subr.bf16.mxu1 %v1743_v11 }
 0x2b8   :  { %8220 = vmatpush3.bf16.msra.mxu0 %v1743_v11  ;;  %8232 = vmatpush3.bf16.msra.mxu1 %v1743_v11 }
 0x2b9   :  { %8221 = vmatprep.subr.bf16.mxu0 %v10305_v37  ;;  %8233 = vmatprep.subr.bf16.mxu1 %v10305_v37 }
 0x2bc   :  { %8222 = vmatpush3.bf16.msra.mxu0 %v10305_v37  ;;  %8234 = vmatpush3.bf16.msra.mxu1 %v10305_v37 }
 0x2bd   :  { %8223 = vmatprep.subr.bf16.mxu0 %v1741_v42  ;;  %8235 = vmatprep.subr.bf16.mxu1 %v1741_v42 }
 0x2c0   :  { %8224 = vmatpush3.bf16.msra.mxu0 %v1741_v42  ;;  %8236 = vmatpush3.bf16.msra.mxu1 %v1741_v42 }
 0x2c1   :  { %8241 = vmatprep.subr.bf16.mxu0 %v1744_v51  ;;  %8253 = vmatprep.subr.bf16.mxu1 %v1744_v51 }
 0x2c3   :  { %8226 = vmatmul.mubr.msk.bf16.vlgmr.msra.gmra.mxu0 %vm1760_vm1, %v9269_v52  ;;  %8238 = vmatmul.mubr.msk.bf16.vlgmr.msra.gmra.mxu1 %vm1760_vm1, %v9270_v54  ;;  %v10513_v52 = vld [vmem:[#allocation7 + $0xd8] sm:$0xff]  }
 0x2c4   :  { %8242 = vmatpush3.bf16.msra.mxu0 %v1744_v51  ;;  %8254 = vmatpush3.bf16.msra.mxu1 %v1744_v51  ;;  %v10476_v51 = vld [vmem:[#allocation7 + $0xf8] sm:$0xff]  }
 0x2c5   :  { %8243 = vmatprep.subr.bf16.mxu0 %v1743_v11  ;;  %8255 = vmatprep.subr.bf16.mxu1 %v1743_v11  ;;  %v10516_v54 = vld [vmem:[#allocation7 + $0x158] sm:$0xff]  }
 0x2c6   :  { %8249 = vmatprep.mubr.msk.bf16.mxu0 %vm1760_vm1, %v9271_v55  ;;  %8261 = vmatprep.mubr.msk.bf16.mxu1 %vm1760_vm1, %v9273_v57  ;;  %v10521_v55 = vld [vmem:[#allocation7 + $0xd0] sm:$0xff]  }
 0x2c7   :  { %v10524_v57 = vld [vmem:[#allocation7 + $0x150] sm:$0xff]  }
 0x2c8   :  { %8244 = vmatpush3.bf16.msra.mxu0 %v1743_v11  ;;  %8256 = vmatpush3.bf16.msra.mxu1 %v1743_v11  ;;  %v10486_v11 = vld [vmem:[#allocation7 + $0xf0] sm:$0xff]  }
 0x2c9   :  { %8245 = vmatprep.subr.bf16.mxu0 %v10305_v37  ;;  %8257 = vmatprep.subr.bf16.mxu1 %v10305_v37 }
 0x2cc   :  { %8246 = vmatpush3.bf16.msra.mxu0 %v10305_v37  ;;  %8258 = vmatpush3.bf16.msra.mxu1 %v10305_v37 }
 0x2cd   :  { %8247 = vmatprep.subr.bf16.mxu0 %v1741_v42  ;;  %8259 = vmatprep.subr.bf16.mxu1 %v1741_v42 }
 0x2d0   :  { %8248 = vmatpush3.bf16.msra.mxu0 %v1741_v42  ;;  %8260 = vmatpush3.bf16.msra.mxu1 %v1741_v42  ;;  %v10508_v42 = vld [vmem:[#allocation7 + $0x160] sm:$0xff]  }
 0x2d1   :  { %8265 = vmatprep.subr.bf16.mxu0 %v10332_v58  ;;  %8285 = vmatprep.subr.bf16.mxu1 %v10334_v62 }
 0x2d3   :  { %8250 = vmatmul.mubr.msk.bf16.vlgmr.msra.gmra.mxu0 %vm1760_vm1, %v9272_v63  ;;  %8262 = vmatmul.mubr.msk.bf16.vlgmr.msra.gmra.mxu1 %vm1760_vm1, %v9274_v59  ;;  %v10529_v63 = vld [vmem:[#allocation7 + $0xc8] sm:$0xff]  }
 0x2d4   :  { %8266 = vmatpush3.bf16.msra.mxu0 %v10332_v58  ;;  %8286 = vmatpush3.bf16.msra.mxu1 %v10334_v62  ;;  %v10532_v59 = vld [vmem:[#allocation7 + $0x148] sm:$0xff]  }
 0x2d5   :  { %8267 = vmatprep.subr.bf16.mxu0 %v10338_v24  ;;  %8287 = vmatprep.subr.bf16.mxu1 %v10340_v18 }
 0x2d8   :  { %8268 = vmatpush3.bf16.msra.mxu0 %v10338_v24  ;;  %8288 = vmatpush3.bf16.msra.mxu1 %v10340_v18 }
 0x2d9   :  { %8269 = vmatprep.subr.bf16.mxu0 %v10348_v1  ;;  %8289 = vmatprep.subr.bf16.mxu1 %v10350_v10 }
 0x2dc   :  { %8270 = vmatpush3.bf16.msra.mxu0 %v10348_v1  ;;  %8290 = vmatpush3.bf16.msra.mxu1 %v10350_v10 }
 0x2dd   :  { %8271 = vmatprep.subr.bf16.mxu0 %v10356_v13  ;;  %8291 = vmatprep.subr.bf16.mxu1 %v10358_v16 }
 0x2e0   :  { %8272 = vmatpush3.bf16.msra.mxu0 %v10356_v13  ;;  %8292 = vmatpush3.bf16.msra.mxu1 %v10358_v16 }
 0x2e1   :  { %8273 = vmatprep.subr.bf16.mxu0 %v10364_v17  ;;  %8293 = vmatprep.subr.bf16.mxu1 %v10366_v20 }
 0x2e4   :  { %8274 = vmatpush3.bf16.msra.mxu0 %v10364_v17  ;;  %8294 = vmatpush3.bf16.msra.mxu1 %v10366_v20 }
 0x2e5   :  { %8275 = vmatprep.subr.bf16.mxu0 %v10372_v25  ;;  %8295 = vmatprep.subr.bf16.mxu1 %v10374_v26 }
 0x2e8   :  { %8276 = vmatpush3.bf16.msra.mxu0 %v10372_v25  ;;  %8296 = vmatpush3.bf16.msra.mxu1 %v10374_v26 }
 0x2e9   :  { %8277 = vmatprep.subr.bf16.mxu0 %v10382_v29  ;;  %8297 = vmatprep.subr.bf16.mxu1 %v10384_v31 }
 0x2ec   :  { %8278 = vmatpush3.bf16.msra.mxu0 %v10382_v29  ;;  %8298 = vmatpush3.bf16.msra.mxu1 %v10384_v31 }
 0x2ed   :  { %8279 = vmatprep.subr.bf16.mxu0 %v10390_v33  ;;  %8299 = vmatprep.subr.bf16.mxu1 %v10392_v5 }
 0x2f0   :  { %8280 = vmatpush3.bf16.msra.mxu0 %v10390_v33  ;;  %8300 = vmatpush3.bf16.msra.mxu1 %v10392_v5 }
 0x2f1   :  { %8305 = vmatprep.subr.bf16.mxu0 %v10398_v28  ;;  %8325 = vmatprep.subr.bf16.mxu1 %v10400_v34 }
 0x383   :  { %v8227_v23 = vpop.f32.mrf.mxu0  ;;  %v8239_v27 = vpop.f32.mrf.mxu1 }
 0x385   :  { %v1801_v37 = vpop.f32.mrf.mxu0  ;;  %v1873_v21 = vpop.f32.mrf.mxu1 }
 0x387   :  { %v8228_v19 = vpop.f32.mrf.mxu0  ;;  %v8240_v8 = vpop.f32.mrf.mxu1 }
 0x388   :  { %v10408_v38 = vpack.c.bf16 %v8228_v19, %v8227_v23  ;;  %v10410_v41 = vpack.c.bf16 %v8240_v8, %v8239_v27  ;;  %v10537_v23 = vld [vmem:[#allocation7 + $0xc0] sm:$0xff]  }
 0x389   :  { %v1804_v35 = vpop.f32.mrf.mxu0  ;;  %v1876_v39 = vpop.f32.mrf.mxu1  ;;  %v10540_v27 = vld [vmem:[#allocation7 + $0x140] sm:$0xff]  }
 0x38a   :  { %v10404_v56 = vpack.c.bf16 %v1804_v35, %v1801_v37  ;;  %v10406_v0 = vpack.c.bf16 %v1876_v39, %v1873_v21 }
 0x38c   :  { %8281 = vmatprep.mubr.bf16.mxu0 %v10406_v0  ;;  %8301 = vmatprep.mubr.bf16.mxu1 %v10404_v56 }
 0x38d   :  { %8282 = vmatmul.mubr.bf16.vlgmr.msra.gmra.mxu0 %v10410_v41  ;;  %8302 = vmatmul.mubr.bf16.vlgmr.msra.gmra.mxu1 %v10408_v38 }
 0x38e   :  { %8306 = vmatpush3.bf16.msra.mxu0 %v10398_v28  ;;  %8326 = vmatpush3.bf16.msra.mxu1 %v10400_v34 }
 0x38f   :  { %8341 = vmatprep.mubr.bf16.mxu1 %v10406_v0  ;;  %8307 = vmatprep.subr.bf16.mxu0 %v10412_v44 }
 0x390   :  { %8327 = vmatprep.subr.bf16.mxu1 %v10416_v60 }
 0x392   :  { %8308 = vmatpush3.bf16.msra.mxu0 %v10412_v44  ;;  %8328 = vmatpush3.bf16.msra.mxu1 %v10416_v60 }
 0x393   :  { %8309 = vmatprep.subr.bf16.mxu0 %v10424_v14  ;;  %8329 = vmatprep.subr.bf16.mxu1 %v10426_v30  ;;  %v8251_v47 = vpop.f32.mrf.mxu0 }
 0x395   :  { %v1945_v7 = vpop.f32.mrf.mxu0 }
 0x396   :  { %8310 = vmatpush3.bf16.msra.mxu0 %v10424_v14  ;;  %8330 = vmatpush3.bf16.msra.mxu1 %v10426_v30 }
 0x397   :  { %8311 = vmatprep.subr.bf16.mxu0 %v10433_v50  ;;  %8331 = vmatprep.subr.bf16.mxu1 %v10435_v53  ;;  %v8252_v22 = vpop.f32.mrf.mxu0 }
 0x398   :  { %v10482_v9 = vpack.c.bf16 %v8252_v22, %v8251_v47 }
 0x399   :  { %v1948_v2 = vpop.f32.mrf.mxu0 }
 0x39a   :  { %8312 = vmatpush3.bf16.msra.mxu0 %v10433_v50  ;;  %8332 = vmatpush3.bf16.msra.mxu1 %v10435_v53  ;;  %v10447_v6 = vpack.c.bf16 %v1948_v2, %v1945_v7 }
 0x39b   :  { %8313 = vmatprep.subr.bf16.mxu0 %v10441_v48  ;;  %8333 = vmatprep.subr.bf16.mxu1 %v10443_v3 }
 0x39c   :  { %8321 = vmatprep.mubr.bf16.mxu0 %v10447_v6 }
 0x39e   :  { %8314 = vmatpush3.bf16.msra.mxu0 %v10441_v48  ;;  %8334 = vmatpush3.bf16.msra.mxu1 %v10443_v3 }
 0x39f   :  { %8315 = vmatprep.subr.bf16.mxu0 %v10451_v32  ;;  %8335 = vmatprep.subr.bf16.mxu1 %v10453_v61 }
 0x3a2   :  { %8316 = vmatpush3.bf16.msra.mxu0 %v10451_v32  ;;  %8336 = vmatpush3.bf16.msra.mxu1 %v10453_v61 }
 0x3a3   :  { %8317 = vmatprep.subr.bf16.mxu0 %v10460_v43  ;;  %8337 = vmatprep.subr.bf16.mxu1 %v10462_v36 }
 0x3a6   :  { %8318 = vmatpush3.bf16.msra.mxu0 %v10460_v43  ;;  %8338 = vmatpush3.bf16.msra.mxu1 %v10462_v36 }
 0x3a7   :  { %8319 = vmatprep.subr.bf16.mxu0 %v10468_v40  ;;  %8339 = vmatprep.subr.bf16.mxu1 %v10470_v49 }
 0x3aa   :  { %8320 = vmatpush3.bf16.msra.mxu0 %v10468_v40  ;;  %8340 = vmatpush3.bf16.msra.mxu1 %v10470_v49 }
 0x3ab   :  { %8345 = vmatprep.subr.bf16.mxu0 %v10476_v51  ;;  %8365 = vmatprep.subr.bf16.mxu1 %v10478_v4 }
 0x3ad   :  { %8322 = vmatmul.mubr.bf16.vlgmr.msra.gmra.mxu0 %v10482_v9  ;;  %8342 = vmatmul.mubr.bf16.vlgmr.msra.gmra.mxu1 %v10410_v41 }
 0x3ae   :  { %8346 = vmatpush3.bf16.msra.mxu0 %v10476_v51  ;;  %8361 = vmatprep.mubr.bf16.mxu0 %v10404_v56 }
 0x3af   :  { %8366 = vmatpush3.bf16.msra.mxu1 %v10478_v4  ;;  %8381 = vmatprep.mubr.bf16.mxu1 %v10447_v6 }
 0x3b0   :  { %8347 = vmatprep.subr.bf16.mxu0 %v10486_v11  ;;  %8367 = vmatprep.subr.bf16.mxu1 %v10488_v12 }
 0x3b2   :  { %8348 = vmatpush3.bf16.msra.mxu0 %v10486_v11 }
 0x3b3   :  { %8368 = vmatpush3.bf16.msra.mxu1 %v10488_v12  ;;  %8349 = vmatprep.subr.bf16.mxu0 %v10496_v15 }
 0x3b4   :  { %8369 = vmatprep.subr.bf16.mxu1 %v10500_v45 }
 0x3b6   :  { %8350 = vmatpush3.bf16.msra.mxu0 %v10496_v15 }
 0x3b7   :  { %8370 = vmatpush3.bf16.msra.mxu1 %v10500_v45  ;;  %8351 = vmatprep.subr.bf16.mxu0 %v10505_v46 }
 0x3b8   :  { %8371 = vmatprep.subr.bf16.mxu1 %v10508_v42 }
 0x3ba   :  { %8352 = vmatpush3.bf16.msra.mxu0 %v10505_v46 }
 0x3bb   :  { %8372 = vmatpush3.bf16.msra.mxu1 %v10508_v42  ;;  %8353 = vmatprep.subr.bf16.mxu0 %v10513_v52 }
 0x3bc   :  { %8373 = vmatprep.subr.bf16.mxu1 %v10516_v54 }
 0x3be   :  { %8354 = vmatpush3.bf16.msra.mxu0 %v10513_v52 }
 0x3bf   :  { %8374 = vmatpush3.bf16.msra.mxu1 %v10516_v54  ;;  %8355 = vmatprep.subr.bf16.mxu0 %v10521_v55 }
 0x3c0   :  { %8375 = vmatprep.subr.bf16.mxu1 %v10524_v57 }
 0x3c2   :  { %8356 = vmatpush3.bf16.msra.mxu0 %v10521_v55 }
 0x3c3   :  { %8376 = vmatpush3.bf16.msra.mxu1 %v10524_v57  ;;  %8357 = vmatprep.subr.bf16.mxu0 %v10529_v63 }
 0x3c4   :  { %8377 = vmatprep.subr.bf16.mxu1 %v10532_v59 }
 0x3c6   :  { %8358 = vmatpush3.bf16.msra.mxu0 %v10529_v63 }
 0x3c7   :  { %8378 = vmatpush3.bf16.msra.mxu1 %v10532_v59  ;;  %8359 = vmatprep.subr.bf16.mxu0 %v10537_v23 }
 0x3c8   :  { %8379 = vmatprep.subr.bf16.mxu1 %v10540_v27 }
 0x3ca   :  { %8360 = vmatpush3.bf16.msra.mxu0 %v10537_v23 }
 0x3cb   :  { %8380 = vmatpush3.bf16.msra.mxu1 %v10540_v27  ;;  %8385 = vmatprep.subr.bf16.mxu0 %v10332_v58 }
 0x3cc   :  { %8405 = vmatprep.subr.bf16.mxu1 %v10334_v62 }
 0x3cd   :  { %8362 = vmatmul.mubr.bf16.vlgmr.msra.gmra.mxu0 %v10408_v38 }
 0x3ce   :  { %8382 = vmatmul.mubr.bf16.vlgmr.msra.gmra.mxu1 %v10482_v9  ;;  %8386 = vmatpush3.bf16.msra.mxu0 %v10332_v58  ;;  %v8263_v58 = vpop.f32.mrf.mxu1 }
 0x3cf   :  { %8401 = vmatprep.mubr.bf16.mxu0 %v10447_v6  ;;  %8406 = vmatpush3.bf16.msra.mxu1 %v10334_v62 }
 0x3d0   :  { %8421 = vmatprep.mubr.bf16.mxu1 %v10406_v0  ;;  %8387 = vmatprep.subr.bf16.mxu0 %v10338_v24  ;;  %v2017_v62 = vpop.f32.mrf.mxu1 }
 0x3d1   :  { %8407 = vmatprep.subr.bf16.mxu1 %v10340_v18 }
 0x3d2   :  { %8388 = vmatpush3.bf16.msra.mxu0 %v10338_v24  ;;  %v8264_v24 = vpop.f32.mrf.mxu1 }
 0x3d3   :  { %8408 = vmatpush3.bf16.msra.mxu1 %v10340_v18  ;;  %8389 = vmatprep.subr.bf16.mxu0 %v10348_v1 }
 0x3d4   :  { %8409 = vmatprep.subr.bf16.mxu1 %v10350_v10  ;;  %v2020_v18 = vpop.f32.mrf.mxu1 }
 0x3d6   :  { %8390 = vmatpush3.bf16.msra.mxu0 %v10348_v1  ;;  %v2032_v1 = vpack.c.bf16 %v2020_v18, %v2017_v62 }
 0x3d7   :  { %8410 = vmatpush3.bf16.msra.mxu1 %v10350_v10  ;;  %8391 = vmatprep.subr.bf16.mxu0 %v10356_v13  ;;  %v2033_v10 = vpack.c.bf16 %v8264_v24, %v8263_v58 }
 0x3d8   :  { %8411 = vmatprep.subr.bf16.mxu1 %v10358_v16 }
 0x3da   :  { %8392 = vmatpush3.bf16.msra.mxu0 %v10356_v13  ;;  %v9752_v13 = vmov 0.0  }
 0x3db   :  { %8412 = vmatpush3.bf16.msra.mxu1 %v10358_v16  ;;  %8393 = vmatprep.subr.bf16.mxu0 %v10364_v17 }
 0x3dc   :  { %8413 = vmatprep.subr.bf16.mxu1 %v10366_v20 }
 0x3de   :  { %8394 = vmatpush3.bf16.msra.mxu0 %v10364_v17 }
 0x3df   :  { %8414 = vmatpush3.bf16.msra.mxu1 %v10366_v20  ;;  %8395 = vmatprep.subr.bf16.mxu0 %v10372_v25 }
 0x3e0   :  { %8415 = vmatprep.subr.bf16.mxu1 %v10374_v26 }
 0x3e2   :  { %8396 = vmatpush3.bf16.msra.mxu0 %v10372_v25 }
 0x3e3   :  { %8416 = vmatpush3.bf16.msra.mxu1 %v10374_v26  ;;  %8397 = vmatprep.subr.bf16.mxu0 %v10382_v29 }
 0x3e4   :  { %8417 = vmatprep.subr.bf16.mxu1 %v10384_v31 }
 0x3e6   :  { %8398 = vmatpush3.bf16.msra.mxu0 %v10382_v29 }
 0x3e7   :  { %8418 = vmatpush3.bf16.msra.mxu1 %v10384_v31  ;;  %8399 = vmatprep.subr.bf16.mxu0 %v10390_v33 }
 0x3e8   :  { %8419 = vmatprep.subr.bf16.mxu1 %v10392_v5 }
 0x3ea   :  { %8400 = vmatpush3.bf16.msra.mxu0 %v10390_v33 }
 0x3eb   :  { %8420 = vmatpush3.bf16.msra.mxu1 %v10392_v5  ;;  %8425 = vmatprep.subr.bf16.mxu0 %v10398_v28 }
 0x3ec   :  { %8445 = vmatprep.subr.bf16.mxu1 %v10400_v34 }
 0x3ed   :  { %8402 = vmatmul.mubr.bf16.vlgmr.msra.gmra.mxu0 %v10482_v9 }
 0x3ee   :  { %8422 = vmatmul.mubr.bf16.vlgmr.msra.gmra.mxu1 %v10410_v41  ;;  %8426 = vmatpush3.bf16.msra.mxu0 %v10398_v28 }
 0x3ef   :  { %8446 = vmatpush3.bf16.msra.mxu1 %v10400_v34  ;;  %8461 = vmatprep.mubr.bf16.mxu1 %v10447_v6 }
 0x3f0   :  { %8427 = vmatprep.subr.bf16.mxu0 %v10412_v44  ;;  %8447 = vmatprep.subr.bf16.mxu1 %v10416_v60 }
 0x3f1   :  { %8441 = vmatprep.mubr.bf16.mxu0 %v2032_v1 }
 0x3f2   :  { %8428 = vmatpush3.bf16.msra.mxu0 %v10412_v44 }
 0x3f3   :  { %8448 = vmatpush3.bf16.msra.mxu1 %v10416_v60  ;;  %8429 = vmatprep.subr.bf16.mxu0 %v10424_v14 }
 0x3f4   :  { %8449 = vmatprep.subr.bf16.mxu1 %v10426_v30 }
 0x3f6   :  { %8430 = vmatpush3.bf16.msra.mxu0 %v10424_v14 }
 0x3f7   :  { %8450 = vmatpush3.bf16.msra.mxu1 %v10426_v30  ;;  %8431 = vmatprep.subr.bf16.mxu0 %v10433_v50 }
 0x3f8   :  { %8451 = vmatprep.subr.bf16.mxu1 %v10435_v53 }
 0x3fa   :  { %8432 = vmatpush3.bf16.msra.mxu0 %v10433_v50 }
 0x3fb   :  { %8452 = vmatpush3.bf16.msra.mxu1 %v10435_v53  ;;  %8433 = vmatprep.subr.bf16.mxu0 %v10441_v48 }
 0x3fc   :  { %8453 = vmatprep.subr.bf16.mxu1 %v10443_v3 }
 0x3fe   :  { %8434 = vmatpush3.bf16.msra.mxu0 %v10441_v48 }
 0x3ff   :  { %8454 = vmatpush3.bf16.msra.mxu1 %v10443_v3  ;;  %8435 = vmatprep.subr.bf16.mxu0 %v10451_v32 }
 0x400   :  { %8455 = vmatprep.subr.bf16.mxu1 %v10453_v61 }
 0x402   :  { %8436 = vmatpush3.bf16.msra.mxu0 %v10451_v32 }
 0x403   :  { %8456 = vmatpush3.bf16.msra.mxu1 %v10453_v61  ;;  %8437 = vmatprep.subr.bf16.mxu0 %v10460_v43 }
 0x404   :  { %8457 = vmatprep.subr.bf16.mxu1 %v10462_v36 }
 0x406   :  { %8438 = vmatpush3.bf16.msra.mxu0 %v10460_v43 }
 0x407   :  { %8458 = vmatpush3.bf16.msra.mxu1 %v10462_v36  ;;  %8439 = vmatprep.subr.bf16.mxu0 %v10468_v40 }
 0x408   :  { %8459 = vmatprep.subr.bf16.mxu1 %v10470_v49 }
 0x40a   :  { %8440 = vmatpush3.bf16.msra.mxu0 %v10468_v40 }
 0x40b   :  { %8460 = vmatpush3.bf16.msra.mxu1 %v10470_v49  ;;  %8465 = vmatprep.subr.bf16.mxu0 %v10476_v51 }
 0x40c   :  { %8485 = vmatprep.subr.bf16.mxu1 %v10478_v4 }
 0x40d   :  { %8442 = vmatmul.mubr.bf16.vlgmr.msra.gmra.mxu0 %v2033_v10 }
 0x40e   :  { %8462 = vmatmul.mubr.bf16.vlgmr.msra.gmra.mxu1 %v10482_v9  ;;  %8466 = vmatpush3.bf16.msra.mxu0 %v10476_v51 }
 0x40f   :  { %8481 = vmatprep.mubr.bf16.mxu0 %v10406_v0  ;;  %8486 = vmatpush3.bf16.msra.mxu1 %v10478_v4 }
 0x410   :  { %8501 = vmatprep.mubr.bf16.mxu1 %v2032_v1  ;;  %8467 = vmatprep.subr.bf16.mxu0 %v10486_v11 }
 0x411   :  { %8487 = vmatprep.subr.bf16.mxu1 %v10488_v12 }
 0x412   :  { %8468 = vmatpush3.bf16.msra.mxu0 %v10486_v11 }
 0x413   :  { %8488 = vmatpush3.bf16.msra.mxu1 %v10488_v12  ;;  %8469 = vmatprep.subr.bf16.mxu0 %v10496_v15 }
 0x414   :  { %8489 = vmatprep.subr.bf16.mxu1 %v10500_v45 }
 0x416   :  { %8470 = vmatpush3.bf16.msra.mxu0 %v10496_v15 }
 0x417   :  { %8490 = vmatpush3.bf16.msra.mxu1 %v10500_v45  ;;  %8471 = vmatprep.subr.bf16.mxu0 %v10505_v46 }
 0x418   :  { %8491 = vmatprep.subr.bf16.mxu1 %v10508_v42 }
 0x41a   :  { %8472 = vmatpush3.bf16.msra.mxu0 %v10505_v46 }
 0x41b   :  { %8492 = vmatpush3.bf16.msra.mxu1 %v10508_v42  ;;  %8473 = vmatprep.subr.bf16.mxu0 %v10513_v52 }
 0x41c   :  { %8493 = vmatprep.subr.bf16.mxu1 %v10516_v54 }
 0x41e   :  { %8474 = vmatpush3.bf16.msra.mxu0 %v10513_v52 }
 0x41f   :  { %8494 = vmatpush3.bf16.msra.mxu1 %v10516_v54  ;;  %8475 = vmatprep.subr.bf16.mxu0 %v10521_v55 }
 0x420   :  { %8495 = vmatprep.subr.bf16.mxu1 %v10524_v57 }
 0x422   :  { %8476 = vmatpush3.bf16.msra.mxu0 %v10521_v55 }
 0x423   :  { %8496 = vmatpush3.bf16.msra.mxu1 %v10524_v57  ;;  %8477 = vmatprep.subr.bf16.mxu0 %v10529_v63 }
 0x424   :  { %8497 = vmatprep.subr.bf16.mxu1 %v10532_v59 }
 0x426   :  { %8478 = vmatpush3.bf16.msra.mxu0 %v10529_v63 }
 0x427   :  { %8498 = vmatpush3.bf16.msra.mxu1 %v10532_v59  ;;  %8479 = vmatprep.subr.bf16.mxu0 %v10537_v23 }
 0x428   :  { %8499 = vmatprep.subr.bf16.mxu1 %v10540_v27 }
 0x42a   :  { %8480 = vmatpush3.bf16.msra.mxu0 %v10537_v23 }
 0x42b   :  { %8500 = vmatpush3.bf16.msra.mxu1 %v10540_v27  ;;  %8505 = vmatprep.subr.bf16.mxu0 %v9752_v13 }
 0x42c   :  { %8513 = vmatprep.subr.bf16.mxu1 %v9752_v13 }
 0x42d   :  { %8482 = vmatmul.mubr.bf16.vlgmr.msra.gmra.mxu0 %v10410_v41 }
 0x42e   :  { %8502 = vmatmul.mubr.bf16.vlgmr.msra.gmra.mxu1 %v2033_v10  ;;  %8509 = vmatprep.mubr.msk.bf16.mxu0 %vm9753_vm10, %v9752_v13 }
 0x42f   :  { %8517 = vmatprep.mubr.msk.bf16.mxu1 %vm9753_vm10, %v9752_v13 }
 0x44d   :  { %v8283_v16 = vpop.f32.mrf.mxu0  ;;  %v8303_v17 = vpop.f32.mrf.mxu1 }
 0x44e   :  { %v2255_v9 = vadd.f32 %v8303_v17, %v8283_v16 }
 0x44f   :  { %v2149_v20 = vpop.f32.mrf.mxu0  ;;  %v2246_v25 = vpop.f32.mrf.mxu1 }
 0x450   :  { %v2247_v11 = vadd.f32 %v2246_v25, %v2149_v20 }
 0x451   :  { %v8284_v26 = vpop.f32.mrf.mxu0  ;;  %v8304_v29 = vpop.f32.mrf.mxu1 }
 0x452   :  { %v2258_v46 = vadd.f32 %v8304_v29, %v8284_v26 }
 0x453   :  { %v2152_v31 = vpop.f32.mrf.mxu0  ;;  %v2249_v33 = vpop.f32.mrf.mxu1 }
 0x454   :  { %v2250_v42 = vadd.f32 %v2249_v33, %v2152_v31 }
 0x46d   :  { %v8323_v5 = vpop.f32.mrf.mxu0  ;;  %v8343_v28 = vpop.f32.mrf.mxu1 }
 0x46e   :  { %v2377_v57 = vadd.f32 %v8323_v5, %v2255_v9 }
 0x46f   :  { %v2360_v34 = vpop.f32.mrf.mxu0  ;;  %v2495_v37 = vpop.f32.mrf.mxu1 }
 0x470   :  { %v2375_v63 = vadd.f32 %v2360_v34, %v2247_v11 }
 0x471   :  { %v8324_v21 = vpop.f32.mrf.mxu0  ;;  %v8344_v19 = vpop.f32.mrf.mxu1 }
 0x472   :  { %v2378_v10 = vadd.f32 %v8324_v21, %v2258_v46  ;;  %v9326_v46 = vld [vmem:[%s11756_s7 + $0x18] sm:$0xff]  }
 0x473   :  { %v10660_v8 = vpop.f32.mrf.mxu0  ;;  %v2498_v35 = vpop.f32.mrf.mxu1 }
 0x474   :  { %v2376_v21 = vadd.f32 %v10660_v8, %v2250_v42  ;;  %v10687_v42 = vld [vmem:[#allocation10 + $0x78] sm:$0xff]  }
 0x48d   :  { %v8363_v39 = vpop.f32.mrf.mxu0 }
 0x48e   :  { %v8383_v56 = vpop.f32.mrf.mxu1  ;;  %v2601_v40 = vadd.f32 %v8363_v39, %v8343_v28 }
 0x48f   :  { %v2592_v0 = vpop.f32.mrf.mxu0 }
 0x490   :  { %v2706_v38 = vpop.f32.mrf.mxu1  ;;  %v2593_v49 = vadd.f32 %v2592_v0, %v2495_v37  ;;  %v2723_v12 = vadd.f32 %v8383_v56, %v2601_v40 }
 0x491   :  { %v8364_v41 = vpop.f32.mrf.mxu0 }
 0x492   :  { %v8384_v44 = vpop.f32.mrf.mxu1  ;;  %v2604_v15 = vadd.f32 %v8364_v41, %v8344_v19  ;;  %v2721_v59 = vadd.f32 %v2706_v38, %v2593_v49  ;;  %v3029_v16 = vmax.f32 %v2377_v57, %v2723_v12  ;;  %v9323_v12 = vld [vmem:[%s11756_s7] sm:$0xff]   ;;  %v10709_v57 = vld [vmem:[#allocation10 + $0x68] sm:$0xff]  }
 0x493   :  { %v2595_v60 = vpop.f32.mrf.mxu0 }
 0x494   :  { %v2709_v14 = vpop.f32.mrf.mxu1  ;;  %v2596_v23 = vadd.f32 %v2595_v60, %v2498_v35  ;;  %v2724_v17 = vadd.f32 %v8384_v44, %v2604_v15  ;;  %v3027_v5 = vmax.f32 %v2375_v63, %v2721_v59  ;;  %v6900_v35 = vld [vmem:[#allocation9] ss:$0 sm:$0xff]  ;;  %v9324_v15 = vld [vmem:[%s11756_s7 + $0x8] sm:$0xff]  }
 0x495   :  { %v10711_v63 = vld [vmem:[#allocation10 + $0x28] sm:$0xff]   ;;  %v10717_v59 = vld [vmem:[#allocation10 + $0x60] sm:$0xff]  }
 0x496   :  { %v2722_v34 = vadd.f32 %v2709_v14, %v2596_v23  ;;  %v3030_v44 = vmax.f32 %v2378_v10, %v2724_v17  ;;  %v10719_v23 = vld [vmem:[#allocation10 + $0x20] sm:$0xff]  }
 0x497   :  { %v10751_v10 = vld [vmem:[#allocation10 + $0x40] sm:$0xff]  }
 0x4ad   :  { %v8403_v30 = vpop.f32.mrf.mxu0 }
 0x4ae   :  { %v8423_v50 = vpop.f32.mrf.mxu1 }
 0x4af   :  { %v2759_v53 = vpop.f32.mrf.mxu0  ;;  %v2817_v52 = vadd.f32 %v8423_v50, %v8403_v30 }
 0x4b0   :  { %v2808_v47 = vpop.f32.mrf.mxu1 }
 0x4b1   :  { %v8404_v7 = vpop.f32.mrf.mxu0  ;;  %v2809_v58 = vadd.f32 %v2808_v47, %v2759_v53 }
 0x4b2   :  { %v8424_v48 = vpop.f32.mrf.mxu1 }
 0x4b3   :  { %v2762_v3 = vpop.f32.mrf.mxu0  ;;  %v2820_v20 = vadd.f32 %v8424_v48, %v8404_v7  ;;  %v3028_v48 = vmax.f32 %v2376_v21, %v2722_v34  ;;  %v10783_v21 = vld [vmem:[#allocation10 + $0xa8] sm:$0xff]  }
 0x4b4   :  { %v2811_v22 = vpop.f32.mrf.mxu1 }
 0x4b5   :  { %v2812_v37 = vadd.f32 %v2811_v22, %v2762_v3 }
 0x4cd   :  { %v8443_v2 = vpop.f32.mrf.mxu0 }
 0x4ce   :  { %v8463_v6 = vpop.f32.mrf.mxu1  ;;  %v2874_v62 = vadd.f32 %v8443_v2, %v2817_v52  ;;  %v10689_v52 = vld [vmem:[#allocation10 + $0x38] sm:$0xff]  }
 0x4cf   :  { %v2857_v32 = vpop.f32.mrf.mxu0 }
 0x4d0   :  { %v2910_v61 = vpop.f32.mrf.mxu1  ;;  %v2872_v26 = vadd.f32 %v2857_v32, %v2809_v58  ;;  %v10727_v58 = vld [vmem:[#allocation10 + $0x18] sm:$0xff]  }
 0x4d1   :  { %v8444_v43 = vpop.f32.mrf.mxu0 }
 0x4d2   :  { %v8464_v36 = vpop.f32.mrf.mxu1  ;;  %v2875_v19 = vadd.f32 %v8444_v43, %v2820_v20 }
 0x4d3   :  { %v2860_v51 = vpop.f32.mrf.mxu0 }
 0x4d4   :  { %v2913_v4 = vpop.f32.mrf.mxu1  ;;  %v2873_v60 = vadd.f32 %v2860_v51, %v2812_v37 }
 0x4ed   :  { %v8483_v45 = vpop.f32.mrf.mxu0 }
 0x4ee   :  { %v2968_v54 = vadd.f32 %v8483_v45, %v8463_v6  ;;  %v8503_v55 = vpop.f32.mrf.mxu1  ;;  %v9325_v45 = vld [vmem:[%s11756_s7 + $0x10] sm:$0xff]  }
 0x4ef   :  { %v2959_v27 = vpop.f32.mrf.mxu0 }
 0x4f0   :  { %v3025_v24 = vadd.f32 %v8503_v55, %v2968_v54  ;;  %v2960_v18 = vadd.f32 %v2959_v27, %v2910_v61  ;;  %v3008_v1 = vpop.f32.mrf.mxu1  ;;  %v10697_v54 = vld [vmem:[#allocation10 + $0x70] sm:$0xff]   ;;  %v10725_v27 = vld [vmem:[#allocation10 + $0x58] sm:$0xff]  }
 0x4f1   :  { %v8484_v25 = vpop.f32.mrf.mxu0  ;;  %v10699_v55 = vld [vmem:[#allocation10 + $0x30] sm:$0xff]  }
 0x4f2   :  { %v3033_v29 = vmax.f32 %v2874_v62, %v3025_v24  ;;  %v3023_v31 = vadd.f32 %v3008_v1, %v2960_v18  ;;  %v2971_v33 = vadd.f32 %v8484_v25, %v8464_v36  ;;  %v8504_v28 = vpop.f32.mrf.mxu1  ;;  %v10733_v62 = vld [vmem:[#allocation10 + $0x50] sm:$0xff]   ;;  %v10741_v18 = vld [vmem:[#allocation10 + $0x48] sm:$0xff]  }
 0x4f3   :  { %v2962_v39 = vpop.f32.mrf.mxu0  ;;  %v10735_v24 = vld [vmem:[#allocation10 + $0x10] sm:$0xff]   ;;  %v10743_v1 = vld [vmem:[#allocation10 + $0x8] sm:$0xff]  }
 0x4f4   :  { %v3037_v56 = vmax.f32 %v3029_v16, %v3033_v29  ;;  %v3031_v0 = vmax.f32 %v2872_v26, %v3023_v31  ;;  %v3026_v38 = vadd.f32 %v8504_v28, %v2971_v33  ;;  %v2963_v41 = vadd.f32 %v2962_v39, %v2913_v4  ;;  %v3011_v30 = vpop.f32.mrf.mxu1  ;;  %v10753_v16 = vld [vmem:[#allocation10] sm:$0xff]   ;;  %v10759_v33 = vld [vmem:[#allocation10 + $0xb8] sm:$0xff]   ;;  %v10773_v39 = vld [vmem:[#allocation10 + $0x130] sm:$0xff]  }
 0x4f5   :  { %v10761_v28 = vld [vmem:[#allocation10 + $0x138] sm:$0xff]  }
 0x4f6   :  { %v3047_v50 = vadd.f32 %v6900_v35, %v3037_v56  ;;  %v3035_v53 = vmax.f32 %v3027_v5, %v3031_v0  ;;  %v3034_v47 = vmax.f32 %v2875_v19, %v3026_v38  ;;  %v3024_v7 = vadd.f32 %v3011_v30, %v2963_v41 }
 0x4f8   :  { %v3038_v2 = vmax.f32 %v3030_v44, %v3034_v47  ;;  %v3032_v14 = vmax.f32 %v2873_v60, %v3024_v7  ;;  %v3045_v3 = vadd.f32 %v6900_v35, %v3035_v53  ;;  %v3055_v22 = vmul.f32 0.01, %v3047_v50  ;;  %v10785_v44 = vld [vmem:[#allocation10 + $0x128] sm:$0xff]   ;;  %v10793_v7 = vld [vmem:[#allocation10 + $0xa0] sm:$0xff]  }
 0x4f9   :  { %vm3051_vm11 = vcmp.ge.f32.partialorder %v3047_v50, 0.0 }
 0x4fa   :  { %v3048_v6 = vadd.f32 %v6900_v35, %v3038_v2  ;;  %v3036_v32 = vmax.f32 %v3028_v48, %v3032_v14  ;;  %v3053_v36 = vmul.f32 0.01, %v3045_v3  ;;  %v3059_v40 = vsel %vm3051_vm11, %v3047_v50, %v3055_v22  ;;  %v10795_v48 = vld [vmem:[#allocation10 + $0x120] sm:$0xff]   ;;  %v10801_v2 = vld [vmem:[#allocation10 + $0x98] sm:$0xff]   ;;  %v10811_v22 = vld [vmem:[#allocation10 + $0x110] sm:$0xff]  }
 0x4fb   :  { %vm3049_vm14 = vcmp.ge.f32.partialorder %v3045_v3, 0.0  ;;  %v10803_v14 = vld [vmem:[#allocation10 + $0x118] sm:$0xff]  }
 0x4fc   :  { %v3056_v61 = vmul.f32 0.01, %v3048_v6  ;;  %v3046_v43 = vadd.f32 %v6900_v35, %v3036_v32  ;;  %vm3052_vm12 = vcmp.ge.f32.partialorder %v3048_v6, 0.0  ;;  %v3057_v9 = vsel %vm3049_vm14, %v3045_v3, %v3053_v36  ;;  %v10771_v35 = vld [vmem:[#allocation10 + $0xb0] sm:$0xff]   ;;  %v10819_v32 = vld [vmem:[#allocation10 + $0x108] sm:$0xff]   ;;  %v10833_v36 = vld [vmem:[#allocation10 + $0xf8] sm:$0xff]  }
 0x4fd   :  { %v10809_v3 = vld [vmem:[#allocation10 + $0x90] sm:$0xff]  }
 0x4fe   :  { %v3054_v8 = vmul.f32 0.01, %v3046_v43  ;;  %v3060_v49 = vsel %vm3052_vm12, %v3048_v6, %v3056_v61  ;;  %vm3050_vm13 = vcmp.ge.f32.partialorder %v3046_v43, 0.0  ;;  %v10817_v6 = vld [vmem:[#allocation10 + $0x88] sm:$0xff]   ;;  %v10825_v61 = vld [vmem:[#allocation10 + $0x80] sm:$0xff]  }
 0x4ff   :  { %v3062_v51 = vpack.c.bf16 %v3060_v49, %v3059_v40  ;;  %v10845_v49 = vld [vmem:[#allocation10 + $0xf0] sm:$0xff]  }
 0x500   :  { %v3058_v4 = vsel %vm3050_vm13, %v3046_v43, %v3054_v8  ;;  %v10827_v43 = vld [vmem:[#allocation10 + $0x100] sm:$0xff]   ;;  %v10835_v8 = vld [vmem:[#allocation10 + $0x178] sm:$0xff]  }
 0x501   :  { %8506 = vmatpush3.bf16.msra.mxu0 %v3062_v51  ;;  %8514 = vmatpush3.bf16.msra.mxu1 %v3062_v51  ;;  %v3061_v11 = vpack.c.bf16 %v3058_v4, %v3057_v9  ;;  %v10857_v4 = vld [vmem:[#allocation10 + $0xe8] sm:$0xff]  }
 0x502   :  { %8507 = vmatprep.subr.bf16.mxu0 %v9752_v13  ;;  %8515 = vmatprep.subr.bf16.mxu1 %v9752_v13  ;;  %v10859_v9 = vld [vmem:[#allocation10 + $0x168] sm:$0xff]  }
 0x505   :  { %8508 = vmatpush3.bf16.msra.mxu0 %v3061_v11  ;;  %8516 = vmatpush3.bf16.msra.mxu1 %v3061_v11 }
 0x506   :  { %8521 = vmatprep.subr.bf16.mxu0 %v9752_v13  ;;  %8529 = vmatprep.subr.bf16.mxu1 %v9752_v13 }
 0x508   :  { %8510 = vmatmul.mubr.msk.bf16.vlgmr.msra.gmra.mxu0 %vm3071_vm15, %v9323_v12  ;;  %8518 = vmatmul.mubr.msk.bf16.vlgmr.msra.gmra.mxu1 %vm3071_vm15, %v9324_v15  ;;  %v10867_v12 = vld [vmem:[#allocation10 + $0x160] sm:$0xff]   ;;  %v10873_v15 = vld [vmem:[#allocation10 + $0xd8] sm:$0xff]  }
 0x509   :  { %8522 = vmatpush3.bf16.msra.mxu0 %v3062_v51  ;;  %8530 = vmatpush3.bf16.msra.mxu1 %v3062_v51  ;;  %v10847_v51 = vld [vmem:[#allocation10 + $0x170] sm:$0xff]  }
 0x50a   :  { %8523 = vmatprep.subr.bf16.mxu0 %v9752_v13  ;;  %8531 = vmatprep.subr.bf16.mxu1 %v9752_v13 }
 0x50b   :  { %8525 = vmatprep.mubr.msk.bf16.mxu0 %vm9753_vm10, %v9752_v13  ;;  %8533 = vmatprep.mubr.msk.bf16.mxu1 %vm9753_vm10, %v9752_v13 }
 0x50d   :  { %8524 = vmatpush3.bf16.msra.mxu0 %v3061_v11  ;;  %8532 = vmatpush3.bf16.msra.mxu1 %v3061_v11  ;;  %v10865_v11 = vld [vmem:[#allocation10 + $0xe0] sm:$0xff]  }
 0x50e   :  { %8537 = vmatprep.subr.bf16.mxu0 %v9752_v13  ;;  %8557 = vmatprep.subr.bf16.mxu1 %v9752_v13 }
 0x510   :  { %8526 = vmatmul.mubr.msk.bf16.vlgmr.msra.gmra.mxu0 %vm3071_vm15, %v9325_v45  ;;  %8534 = vmatmul.mubr.msk.bf16.vlgmr.msra.gmra.mxu1 %vm3071_vm15, %v9326_v46  ;;  %v10875_v45 = vld [vmem:[#allocation10 + $0x158] sm:$0xff]   ;;  %v10881_v46 = vld [vmem:[#allocation10 + $0xd0] sm:$0xff]  }
 0x511   :  { %8538 = vmatpush3.bf16.msra.mxu0 %v10687_v42  ;;  %8558 = vmatpush3.bf16.msra.mxu1 %v10689_v52 }
 0x512   :  { %8539 = vmatprep.subr.bf16.mxu0 %v9752_v13  ;;  %8559 = vmatprep.subr.bf16.mxu1 %v9752_v13 }
 0x513   :  { %8553 = vmatprep.mubr.msk.bf16.mxu0 %vm9753_vm10, %v9752_v13  ;;  %8573 = vmatprep.mubr.msk.bf16.mxu1 %vm9753_vm10, %v9752_v13 }
 0x515   :  { %8540 = vmatpush3.bf16.msra.mxu0 %v10697_v54  ;;  %8560 = vmatpush3.bf16.msra.mxu1 %v10699_v55 }
 0x516   :  { %8541 = vmatprep.subr.bf16.mxu0 %v9752_v13  ;;  %8561 = vmatprep.subr.bf16.mxu1 %v9752_v13 }
 0x519   :  { %8542 = vmatpush3.bf16.msra.mxu0 %v10709_v57  ;;  %8562 = vmatpush3.bf16.msra.mxu1 %v10711_v63 }
 0x51a   :  { %8543 = vmatprep.subr.bf16.mxu0 %v9752_v13  ;;  %8563 = vmatprep.subr.bf16.mxu1 %v9752_v13 }
 0x51d   :  { %8544 = vmatpush3.bf16.msra.mxu0 %v10717_v59  ;;  %8564 = vmatpush3.bf16.msra.mxu1 %v10719_v23 }
 0x51e   :  { %8545 = vmatprep.subr.bf16.mxu0 %v9752_v13  ;;  %8565 = vmatprep.subr.bf16.mxu1 %v9752_v13 }
 0x521   :  { %8546 = vmatpush3.bf16.msra.mxu0 %v10725_v27  ;;  %8566 = vmatpush3.bf16.msra.mxu1 %v10727_v58 }
 0x522   :  { %8547 = vmatprep.subr.bf16.mxu0 %v9752_v13  ;;  %8567 = vmatprep.subr.bf16.mxu1 %v9752_v13 }
 0x525   :  { %8548 = vmatpush3.bf16.msra.mxu0 %v10733_v62  ;;  %8568 = vmatpush3.bf16.msra.mxu1 %v10735_v24 }
 0x526   :  { %8549 = vmatprep.subr.bf16.mxu0 %v9752_v13  ;;  %8569 = vmatprep.subr.bf16.mxu1 %v9752_v13 }
 0x529   :  { %8550 = vmatpush3.bf16.msra.mxu0 %v10741_v18  ;;  %8570 = vmatpush3.bf16.msra.mxu1 %v10743_v1 }
 0x52a   :  { %8551 = vmatprep.subr.bf16.mxu0 %v9752_v13  ;;  %8571 = vmatprep.subr.bf16.mxu1 %v9752_v13 }
 0x52d   :  { %8552 = vmatpush3.bf16.msra.mxu0 %v10751_v10  ;;  %8572 = vmatpush3.bf16.msra.mxu1 %v10753_v16 }
 0x52e   :  { %8577 = vmatprep.subr.bf16.mxu0 %v9752_v13  ;;  %8597 = vmatprep.subr.bf16.mxu1 %v9752_v13 }
 0x5c8   :  { %v3109_v17 = vpop.f32.mrf.mxu0  ;;  %v3162_v20 = vpop.f32.mrf.mxu1 }
 0x5ca   :  { %v8511_v25 = vpop.f32.mrf.mxu0  ;;  %v8519_v26 = vpop.f32.mrf.mxu1 }
 0x5cb   :  { %v10891_v25 = vld [vmem:[#allocation10 + $0x148] sm:$0xff]   ;;  %v10897_v26 = vld [vmem:[#allocation10 + $0xc0] sm:$0xff]  }
 0x5cc   :  { %v3112_v29 = vpop.f32.mrf.mxu0  ;;  %v3165_v31 = vpop.f32.mrf.mxu1 }
 0x5cd   :  { %v10763_v5 = vpack.c.bf16 %v3112_v29, %v3109_v17  ;;  %v10765_v34 = vpack.c.bf16 %v3165_v31, %v3162_v20  ;;  %v10883_v17 = vld [vmem:[#allocation10 + $0x150] sm:$0xff]   ;;  %v10889_v20 = vld [vmem:[#allocation10 + $0xc8] sm:$0xff]   ;;  %v10899_v29 = vld [vmem:[#allocation10 + $0x140] sm:$0xff]  }
 0x5ce   :  { %v8512_v37 = vpop.f32.mrf.mxu0  ;;  %v8520_v19 = vpop.f32.mrf.mxu1 }
 0x5cf   :  { %8554 = vmatmul.mubr.bf16.vlgmr.msra.gmra.mxu0 %v10765_v34  ;;  %8574 = vmatmul.mubr.bf16.vlgmr.msra.gmra.mxu1 %v10763_v5  ;;  %v9376_v37 = vld [vmem:[#allocation13 + $0x30] sm:$0xff]   ;;  %v9377_v19 = vld [vmem:[#allocation13 + $0x28] sm:$0xff]  }
 0x5d0   :  { %8578 = vmatpush3.bf16.msra.mxu0 %v10759_v33  ;;  %8598 = vmatpush3.bf16.msra.mxu1 %v10761_v28  ;;  %v3215_v56 = vpop.f32.mrf.mxu0  ;;  %v3268_v0 = vpop.f32.mrf.mxu1 }
 0x5d1   :  { %8579 = vmatprep.subr.bf16.mxu0 %v9752_v13  ;;  %8599 = vmatprep.subr.bf16.mxu1 %v9752_v13 }
 0x5d2   :  { %v8527_v38 = vpop.f32.mrf.mxu0  ;;  %8593 = vmatprep.mubr.msk.bf16.mxu0 %vm9753_vm10, %v9752_v13  ;;  %8613 = vmatprep.mubr.msk.bf16.mxu1 %vm9753_vm10, %v9752_v13  ;;  %v8535_v41 = vpop.f32.mrf.mxu1 }
 0x5d4   :  { %8580 = vmatpush3.bf16.msra.mxu0 %v10771_v35  ;;  %8600 = vmatpush3.bf16.msra.mxu1 %v10773_v39  ;;  %v3218_v60 = vpop.f32.mrf.mxu0  ;;  %v3271_v30 = vpop.f32.mrf.mxu1 }
 0x5d5   :  { %8581 = vmatprep.subr.bf16.mxu0 %v9752_v13  ;;  %8601 = vmatprep.subr.bf16.mxu1 %v9752_v13  ;;  %v10789_v50 = vpack.c.bf16 %v3271_v30, %v3268_v0  ;;  %v10837_v40 = vpack.c.bf16 %v3218_v60, %v3215_v56  ;;  %v9378_v0 = vld [vmem:[#allocation13 + $0x20] sm:$0xff]  }
 0x5d6   :  { %v8528_v53 = vpop.f32.mrf.mxu0  ;;  %v8536_v47 = vpop.f32.mrf.mxu1 }
 0x5d7   :  { %v9379_v53 = vld [vmem:[#allocation13 + $0x18] sm:$0xff]  }
 0x5d8   :  { %8582 = vmatpush3.bf16.msra.mxu0 %v10783_v21  ;;  %8602 = vmatpush3.bf16.msra.mxu1 %v10785_v44 }
 0x5d9   :  { %8583 = vmatprep.subr.bf16.mxu0 %v9752_v13  ;;  %8603 = vmatprep.subr.bf16.mxu1 %v9752_v13 }
 0x5dc   :  { %8584 = vmatpush3.bf16.msra.mxu0 %v10793_v7  ;;  %8604 = vmatpush3.bf16.msra.mxu1 %v10795_v48 }
 0x5dd   :  { %8585 = vmatprep.subr.bf16.mxu0 %v9752_v13  ;;  %8605 = vmatprep.subr.bf16.mxu1 %v9752_v13 }
 0x5e0   :  { %8586 = vmatpush3.bf16.msra.mxu0 %v10801_v2  ;;  %8606 = vmatpush3.bf16.msra.mxu1 %v10803_v14 }
 0x5e1   :  { %8587 = vmatprep.subr.bf16.mxu0 %v9752_v13  ;;  %8607 = vmatprep.subr.bf16.mxu1 %v9752_v13 }
 0x5e4   :  { %8588 = vmatpush3.bf16.msra.mxu0 %v10809_v3  ;;  %8608 = vmatpush3.bf16.msra.mxu1 %v10811_v22 }
 0x5e5   :  { %8589 = vmatprep.subr.bf16.mxu0 %v9752_v13  ;;  %8609 = vmatprep.subr.bf16.mxu1 %v9752_v13 }
 0x5e8   :  { %8590 = vmatpush3.bf16.msra.mxu0 %v10817_v6  ;;  %8610 = vmatpush3.bf16.msra.mxu1 %v10819_v32 }
 0x5e9   :  { %8591 = vmatprep.subr.bf16.mxu0 %v9752_v13  ;;  %8611 = vmatprep.subr.bf16.mxu1 %v9752_v13 }
 0x5ec   :  { %8592 = vmatpush3.bf16.msra.mxu0 %v10825_v61  ;;  %8612 = vmatpush3.bf16.msra.mxu1 %v10827_v43 }
 0x5ed   :  { %8617 = vmatprep.subr.bf16.mxu0 %v9752_v13  ;;  %8637 = vmatprep.subr.bf16.mxu1 %v9752_v13 }
 0x5ef   :  { %8594 = vmatmul.mubr.bf16.vlgmr.msra.gmra.mxu0 %v10837_v40  ;;  %8614 = vmatmul.mubr.bf16.vlgmr.msra.gmra.mxu1 %v10765_v34 }
 0x5f0   :  { %8618 = vmatpush3.bf16.msra.mxu0 %v10833_v36  ;;  %8638 = vmatpush3.bf16.msra.mxu1 %v10835_v8 }
 0x5f1   :  { %8619 = vmatprep.subr.bf16.mxu0 %v9752_v13  ;;  %8639 = vmatprep.subr.bf16.mxu1 %v9752_v13 }
 0x5f2   :  { %8633 = vmatprep.mubr.msk.bf16.mxu0 %vm9753_vm10, %v9752_v13  ;;  %8653 = vmatprep.mubr.msk.bf16.mxu1 %vm9753_vm10, %v9752_v13 }
 0x5f4   :  { %8620 = vmatpush3.bf16.msra.mxu0 %v10845_v49  ;;  %8640 = vmatpush3.bf16.msra.mxu1 %v10847_v51 }
 0x5f5   :  { %8621 = vmatprep.subr.bf16.mxu0 %v9752_v13  ;;  %8641 = vmatprep.subr.bf16.mxu1 %v9752_v13 }
 0x5f8   :  { %8622 = vmatpush3.bf16.msra.mxu0 %v10857_v4  ;;  %8642 = vmatpush3.bf16.msra.mxu1 %v10859_v9 }
 0x5f9   :  { %8623 = vmatprep.subr.bf16.mxu0 %v9752_v13  ;;  %8643 = vmatprep.subr.bf16.mxu1 %v9752_v13 }
 0x5fc   :  { %8624 = vmatpush3.bf16.msra.mxu0 %v10865_v11  ;;  %8644 = vmatpush3.bf16.msra.mxu1 %v10867_v12 }
 0x5fd   :  { %8625 = vmatprep.subr.bf16.mxu0 %v9752_v13  ;;  %8645 = vmatprep.subr.bf16.mxu1 %v9752_v13 }
 0x600   :  { %8626 = vmatpush3.bf16.msra.mxu0 %v10873_v15  ;;  %8646 = vmatpush3.bf16.msra.mxu1 %v10875_v45 }
 0x601   :  { %8627 = vmatprep.subr.bf16.mxu0 %v9752_v13  ;;  %8647 = vmatprep.subr.bf16.mxu1 %v9752_v13 }
 0x604   :  { %8628 = vmatpush3.bf16.msra.mxu0 %v10881_v46  ;;  %8648 = vmatpush3.bf16.msra.mxu1 %v10883_v17 }
 0x605   :  { %8629 = vmatprep.subr.bf16.mxu0 %v9752_v13  ;;  %8649 = vmatprep.subr.bf16.mxu1 %v9752_v13 }
 0x608   :  { %8630 = vmatpush3.bf16.msra.mxu0 %v10889_v20  ;;  %8650 = vmatpush3.bf16.msra.mxu1 %v10891_v25 }
 0x609   :  { %8631 = vmatprep.subr.bf16.mxu0 %v9752_v13  ;;  %8651 = vmatprep.subr.bf16.mxu1 %v9752_v13 }
 0x60c   :  { %8632 = vmatpush3.bf16.msra.mxu0 %v10897_v26  ;;  %8652 = vmatpush3.bf16.msra.mxu1 %v10899_v29 }
 0x60d   :  { %8657 = vmatprep.subr.bf16.mxu0 %v9752_v13  ;;  %8677 = vmatprep.subr.bf16.mxu1 %v9752_v13 }
 0x60f   :  { %8634 = vmatmul.mubr.bf16.vlgmr.msra.gmra.mxu0 %v10763_v5  ;;  %8654 = vmatmul.mubr.bf16.vlgmr.msra.gmra.mxu1 %v10837_v40 }
 0x610   :  { %8658 = vmatpush3.bf16.msra.mxu0 %v10687_v42  ;;  %8678 = vmatpush3.bf16.msra.mxu1 %v10689_v52 }
 0x611   :  { %8659 = vmatprep.subr.bf16.mxu0 %v9752_v13  ;;  %8679 = vmatprep.subr.bf16.mxu1 %v9752_v13 }
 0x612   :  { %8673 = vmatprep.mubr.msk.bf16.mxu0 %vm9753_vm10, %v9752_v13  ;;  %8693 = vmatprep.mubr.msk.bf16.mxu1 %vm9753_vm10, %v9752_v13 }
 0x614   :  { %8660 = vmatpush3.bf16.msra.mxu0 %v10697_v54  ;;  %8680 = vmatpush3.bf16.msra.mxu1 %v10699_v55 }
 0x615   :  { %8661 = vmatprep.subr.bf16.mxu0 %v9752_v13  ;;  %8681 = vmatprep.subr.bf16.mxu1 %v9752_v13 }
 0x618   :  { %8662 = vmatpush3.bf16.msra.mxu0 %v10709_v57  ;;  %8682 = vmatpush3.bf16.msra.mxu1 %v10711_v63 }
 0x619   :  { %8663 = vmatprep.subr.bf16.mxu0 %v9752_v13  ;;  %8683 = vmatprep.subr.bf16.mxu1 %v9752_v13 }
 0x61c   :  { %8664 = vmatpush3.bf16.msra.mxu0 %v10717_v59  ;;  %8684 = vmatpush3.bf16.msra.mxu1 %v10719_v23 }
 0x61d   :  { %8665 = vmatprep.subr.bf16.mxu0 %v9752_v13  ;;  %8685 = vmatprep.subr.bf16.mxu1 %v9752_v13 }
 0x620   :  { %8666 = vmatpush3.bf16.msra.mxu0 %v10725_v27  ;;  %8686 = vmatpush3.bf16.msra.mxu1 %v10727_v58 }
 0x621   :  { %8667 = vmatprep.subr.bf16.mxu0 %v9752_v13  ;;  %8687 = vmatprep.subr.bf16.mxu1 %v9752_v13 }
 0x624   :  { %8668 = vmatpush3.bf16.msra.mxu0 %v10733_v62  ;;  %8688 = vmatpush3.bf16.msra.mxu1 %v10735_v24 }
 0x625   :  { %8669 = vmatprep.subr.bf16.mxu0 %v9752_v13  ;;  %8689 = vmatprep.subr.bf16.mxu1 %v9752_v13 }
 0x628   :  { %8670 = vmatpush3.bf16.msra.mxu0 %v10741_v18  ;;  %8690 = vmatpush3.bf16.msra.mxu1 %v10743_v1 }
 0x629   :  { %8671 = vmatprep.subr.bf16.mxu0 %v9752_v13  ;;  %8691 = vmatprep.subr.bf16.mxu1 %v9752_v13 }
 0x62c   :  { %8672 = vmatpush3.bf16.msra.mxu0 %v10751_v10  ;;  %8692 = vmatpush3.bf16.msra.mxu1 %v10753_v16 }
 0x62d   :  { %8697 = vmatprep.subr.bf16.mxu0 %v9752_v13  ;;  %8717 = vmatprep.subr.bf16.mxu1 %v9752_v13 }
 0x62f   :  { %8674 = vmatmul.mubr.bf16.vlgmr.msra.gmra.mxu0 %v10837_v40  ;;  %8694 = vmatmul.mubr.bf16.vlgmr.msra.gmra.mxu1 %v10765_v34 }
 0x630   :  { %8698 = vmatpush3.bf16.msra.mxu0 %v10759_v33  ;;  %8718 = vmatpush3.bf16.msra.mxu1 %v10761_v28 }
 0x631   :  { %8699 = vmatprep.subr.bf16.mxu0 %v9752_v13  ;;  %8719 = vmatprep.subr.bf16.mxu1 %v9752_v13 }
 0x632   :  { %8713 = vmatprep.mubr.msk.bf16.mxu0 %vm9753_vm10, %v9752_v13  ;;  %8733 = vmatprep.mubr.msk.bf16.mxu1 %vm9753_vm10, %v9752_v13 }
 0x634   :  { %8700 = vmatpush3.bf16.msra.mxu0 %v10771_v35  ;;  %8720 = vmatpush3.bf16.msra.mxu1 %v10773_v39 }
 0x635   :  { %8701 = vmatprep.subr.bf16.mxu0 %v9752_v13  ;;  %8721 = vmatprep.subr.bf16.mxu1 %v9752_v13 }
 0x638   :  { %8702 = vmatpush3.bf16.msra.mxu0 %v10783_v21  ;;  %8722 = vmatpush3.bf16.msra.mxu1 %v10785_v44 }
 0x639   :  { %8703 = vmatprep.subr.bf16.mxu0 %v9752_v13  ;;  %8723 = vmatprep.subr.bf16.mxu1 %v9752_v13 }
 0x63c   :  { %8704 = vmatpush3.bf16.msra.mxu0 %v10793_v7  ;;  %8724 = vmatpush3.bf16.msra.mxu1 %v10795_v48 }
 0x63d   :  { %8705 = vmatprep.subr.bf16.mxu0 %v9752_v13  ;;  %8725 = vmatprep.subr.bf16.mxu1 %v9752_v13 }
 0x640   :  { %8706 = vmatpush3.bf16.msra.mxu0 %v10801_v2  ;;  %8726 = vmatpush3.bf16.msra.mxu1 %v10803_v14  ;;  %v9380_v14 = vld [vmem:[#allocation13 + $0x10] sm:$0xff]  }
 0x641   :  { %8707 = vmatprep.subr.bf16.mxu0 %v9752_v13  ;;  %8727 = vmatprep.subr.bf16.mxu1 %v9752_v13 }
 0x644   :  { %8708 = vmatpush3.bf16.msra.mxu0 %v10809_v3  ;;  %8728 = vmatpush3.bf16.msra.mxu1 %v10811_v22  ;;  %v9381_v3 = vld [vmem:[#allocation13 + $0x8] sm:$0xff]  }
 0x645   :  { %8709 = vmatprep.subr.bf16.mxu0 %v9752_v13  ;;  %8729 = vmatprep.subr.bf16.mxu1 %v9752_v13 }
 0x648   :  { %8710 = vmatpush3.bf16.msra.mxu0 %v10817_v6  ;;  %8730 = vmatpush3.bf16.msra.mxu1 %v10819_v32 }
 0x649   :  { %8711 = vmatprep.subr.bf16.mxu0 %v9752_v13  ;;  %8731 = vmatprep.subr.bf16.mxu1 %v9752_v13 }
 0x64c   :  { %8712 = vmatpush3.bf16.msra.mxu0 %v10825_v61  ;;  %8732 = vmatpush3.bf16.msra.mxu1 %v10827_v43 }
 0x64d   :  { %8737 = vmatprep.subr.bf16.mxu0 %v9752_v13  ;;  %8757 = vmatprep.subr.bf16.mxu1 %v9752_v13 }
 0x64f   :  { %8714 = vmatmul.mubr.bf16.vlgmr.msra.gmra.mxu0 %v10789_v50  ;;  %8734 = vmatmul.mubr.bf16.vlgmr.msra.gmra.mxu1 %v10837_v40 }
 0x650   :  { %8738 = vmatpush3.bf16.msra.mxu0 %v10833_v36  ;;  %8758 = vmatpush3.bf16.msra.mxu1 %v10835_v8 }
 0x651   :  { %8739 = vmatprep.subr.bf16.mxu0 %v9752_v13  ;;  %8759 = vmatprep.subr.bf16.mxu1 %v9752_v13 }
 0x652   :  { %8753 = vmatprep.mubr.msk.bf16.mxu0 %vm9753_vm10, %v9752_v13  ;;  %8773 = vmatprep.mubr.msk.bf16.mxu1 %vm9753_vm10, %v9752_v13 }
 0x654   :  { %8740 = vmatpush3.bf16.msra.mxu0 %v10845_v49  ;;  %8760 = vmatpush3.bf16.msra.mxu1 %v10847_v51 }
 0x655   :  { %8741 = vmatprep.subr.bf16.mxu0 %v9752_v13  ;;  %8761 = vmatprep.subr.bf16.mxu1 %v9752_v13 }
 0x658   :  { %8742 = vmatpush3.bf16.msra.mxu0 %v10857_v4  ;;  %8762 = vmatpush3.bf16.msra.mxu1 %v10859_v9 }
 0x659   :  { %8743 = vmatprep.subr.bf16.mxu0 %v9752_v13  ;;  %8763 = vmatprep.subr.bf16.mxu1 %v9752_v13 }
 0x65c   :  { %8744 = vmatpush3.bf16.msra.mxu0 %v10865_v11  ;;  %8764 = vmatpush3.bf16.msra.mxu1 %v10867_v12 }
 0x65d   :  { %8745 = vmatprep.subr.bf16.mxu0 %v9752_v13  ;;  %8765 = vmatprep.subr.bf16.mxu1 %v9752_v13 }
 0x660   :  { %8746 = vmatpush3.bf16.msra.mxu0 %v10873_v15  ;;  %8766 = vmatpush3.bf16.msra.mxu1 %v10875_v45 }
 0x661   :  { %8747 = vmatprep.subr.bf16.mxu0 %v9752_v13  ;;  %8767 = vmatprep.subr.bf16.mxu1 %v9752_v13 }
 0x664   :  { %8748 = vmatpush3.bf16.msra.mxu0 %v10881_v46  ;;  %8768 = vmatpush3.bf16.msra.mxu1 %v10883_v17 }
 0x665   :  { %8749 = vmatprep.subr.bf16.mxu0 %v9752_v13  ;;  %8769 = vmatprep.subr.bf16.mxu1 %v9752_v13 }
 0x668   :  { %8750 = vmatpush3.bf16.msra.mxu0 %v10889_v20  ;;  %8770 = vmatpush3.bf16.msra.mxu1 %v10891_v25 }
 0x669   :  { %8751 = vmatprep.subr.bf16.mxu0 %v9752_v13  ;;  %8771 = vmatprep.subr.bf16.mxu1 %v9752_v13 }
 0x66c   :  { %8752 = vmatpush3.bf16.msra.mxu0 %v10897_v26  ;;  %8772 = vmatpush3.bf16.msra.mxu1 %v10899_v29 }
 0x66d   :  { %8777 = vmatprep.subr.bf16.mxu0 %v9752_v13  ;;  %8783 = vmatprep.subr.bf16.mxu1 %v9752_v13 }
 0x66f   :  { %8754 = vmatmul.mubr.bf16.vlgmr.msra.gmra.mxu0 %v10765_v34  ;;  %8774 = vmatmul.mubr.bf16.vlgmr.msra.gmra.mxu1 %v10789_v50  ;;  %v9375_v34 = vld [vmem:[#allocation13 + $0x38] sm:$0xff]  }
 0x670   :  { %8779 = vmatprep.mubr.msk.bf16.mxu0 %vm9753_vm10, %v9752_v13  ;;  %8799 = vmatprep.mubr.msk.bf16.mxu1 %vm9753_vm10, %v9752_v13 }
 0x671   :  { %8784 = vmatpush3.bf16.msra.mxu1 %v9375_v34 }
 0x672   :  { %8785 = vmatprep.subr.bf16.mxu1 %v9752_v13 }
 0x675   :  { %8786 = vmatpush3.bf16.msra.mxu1 %v9376_v37 }
 0x676   :  { %8787 = vmatprep.subr.bf16.mxu1 %v9752_v13 }
 0x679   :  { %8788 = vmatpush3.bf16.msra.mxu1 %v9377_v19  ;;  %v4186_v19 = vld [vmem:[%s11759_s10] sm:$0xf] }
 0x67a   :  { %8789 = vmatprep.subr.bf16.mxu1 %v9752_v13 }
 0x67d   :  { %8790 = vmatpush3.bf16.msra.mxu1 %v9378_v0 }
 0x67e   :  { %8791 = vmatprep.subr.bf16.mxu1 %v9752_v13 }
 0x681   :  { %8792 = vmatpush3.bf16.msra.mxu1 %v9379_v53  ;;  %v9396_v53 = vld [vmem:[%s11762_s13 + $0x10] sm:$0xff]  }
 0x682   :  { %8793 = vmatprep.subr.bf16.mxu1 %v9752_v13 }
 0x685   :  { %8794 = vmatpush3.bf16.msra.mxu1 %v9380_v14 }
 0x686   :  { %8795 = vmatprep.subr.bf16.mxu1 %v9752_v13 }
 0x689   :  { %8796 = vmatpush3.bf16.msra.mxu1 %v9381_v3 }
 0x68a   :  { %8797 = vmatprep.subr.bf16.mxu1 %v9752_v13 }
 0x68f   :  { %v3391_v42 = vpop.f32.mrf.mxu0  ;;  %v3480_v52 = vpop.f32.mrf.mxu1 }
 0x690   :  { %v3481_v54 = vadd.f32 %v3480_v52, %v3391_v42 }
 0x691   :  { %v8555_v55 = vpop.f32.mrf.mxu0  ;;  %v8575_v57 = vpop.f32.mrf.mxu1 }
 0x693   :  { %v3394_v63 = vpop.f32.mrf.mxu0  ;;  %v3483_v59 = vpop.f32.mrf.mxu1 }
 0x694   :  { %v3484_v23 = vadd.f32 %v3483_v59, %v3394_v63 }
 0x695   :  { %v8556_v27 = vpop.f32.mrf.mxu0  ;;  %v8576_v58 = vpop.f32.mrf.mxu1 }
 0x6af   :  { %v3586_v62 = vpop.f32.mrf.mxu0  ;;  %v3711_v24 = vpop.f32.mrf.mxu1 }
 0x6b0   :  { %v11027_v18 = vadd.f32 %v3586_v62, %v3481_v54 }
 0x6b1   :  { %v8595_v1 = vpop.f32.mrf.mxu0  ;;  %v8615_v10 = vpop.f32.mrf.mxu1 }
 0x6b3   :  { %v3589_v16 = vpop.f32.mrf.mxu0  ;;  %v3714_v31 = vpop.f32.mrf.mxu1 }
 0x6b4   :  { %v11029_v33 = vadd.f32 %v3589_v16, %v3484_v23  ;;  %v6963_v23 = vld [vmem:[#allocation12] ss:$0 sm:$0xff] }
 0x6b5   :  { %v8596_v28 = vpop.f32.mrf.mxu0  ;;  %v8616_v5 = vpop.f32.mrf.mxu1 }
 0x6cf   :  { %v3800_v35 = vpop.f32.mrf.mxu0  ;;  %v3906_v39 = vpop.f32.mrf.mxu1 }
 0x6d0   :  { %v3801_v56 = vadd.f32 %v3800_v35, %v3711_v24  ;;  %v9382_v35 = vld [vmem:[#allocation13] sm:$0xff]  }
 0x6d1   :  { %v8635_v38 = vpop.f32.mrf.mxu0  ;;  %v8655_v41 = vpop.f32.mrf.mxu1  ;;  %8798 = vmatpush3.bf16.msra.mxu1 %v9382_v35  ;;  %v9414_v35 = vld [vmem:[%s11764_s15] sm:$0xff]  }
 0x6d2   :  { %v3913_v21 = vadd.f32 %v3906_v39, %v3801_v56  ;;  %8829 = vmatprep.subr.bf16.mxu1 %v9752_v13 }
 0x6d3   :  { %v3803_v44 = vpop.f32.mrf.mxu0  ;;  %v3909_v60 = vpop.f32.mrf.mxu1 }
 0x6d4   :  { %v4165_v30 = vmax.f32 %v11027_v18, %v3913_v21  ;;  %v3804_v50 = vadd.f32 %v3803_v44, %v3714_v31  ;;  %v9391_v21 = vld [vmem:[%s11762_s13 + $0x38] sm:$0xff]   ;;  %v9392_v44 = vld [vmem:[%s11762_s13 + $0x30] sm:$0xff]  }
 0x6d5   :  { %v8636_v47 = vpop.f32.mrf.mxu0  ;;  %v8656_v7 = vpop.f32.mrf.mxu1 }
 0x6d6   :  { %v3914_v48 = vadd.f32 %v3909_v60, %v3804_v50  ;;  %v9393_v60 = vld [vmem:[%s11762_s13 + $0x28] sm:$0xff]   ;;  %v9395_v50 = vld [vmem:[%s11762_s13 + $0x18] sm:$0xff]  }
 0x6d7   :  { %v9397_v47 = vld [vmem:[%s11762_s13 + $0x8] sm:$0xff]  }
 0x6d8   :  { %v4166_v2 = vmax.f32 %v11029_v33, %v3914_v48 }
 0x6ef   :  { %v3949_v22 = vpop.f32.mrf.mxu0  ;;  %v3990_v6 = vpop.f32.mrf.mxu1 }
 0x6f0   :  { %v3991_v32 = vadd.f32 %v3990_v6, %v3949_v22  ;;  %v11085_v22 = vld [vmem:[%s11761_s12] sm:$0xf]  ;;  %v9383_v6 = vld [vmem:[%s11762_s13 + $0x78] sm:$0xff]  }
 0x6f1   :  { %v8675_v61 = vpop.f32.mrf.mxu0  ;;  %v8695_v43 = vpop.f32.mrf.mxu1 }
 0x6f2   :  { %v9384_v61 = vld [vmem:[%s11762_s13 + $0x70] sm:$0xff]   ;;  %v9385_v43 = vld [vmem:[%s11762_s13 + $0x68] sm:$0xff]  }
 0x6f3   :  { %v3952_v36 = vpop.f32.mrf.mxu0  ;;  %v3993_v8 = vpop.f32.mrf.mxu1 }
 0x6f4   :  { %v3994_v40 = vadd.f32 %v3993_v8, %v3952_v36  ;;  %v9386_v36 = vld [vmem:[%s11762_s13 + $0x60] sm:$0xff]   ;;  %v9387_v8 = vld [vmem:[%s11762_s13 + $0x58] sm:$0xff]  }
 0x6f5   :  { %v8676_v49 = vpop.f32.mrf.mxu0  ;;  %v8696_v51 = vpop.f32.mrf.mxu1 }
 0x6f6   :  { %v9389_v49 = vld [vmem:[%s11762_s13 + $0x48] sm:$0xff]   ;;  %v9390_v51 = vld [vmem:[%s11762_s13 + $0x40] sm:$0xff]  }
 0x70f   :  { %v4031_v4 = vpop.f32.mrf.mxu0  ;;  %v4074_v9 = vpop.f32.mrf.mxu1 }
 0x710   :  { %v4038_v52 = vadd.f32 %v4031_v4, %v3991_v32  ;;  %v9398_v4 = vld [vmem:[%s11762_s13] sm:$0xff]  }
 0x711   :  { %v8715_v11 = vpop.f32.mrf.mxu0  ;;  %v8735_v12 = vpop.f32.mrf.mxu1 }
 0x713   :  { %v4034_v15 = vpop.f32.mrf.mxu0  ;;  %v4077_v45 = vpop.f32.mrf.mxu1 }
 0x714   :  { %v4039_v62 = vadd.f32 %v4034_v15, %v3994_v40  ;;  %v9388_v40 = vld [vmem:[%s11762_s13 + $0x50] sm:$0xff]  }
 0x715   :  { %v8716_v46 = vpop.f32.mrf.mxu0  ;;  %v8736_v17 = vpop.f32.mrf.mxu1 }
 0x72f   :  { %v4115_v20 = vpop.f32.mrf.mxu0  ;;  %v4156_v25 = vpop.f32.mrf.mxu1 }
 0x730   :  { %v4116_v26 = vadd.f32 %v4115_v20, %v4074_v9 }
 0x731   :  { %v8755_v29 = vpop.f32.mrf.mxu0  ;;  %v8775_v42 = vpop.f32.mrf.mxu1 }
 0x732   :  { %v4163_v54 = vadd.f32 %v4156_v25, %v4116_v26  ;;  %v9407_v26 = vld [vmem:[%s11764_s15 + $0x38] sm:$0xff]   ;;  %v9408_v29 = vld [vmem:[%s11764_s15 + $0x30] sm:$0xff]   ;;  %v9409_v42 = vld [vmem:[%s11764_s15 + $0x28] sm:$0xff]  }
 0x733   :  { %v4118_v55 = vpop.f32.mrf.mxu0  ;;  %v4159_v57 = vpop.f32.mrf.mxu1 }
 0x734   :  { %v4167_v63 = vmax.f32 %v4038_v52, %v4163_v54  ;;  %v4119_v59 = vadd.f32 %v4118_v55, %v4077_v45  ;;  %v9410_v52 = vld [vmem:[%s11764_s15 + $0x20] sm:$0xff]   ;;  %v9411_v54 = vld [vmem:[%s11764_s15 + $0x18] sm:$0xff]   ;;  %v9412_v55 = vld [vmem:[%s11764_s15 + $0x10] sm:$0xff]  }
 0x735   :  { %v8756_v27 = vpop.f32.mrf.mxu0  ;;  %v8776_v58 = vpop.f32.mrf.mxu1 }
 0x736   :  { %v4169_v24 = vmax.f32 %v4165_v30, %v4167_v63  ;;  %v4164_v18 = vadd.f32 %v4159_v57, %v4119_v59  ;;  %v9394_v30 = vld [vmem:[%s11762_s13 + $0x20] sm:$0xff]   ;;  %v9413_v57 = vld [vmem:[%s11764_s15 + $0x8] sm:$0xff]  }
 0x737   :  { %v7006_v59 = vld [vmem:[%s11763_s14] ss:$0 sm:$0xff] }
 0x738   :  { %v4177_v1 = vadd.f32 %v6963_v23, %v4169_v24  ;;  %v4168_v10 = vmax.f32 %v4039_v62, %v4164_v18 }
 0x73a   :  { %v4170_v16 = vmax.f32 %v4166_v2, %v4168_v10  ;;  %v4181_v31 = vmul.f32 0.01, %v4177_v1  ;;  %vm4179_vm0 = vcmp.ge.f32.partialorder %v4177_v1, 0.0 }
 0x73c   :  { %v4178_v33 = vadd.f32 %v6963_v23, %v4170_v16  ;;  %v4183_v5 = vsel %vm4179_vm0, %v4177_v1, %v4181_v31  ;;  %v9399_v16 = vld [vmem:[%s11764_s15 + $0x78] sm:$0xff]   ;;  %v9400_v31 = vld [vmem:[%s11764_s15 + $0x70] sm:$0xff]  }
 0x73e   :  { %v4182_v28 = vmul.f32 0.01, %v4178_v33  ;;  %vm4180_vm1 = vcmp.ge.f32.partialorder %v4178_v33, 0.0 }
 0x740   :  { %v4184_v34 = vsel %vm4180_vm1, %v4178_v33, %v4182_v28  ;;  %v9401_v33 = vld [vmem:[%s11764_s15 + $0x68] sm:$0xff]   ;;  %v9402_v28 = vld [vmem:[%s11764_s15 + $0x60] sm:$0xff]  }
 0x741   :  { %v4185_v37 = vpack.c.bf16 %v4184_v34, %v4183_v5  ;;  %v9403_v5 = vld [vmem:[%s11764_s15 + $0x58] sm:$0xff]   ;;  %v9404_v34 = vld [vmem:[%s11764_s15 + $0x50] sm:$0xff]  }
 0x743   :  { %8778 = vmatpush3.bf16.msra.mxu0 %v4185_v37  ;;  %v9405_v37 = vld [vmem:[%s11764_s15 + $0x48] sm:$0xff]  }
 0x744   :  { %8803 = vmatprep.subr.bf16.mxu0 %v9752_v13 }
 0x746   :  { %8780 = vmatmul.mubr.msk.bf16.vlgmr.msra.gmra.mxu0 %vm4187_vm2, %v4186_v19  ;;  %v9406_v19 = vld [vmem:[%s11764_s15 + $0x40] sm:$0xff]  }
 0x747   :  { %8805 = vmatprep.mubr.msk.bf16.mxu0 %vm9753_vm10, %v9752_v13 }
 0x806   :  { %v4225_v39 = vpop.f32.mrf.mxu0 }
 0x807   :  { %v4231_v56 = vpack.c.bf16 %v4225_v39, %v4225_v39 }
 0x808   :  { %v8781_v0 = vpop.f32.mrf.mxu0 }
 0x809   :  { %8800 = vmatmul.mubr.bf16.vlgmr.msra.gmra.mxu1 %v4231_v56 }
 0x80a   :  { %v4228_v38 = vpop.f32.mrf.mxu0  ;;  %8845 = vmatprep.mubr.msk.bf16.mxu1 %vm9753_vm10, %v9752_v13  ;;  %8830 = vmatpush3.bf16.msra.mxu1 %v9391_v21 }
 0x80b   :  { %8831 = vmatprep.subr.bf16.mxu1 %v9752_v13 }
 0x80c   :  { %v8782_v41 = vpop.f32.mrf.mxu0 }
 0x80e   :  { %8832 = vmatpush3.bf16.msra.mxu1 %v9392_v44 }
 0x80f   :  { %8833 = vmatprep.subr.bf16.mxu1 %v9752_v13 }
 0x812   :  { %8834 = vmatpush3.bf16.msra.mxu1 %v9393_v60 }
 0x813   :  { %8835 = vmatprep.subr.bf16.mxu1 %v9752_v13 }
 0x816   :  { %8836 = vmatpush3.bf16.msra.mxu1 %v9394_v30 }
 0x817   :  { %8837 = vmatprep.subr.bf16.mxu1 %v9752_v13 }
 0x81a   :  { %8838 = vmatpush3.bf16.msra.mxu1 %v9395_v50  ;;  %v9423_v50 = vld [vmem:[%s11762_s13 + $0xb8] sm:$0xff]  }
 0x81b   :  { %8839 = vmatprep.subr.bf16.mxu1 %v9752_v13 }
 0x81e   :  { %8840 = vmatpush3.bf16.msra.mxu1 %v9396_v53  ;;  %v9424_v53 = vld [vmem:[%s11762_s13 + $0xb0] sm:$0xff]  }
 0x81f   :  { %8841 = vmatprep.subr.bf16.mxu1 %v9752_v13 }
 0x822   :  { %8842 = vmatpush3.bf16.msra.mxu1 %v9397_v47  ;;  %v9425_v47 = vld [vmem:[%s11762_s13 + $0xa8] sm:$0xff]  }
 0x823   :  { %8843 = vmatprep.subr.bf16.mxu1 %v9752_v13 }
 0x826   :  { %8844 = vmatpush3.bf16.msra.mxu1 %v9398_v4 }
 0x827   :  { %8875 = vmatprep.subr.bf16.mxu1 %v9752_v13 }
 0x8c9   :  { %v11077_v7 = vpop.f32.mrf.mxu1 }
 0x8ca   :  { %v4336_v48 = vpack.c.bf16 %v11077_v7, %v11077_v7 }
 0x8cb   :  { %v8801_v2 = vpop.f32.mrf.mxu1 }
 0x8cc   :  { %v4344_v14 = vsel %vm4342_vm3, %v4336_v48, 0  ;;  %v9427_v2 = vld [vmem:[%s11762_s13 + $0x98] sm:$0xff]  }
 0x8cd   :  { %v4333_v3 = vpop.f32.mrf.mxu1  ;;  %8804 = vmatpush3.bf16.msra.mxu0 %v4344_v14  ;;  %v9428_v14 = vld [vmem:[%s11762_s13 + $0x90] sm:$0xff]  }
 0x8ce   :  { %8809 = vmatprep.subr.bf16.mxu0 %v9752_v13  ;;  %v9429_v3 = vld [vmem:[%s11762_s13 + $0x88] sm:$0xff]  }
 0x8cf   :  { %v8802_v32 = vpop.f32.mrf.mxu1 }
 0x8d0   :  { %8806 = vmatmul.mubr.msk.bf16.vlgmr.msra.gmra.mxu0 %vm4338_vm4, %v11085_v22 }
 0x8d1   :  { %8810 = vmatpush3.bf16.msra.mxu0 %v9383_v6  ;;  %8825 = vmatprep.mubr.msk.bf16.mxu0 %vm9753_vm10, %v9752_v13  ;;  %v7040_v6 = vld [vmem:[%s11765_s16] ss:$0 sm:$0xff] }
 0x8d2   :  { %8811 = vmatprep.subr.bf16.mxu0 %v9752_v13 }
 0x8d5   :  { %8812 = vmatpush3.bf16.msra.mxu0 %v9384_v61 }
 0x8d6   :  { %8813 = vmatprep.subr.bf16.mxu0 %v9752_v13 }
 0x8d9   :  { %8814 = vmatpush3.bf16.msra.mxu0 %v9385_v43 }
 0x8da   :  { %8815 = vmatprep.subr.bf16.mxu0 %v9752_v13 }
 0x8dd   :  { %8816 = vmatpush3.bf16.msra.mxu0 %v9386_v36 }
 0x8de   :  { %8817 = vmatprep.subr.bf16.mxu0 %v9752_v13 }
 0x8e1   :  { %8818 = vmatpush3.bf16.msra.mxu0 %v9387_v8 }
 0x8e2   :  { %8819 = vmatprep.subr.bf16.mxu0 %v9752_v13 }
 0x8e5   :  { %8820 = vmatpush3.bf16.msra.mxu0 %v9388_v40 }
 0x8e6   :  { %8821 = vmatprep.subr.bf16.mxu0 %v9752_v13 }
 0x8e9   :  { %8822 = vmatpush3.bf16.msra.mxu0 %v9389_v49 }
 0x8ea   :  { %8823 = vmatprep.subr.bf16.mxu0 %v9752_v13 }
 0x8ed   :  { %8824 = vmatpush3.bf16.msra.mxu0 %v9390_v51 }
 0x8ee   :  { %8849 = vmatprep.subr.bf16.mxu0 %v9752_v13 }
 0x8f0   :  { %8826 = vmatmul.mubr.bf16.vlgmr.msra.gmra.mxu0 %v4336_v48  ;;  %v9426_v48 = vld [vmem:[%s11762_s13 + $0xa0] sm:$0xff]  }
 0x8f1   :  { %8851 = vmatprep.mubr.msk.bf16.mxu0 %vm9753_vm10, %v9752_v13 }
 0x990   :  { %v4380_v9 = vpop.f32.mrf.mxu0 }
 0x991   :  { %v4386_v11 = vpack.c.bf16 %v4380_v9, %v4380_v9 }
 0x992   :  { %v8807_v12 = vpop.f32.mrf.mxu0 }
 0x993   :  { %8846 = vmatmul.mubr.bf16.vlgmr.msra.gmra.mxu1 %v4386_v11  ;;  %v11249_v11 = vld [vmem:[%s11761_s12 + $0x4] sm:$0xf]  ;;  %v9415_v12 = vld [vmem:[%s11762_s13 + $0xf8] sm:$0xff]  }
 0x994   :  { %v4383_v15 = vpop.f32.mrf.mxu0  ;;  %8891 = vmatprep.mubr.msk.bf16.mxu1 %vm9753_vm10, %v9752_v13  ;;  %8876 = vmatpush3.bf16.msra.mxu1 %v9407_v26  ;;  %v9430_v26 = vld [vmem:[%s11762_s13 + $0x80] sm:$0xff]  }
 0x995   :  { %8877 = vmatprep.subr.bf16.mxu1 %v9752_v13  ;;  %v9417_v15 = vld [vmem:[%s11762_s13 + $0xe8] sm:$0xff]  }
 0x996   :  { %v8808_v45 = vpop.f32.mrf.mxu0 }
 0x997   :  { %v9418_v45 = vld [vmem:[%s11762_s13 + $0xe0] sm:$0xff]  }
 0x998   :  { %8878 = vmatpush3.bf16.msra.mxu1 %v9408_v29 }
 0x999   :  { %8879 = vmatprep.subr.bf16.mxu1 %v9752_v13 }
 0x99c   :  { %8880 = vmatpush3.bf16.msra.mxu1 %v9409_v42  ;;  %v9431_v42 = vld [vmem:[%s11764_s15 + $0xf8] sm:$0xff]  }
 0x99d   :  { %8881 = vmatprep.subr.bf16.mxu1 %v9752_v13 }
 0x9a0   :  { %8882 = vmatpush3.bf16.msra.mxu1 %v9410_v52 }
 0x9a1   :  { %8883 = vmatprep.subr.bf16.mxu1 %v9752_v13 }
 0x9a4   :  { %8884 = vmatpush3.bf16.msra.mxu1 %v9411_v54 }
 0x9a5   :  { %8885 = vmatprep.subr.bf16.mxu1 %v9752_v13 }
 0x9a8   :  { %8886 = vmatpush3.bf16.msra.mxu1 %v9412_v55 }
 0x9a9   :  { %8887 = vmatprep.subr.bf16.mxu1 %v9752_v13 }
 0x9ac   :  { %8888 = vmatpush3.bf16.msra.mxu1 %v9413_v57  ;;  %v9432_v57 = vld [vmem:[%s11764_s15 + $0xf0] sm:$0xff]  }
 0x9ad   :  { %8889 = vmatprep.subr.bf16.mxu1 %v9752_v13 }
 0x9b0   :  { %v4502_v46 = vpop.f32.mrf.mxu0  ;;  %8890 = vmatpush3.bf16.msra.mxu1 %v9414_v35 }
 0x9b1   :  { %8921 = vmatprep.subr.bf16.mxu1 %v9752_v13 }
 0x9b2   :  { %v8827_v17 = vpop.f32.mrf.mxu0 }
 0x9b3   :  { %v9420_v17 = vld [vmem:[%s11762_s13 + $0xd0] sm:$0xff]  }
 0x9b4   :  { %v4505_v20 = vpop.f32.mrf.mxu0 }
 0x9b5   :  { %v9421_v20 = vld [vmem:[%s11762_s13 + $0xc8] sm:$0xff]  }
 0x9b6   :  { %v8828_v25 = vpop.f32.mrf.mxu0 }
 0x9b7   :  { %v9422_v25 = vld [vmem:[%s11762_s13 + $0xc0] sm:$0xff]  }
 0xa53   :  { %v4590_v63 = vpop.f32.mrf.mxu1 }
 0xa54   :  { %v4591_v23 = vadd.f32 %v4590_v63, %v4502_v46  ;;  %v9419_v46 = vld [vmem:[%s11762_s13 + $0xd8] sm:$0xff]  }
 0xa55   :  { %v8847_v27 = vpop.f32.mrf.mxu1 }
 0xa56   :  { %v4603_v58 = vadd.f32 %v7006_v59, %v4591_v23  ;;  %v9433_v59 = vld [vmem:[%s11764_s15 + $0xe8] sm:$0xff]   ;;  %v9434_v23 = vld [vmem:[%s11764_s15 + $0xe0] sm:$0xff]   ;;  %v9435_v27 = vld [vmem:[%s11764_s15 + $0xd8] sm:$0xff]  }
 0xa57   :  { %v4593_v62 = vpop.f32.mrf.mxu1 }
 0xa58   :  { %v4604_v24 = vmax.f32 %v4603_v58, 0.0  ;;  %v9436_v58 = vld [vmem:[%s11764_s15 + $0xd0] sm:$0xff]  }
 0xa59   :  { %v8848_v18 = vpop.f32.mrf.mxu1 }
 0xa5a   :  { %v4605_v1 = vpack.c.bf16 %v4604_v24, %v4604_v24 }
 0xa5c   :  { %v4607_v10 = vsel %vm4342_vm3, %v4605_v1, 0 }
 0xa5d   :  { %8850 = vmatpush3.bf16.msra.mxu0 %v4607_v10  ;;  %v9437_v10 = vld [vmem:[%s11764_s15 + $0xc8] sm:$0xff]  }
 0xa5e   :  { %8855 = vmatprep.subr.bf16.mxu0 %v9752_v13 }
 0xa60   :  { %8852 = vmatmul.mubr.msk.bf16.vlgmr.msra.gmra.mxu0 %vm4338_vm4, %v11085_v22 }
 0xa61   :  { %8856 = vmatpush3.bf16.msra.mxu0 %v9399_v16  ;;  %8871 = vmatprep.mubr.msk.bf16.mxu0 %vm9753_vm10, %v9752_v13  ;;  %v9438_v16 = vld [vmem:[%s11764_s15 + $0xc0] sm:$0xff]  }
 0xa62   :  { %8857 = vmatprep.subr.bf16.mxu0 %v9752_v13 }
 0xa65   :  { %8858 = vmatpush3.bf16.msra.mxu0 %v9400_v31 }
 0xa66   :  { %8859 = vmatprep.subr.bf16.mxu0 %v9752_v13 }
 0xa69   :  { %8860 = vmatpush3.bf16.msra.mxu0 %v9401_v33  ;;  %v7092_v33 = vld [vmem:[%s11763_s14 + $0x1] ss:$0 sm:$0xff] }
 0xa6a   :  { %8861 = vmatprep.subr.bf16.mxu0 %v9752_v13 }
 0xa6d   :  { %8862 = vmatpush3.bf16.msra.mxu0 %v9402_v28 }
 0xa6e   :  { %8863 = vmatprep.subr.bf16.mxu0 %v9752_v13 }
 0xa71   :  { %8864 = vmatpush3.bf16.msra.mxu0 %v9403_v5 }
 0xa72   :  { %8865 = vmatprep.subr.bf16.mxu0 %v9752_v13 }
 0xa75   :  { %8866 = vmatpush3.bf16.msra.mxu0 %v9404_v34 }
 0xa76   :  { %8867 = vmatprep.subr.bf16.mxu0 %v9752_v13 }
 0xa79   :  { %8868 = vmatpush3.bf16.msra.mxu0 %v9405_v37 }
 0xa7a   :  { %8869 = vmatprep.subr.bf16.mxu0 %v9752_v13 }
 0xa7d   :  { %8870 = vmatpush3.bf16.msra.mxu0 %v9406_v19 }
 0xa7e   :  { %8895 = vmatprep.subr.bf16.mxu0 %v9752_v13 }
 0xa80   :  { %8872 = vmatmul.mubr.bf16.vlgmr.msra.gmra.mxu0 %v4605_v1 }
 0xa81   :  { %8897 = vmatprep.mubr.msk.bf16.mxu0 %vm9753_vm10, %v9752_v13 }
 0xb20   :  { %v4643_v39 = vpop.f32.mrf.mxu0 }
 0xb21   :  { %v4649_v56 = vpack.c.bf16 %v4643_v39, %v4643_v39 }
 0xb22   :  { %v8853_v0 = vpop.f32.mrf.mxu0 }
 0xb23   :  { %8892 = vmatmul.mubr.bf16.vlgmr.msra.gmra.mxu1 %v4649_v56  ;;  %v9439_v0 = vld [vmem:[%s11764_s15 + $0xb8] sm:$0xff]  }
 0xb24   :  { %v4646_v38 = vpop.f32.mrf.mxu0  ;;  %8937 = vmatprep.mubr.msk.bf16.mxu1 %vm9753_vm10, %v9752_v13  ;;  %8922 = vmatpush3.bf16.msra.mxu1 %v9423_v50  ;;  %v9446_v50 = vld [vmem:[%s11764_s15 + $0x80] sm:$0xff]  }
 0xb25   :  { %8923 = vmatprep.subr.bf16.mxu1 %v9752_v13  ;;  %v9440_v38 = vld [vmem:[%s11764_s15 + $0xb0] sm:$0xff]  }
 0xb26   :  { %v8854_v41 = vpop.f32.mrf.mxu0 }
 0xb27   :  { %v9441_v41 = vld [vmem:[%s11764_s15 + $0xa8] sm:$0xff]  }
 0xb28   :  { %8924 = vmatpush3.bf16.msra.mxu1 %v9424_v53 }
 0xb29   :  { %8925 = vmatprep.subr.bf16.mxu1 %v9752_v13 }
 0xb2c   :  { %8926 = vmatpush3.bf16.msra.mxu1 %v9425_v47 }
 0xb2d   :  { %8927 = vmatprep.subr.bf16.mxu1 %v9752_v13 }
 0xb30   :  { %8928 = vmatpush3.bf16.msra.mxu1 %v9426_v48 }
 0xb31   :  { %8929 = vmatprep.subr.bf16.mxu1 %v9752_v13 }
 0xb34   :  { %8930 = vmatpush3.bf16.msra.mxu1 %v9427_v2 }
 0xb35   :  { %8931 = vmatprep.subr.bf16.mxu1 %v9752_v13 }
 0xb38   :  { %8932 = vmatpush3.bf16.msra.mxu1 %v9428_v14  ;;  %v9447_v14 = vld [vmem:[%s11762_s13 + $0x178] sm:$0xff]  }
 0xb39   :  { %8933 = vmatprep.subr.bf16.mxu1 %v9752_v13 }
 0xb3c   :  { %8934 = vmatpush3.bf16.msra.mxu1 %v9429_v3 }
 0xb3d   :  { %8935 = vmatprep.subr.bf16.mxu1 %v9752_v13 }
 0xb40   :  { %v4765_v21 = vpop.f32.mrf.mxu0  ;;  %8936 = vmatpush3.bf16.msra.mxu1 %v9430_v26 }
 0xb41   :  { %8947 = vmatprep.subr.bf16.mxu1 %v9752_v13 }
 0xb42   :  { %v8873_v44 = vpop.f32.mrf.mxu0 }
 0xb43   :  { %v9443_v44 = vld [vmem:[%s11764_s15 + $0x98] sm:$0xff]  }
 0xb44   :  { %v4768_v60 = vpop.f32.mrf.mxu0 }
 0xb45   :  { %v9444_v60 = vld [vmem:[%s11764_s15 + $0x90] sm:$0xff]  }
 0xb46   :  { %v8874_v30 = vpop.f32.mrf.mxu0 }
 0xb47   :  { %v9445_v30 = vld [vmem:[%s11764_s15 + $0x88] sm:$0xff]  }
 0xbe3   :  { %v4853_v22 = vpop.f32.mrf.mxu1 }
 0xbe4   :  { %v4854_v32 = vadd.f32 %v4853_v22, %v4765_v21  ;;  %v9442_v21 = vld [vmem:[%s11764_s15 + $0xa0] sm:$0xff]  }
 0xbe5   :  { %v8893_v61 = vpop.f32.mrf.mxu1 }
 0xbe6   :  { %v4866_v43 = vadd.f32 %v7040_v6, %v4854_v32  ;;  %v9448_v61 = vld [vmem:[%s11762_s13 + $0x170] sm:$0xff]  }
 0xbe7   :  { %v4856_v36 = vpop.f32.mrf.mxu1 }
 0xbe8   :  { %v4867_v8 = vmax.f32 %v4866_v43, 0.0  ;;  %v9449_v36 = vld [vmem:[%s11762_s13 + $0x168] sm:$0xff]  }
 0xbe9   :  { %v8894_v40 = vpop.f32.mrf.mxu1 }
 0xbea   :  { %v4868_v49 = vadd.f32 %v4867_v8, %v11077_v7  ;;  %v9416_v7 = vld [vmem:[%s11762_s13 + $0xf0] sm:$0xff]   ;;  %v9450_v8 = vld [vmem:[%s11762_s13 + $0x160] sm:$0xff]   ;;  %v9451_v40 = vld [vmem:[%s11762_s13 + $0x158] sm:$0xff]  }
 0xbec   :  { %v11241_v51 = vmax.f32 %v4868_v49, 0.0  ;;  %v9452_v49 = vld [vmem:[%s11762_s13 + $0x150] sm:$0xff]  }
 0xbee   :  { %v4870_v4 = vpack.c.bf16 %v11241_v51, %v11241_v51 }
 0xbf0   :  { %v4877_v9 = vsel %vm4342_vm3, %v4870_v4, 0 }
 0xbf1   :  { %8896 = vmatpush3.bf16.msra.mxu0 %v4877_v9  ;;  %v9454_v9 = vld [vmem:[%s11762_s13 + $0x140] sm:$0xff]  }
 0xbf2   :  { %8901 = vmatprep.subr.bf16.mxu0 %v9752_v13 }
 0xbf4   :  { %8898 = vmatmul.mubr.msk.bf16.vlgmr.msra.gmra.mxu0 %vm4338_vm4, %v11249_v11 }
 0xbf5   :  { %8902 = vmatpush3.bf16.msra.mxu0 %v9415_v12  ;;  %8917 = vmatprep.mubr.msk.bf16.mxu0 %vm9753_vm10, %v9752_v13  ;;  %v7143_v12 = vld [vmem:[%s11765_s16 + $0x1] ss:$0 sm:$0xff] }
 0xbf6   :  { %8903 = vmatprep.subr.bf16.mxu0 %v9752_v13 }
 0xbf9   :  { %8904 = vmatpush3.bf16.msra.mxu0 %v9416_v7 }
 0xbfa   :  { %8905 = vmatprep.subr.bf16.mxu0 %v9752_v13 }
 0xbfd   :  { %8906 = vmatpush3.bf16.msra.mxu0 %v9417_v15 }
 0xbfe   :  { %8907 = vmatprep.subr.bf16.mxu0 %v9752_v13 }
 0xc01   :  { %8908 = vmatpush3.bf16.msra.mxu0 %v9418_v45 }
 0xc02   :  { %8909 = vmatprep.subr.bf16.mxu0 %v9752_v13 }
 0xc05   :  { %8910 = vmatpush3.bf16.msra.mxu0 %v9419_v46 }
 0xc06   :  { %8911 = vmatprep.subr.bf16.mxu0 %v9752_v13 }
 0xc09   :  { %8912 = vmatpush3.bf16.msra.mxu0 %v9420_v17 }
 0xc0a   :  { %8913 = vmatprep.subr.bf16.mxu0 %v9752_v13 }
 0xc0d   :  { %8914 = vmatpush3.bf16.msra.mxu0 %v9421_v20 }
 0xc0e   :  { %8915 = vmatprep.subr.bf16.mxu0 %v9752_v13 }
 0xc11   :  { %8916 = vmatpush3.bf16.msra.mxu0 %v9422_v25 }
 0xc12   :  { %8941 = vmatprep.subr.bf16.mxu0 %v9752_v13 }
 0xc14   :  { %8918 = vmatmul.mubr.bf16.vlgmr.msra.gmra.mxu0 %v4870_v4  ;;  %v9453_v4 = vld [vmem:[%s11762_s13 + $0x148] sm:$0xff]  }
 0xc15   :  { %8943 = vmatprep.mubr.msk.bf16.mxu0 %vm9753_vm10, %v9752_v13 }
 0xcb4   :  { %v4913_v29 = vpop.f32.mrf.mxu0 }
 0xcb5   :  { %v4919_v52 = vpack.c.bf16 %v4913_v29, %v4913_v29 }
 0xcb6   :  { %v8899_v54 = vpop.f32.mrf.mxu0 }
 0xcb7   :  { %8938 = vmatmul.mubr.bf16.vlgmr.msra.gmra.mxu1 %v4919_v52  ;;  %v11417_v52 = vld [vmem:[%s11761_s12 + $0x8] sm:$0xf]  ;;  %v9455_v54 = vld [vmem:[%s11762_s13 + $0x138] sm:$0xff]  }
 0xcb8   :  { %v4916_v55 = vpop.f32.mrf.mxu0  ;;  %8948 = vmatpush3.bf16.msra.mxu1 %v9431_v42  ;;  %8963 = vmatprep.mubr.msk.bf16.mxu1 %vm9753_vm10, %v9752_v13 }
 0xcb9   :  { %8949 = vmatprep.subr.bf16.mxu1 %v9752_v13  ;;  %v9457_v55 = vld [vmem:[%s11762_s13 + $0x128] sm:$0xff]  }
 0xcba   :  { %v8900_v63 = vpop.f32.mrf.mxu0 }
 0xcbb   :  { %v9459_v63 = vld [vmem:[%s11762_s13 + $0x118] sm:$0xff]  }
 0xcbc   :  { %8950 = vmatpush3.bf16.msra.mxu1 %v9432_v57  ;;  %v9458_v57 = vld [vmem:[%s11762_s13 + $0x120] sm:$0xff]  }
 0xcbd   :  { %8951 = vmatprep.subr.bf16.mxu1 %v9752_v13 }
 0xcc0   :  { %8952 = vmatpush3.bf16.msra.mxu1 %v9433_v59  ;;  %v9460_v59 = vld [vmem:[%s11762_s13 + $0x110] sm:$0xff]  }
 0xcc1   :  { %8953 = vmatprep.subr.bf16.mxu1 %v9752_v13 }
 0xcc4   :  { %8954 = vmatpush3.bf16.msra.mxu1 %v9434_v23  ;;  %v9461_v23 = vld [vmem:[%s11762_s13 + $0x108] sm:$0xff]  }
 0xcc5   :  { %8955 = vmatprep.subr.bf16.mxu1 %v9752_v13 }
 0xcc8   :  { %8956 = vmatpush3.bf16.msra.mxu1 %v9435_v27  ;;  %v9462_v27 = vld [vmem:[%s11762_s13 + $0x100] sm:$0xff]  }
 0xcc9   :  { %8957 = vmatprep.subr.bf16.mxu1 %v9752_v13 }
 0xccc   :  { %8958 = vmatpush3.bf16.msra.mxu1 %v9436_v58 }
 0xccd   :  { %8959 = vmatprep.subr.bf16.mxu1 %v9752_v13 }
 0xcd0   :  { %8960 = vmatpush3.bf16.msra.mxu1 %v9437_v10 }
 0xcd1   :  { %8961 = vmatprep.subr.bf16.mxu1 %v9752_v13 }
 0xcd4   :  { %v5036_v62 = vpop.f32.mrf.mxu0  ;;  %8962 = vmatpush3.bf16.msra.mxu1 %v9438_v16 }
 0xcd5   :  { %8987 = vmatprep.subr.bf16.mxu1 %v9752_v13 }
 0xcd6   :  { %v8919_v24 = vpop.f32.mrf.mxu0 }
 0xcd8   :  { %v5039_v18 = vpop.f32.mrf.mxu0 }
 0xcda   :  { %v8920_v1 = vpop.f32.mrf.mxu0 }
 0xcdb   :  { %v9463_v1 = vld [vmem:[%s11764_s15 + $0x178] sm:$0xff]  }
 0xd77   :  { %v5124_v31 = vpop.f32.mrf.mxu1 }
 0xd78   :  { %v5125_v28 = vadd.f32 %v5124_v31, %v5036_v62 }
 0xd79   :  { %v8939_v5 = vpop.f32.mrf.mxu1 }
 0xd7a   :  { %v5138_v34 = vadd.f32 %v7092_v33, %v5125_v28  ;;  %v9464_v28 = vld [vmem:[%s11764_s15 + $0x170] sm:$0xff]  }
 0xd7b   :  { %v5127_v37 = vpop.f32.mrf.mxu1 }
 0xd7c   :  { %v5139_v19 = vmax.f32 %v5138_v34, 0.0  ;;  %v9465_v34 = vld [vmem:[%s11764_s15 + $0x168] sm:$0xff]   ;;  %v9466_v37 = vld [vmem:[%s11764_s15 + $0x160] sm:$0xff]  }
 0xd7d   :  { %v8940_v35 = vpop.f32.mrf.mxu1 }
 0xd7e   :  { %v5140_v39 = vpack.c.bf16 %v5139_v19, %v5139_v19  ;;  %v9467_v19 = vld [vmem:[%s11764_s15 + $0x158] sm:$0xff]   ;;  %v9468_v35 = vld [vmem:[%s11764_s15 + $0x150] sm:$0xff]  }
 0xd80   :  { %8964 = vmatmul.mubr.bf16.vlgmr.msra.gmra.mxu1 %v5140_v39  ;;  %v5142_v56 = vsel %vm4342_vm3, %v5140_v39, 0  ;;  %v9469_v39 = vld [vmem:[%s11764_s15 + $0x148] sm:$0xff]  }
 0xd81   :  { %8942 = vmatpush3.bf16.msra.mxu0 %v5142_v56  ;;  %8989 = vmatprep.mubr.msk.bf16.mxu1 %vm9753_vm10, %v9752_v13  ;;  %v9470_v56 = vld [vmem:[%s11764_s15 + $0x140] sm:$0xff]  }
 0xd82   :  { %8967 = vmatprep.subr.bf16.mxu0 %v9752_v13 }
 0xd84   :  { %8944 = vmatmul.mubr.msk.bf16.vlgmr.msra.gmra.mxu0 %vm4338_vm4, %v11249_v11 }
 0xd85   :  { %8968 = vmatpush3.bf16.msra.mxu0 %v9439_v0  ;;  %8983 = vmatprep.mubr.msk.bf16.mxu0 %vm9753_vm10, %v9752_v13 }
 0xd86   :  { %8969 = vmatprep.subr.bf16.mxu0 %v9752_v13 }
 0xd89   :  { %8970 = vmatpush3.bf16.msra.mxu0 %v9440_v38  ;;  %v7195_v38 = vld [vmem:[%s11763_s14 + $0x2] ss:$0 sm:$0xff] }
 0xd8a   :  { %8971 = vmatprep.subr.bf16.mxu0 %v9752_v13 }
 0xd8d   :  { %8972 = vmatpush3.bf16.msra.mxu0 %v9441_v41 }
 0xd8e   :  { %8973 = vmatprep.subr.bf16.mxu0 %v9752_v13 }
 0xd91   :  { %8974 = vmatpush3.bf16.msra.mxu0 %v9442_v21 }
 0xd92   :  { %8975 = vmatprep.subr.bf16.mxu0 %v9752_v13 }
 0xd95   :  { %8976 = vmatpush3.bf16.msra.mxu0 %v9443_v44 }
 0xd96   :  { %8977 = vmatprep.subr.bf16.mxu0 %v9752_v13 }
 0xd99   :  { %8978 = vmatpush3.bf16.msra.mxu0 %v9444_v60 }
 0xd9a   :  { %8979 = vmatprep.subr.bf16.mxu0 %v9752_v13 }
 0xd9d   :  { %8980 = vmatpush3.bf16.msra.mxu0 %v9445_v30 }
 0xd9e   :  { %8981 = vmatprep.subr.bf16.mxu0 %v9752_v13 }
 0xda1   :  { %8982 = vmatpush3.bf16.msra.mxu0 %v9446_v50 }
 0xda2   :  { %8993 = vmatprep.subr.bf16.mxu0 %v9752_v13 }
 0xe40   :  { %v5301_v53 = vpop.f32.mrf.mxu1 }
 0xe42   :  { %v8965_v47 = vpop.f32.mrf.mxu1 }
 0xe44   :  { %v5178_v48 = vpop.f32.mrf.mxu0  ;;  %v5304_v2 = vpop.f32.mrf.mxu1 }
 0xe45   :  { %v5184_v3 = vpack.c.bf16 %v5178_v48, %v5178_v48  ;;  %v9472_v2 = vld [vmem:[%s11766_s17 + $0x30] sm:$0xff]  }
 0xe46   :  { %v8945_v22 = vpop.f32.mrf.mxu0  ;;  %v8966_v6 = vpop.f32.mrf.mxu1 }
 0xe47   :  { %8984 = vmatmul.mubr.bf16.vlgmr.msra.gmra.mxu0 %v5184_v3  ;;  %v9473_v3 = vld [vmem:[%s11766_s17 + $0x28] sm:$0xff]   ;;  %v9480_v22 = vld [vmem:[%s11764_s15 + $0x130] sm:$0xff]   ;;  %v9474_v6 = vld [vmem:[%s11766_s17 + $0x20] sm:$0xff]  }
 0xe48   :  { %v5181_v32 = vpop.f32.mrf.mxu0  ;;  %8994 = vmatpush3.bf16.msra.mxu0 %v9447_v14  ;;  %9009 = vmatprep.mubr.msk.bf16.mxu0 %vm9753_vm10, %v9752_v13  ;;  %v9479_v14 = vld [vmem:[%s11764_s15 + $0x138] sm:$0xff]  }
 0xe49   :  { %8995 = vmatprep.subr.bf16.mxu0 %v9752_v13  ;;  %v9481_v32 = vld [vmem:[%s11764_s15 + $0x128] sm:$0xff]  }
 0xe4a   :  { %v8946_v43 = vpop.f32.mrf.mxu0 }
 0xe4b   :  { %v9482_v43 = vld [vmem:[%s11764_s15 + $0x120] sm:$0xff]  }
 0xe4c   :  { %8996 = vmatpush3.bf16.msra.mxu0 %v9448_v61  ;;  %v9475_v61 = vld [vmem:[%s11766_s17 + $0x18] sm:$0xff]  }
 0xe4d   :  { %8997 = vmatprep.subr.bf16.mxu0 %v9752_v13 }
 0xe50   :  { %8998 = vmatpush3.bf16.msra.mxu0 %v9449_v36  ;;  %v9476_v36 = vld [vmem:[%s11766_s17 + $0x10] sm:$0xff]  }
 0xe51   :  { %8999 = vmatprep.subr.bf16.mxu0 %v9752_v13 }
 0xe54   :  { %9000 = vmatpush3.bf16.msra.mxu0 %v9450_v8  ;;  %v9483_v8 = vld [vmem:[%s11764_s15 + $0x118] sm:$0xff]  }
 0xe55   :  { %9001 = vmatprep.subr.bf16.mxu0 %v9752_v13 }
 0xe58   :  { %9002 = vmatpush3.bf16.msra.mxu0 %v9451_v40  ;;  %v9477_v40 = vld [vmem:[%s11766_s17 + $0x8] sm:$0xff]  }
 0xe59   :  { %9003 = vmatprep.subr.bf16.mxu0 %v9752_v13 }
 0xe5c   :  { %9004 = vmatpush3.bf16.msra.mxu0 %v9452_v49  ;;  %v9484_v49 = vld [vmem:[%s11764_s15 + $0x110] sm:$0xff]  }
 0xe5d   :  { %9005 = vmatprep.subr.bf16.mxu0 %v9752_v13 }
 0xe60   :  { %9006 = vmatpush3.bf16.msra.mxu0 %v9453_v4  ;;  %v9478_v4 = vld [vmem:[%s11766_s17] sm:$0xff]  }
 0xe61   :  { %9007 = vmatprep.subr.bf16.mxu0 %v9752_v13 }
 0xe64   :  { %9008 = vmatpush3.bf16.msra.mxu0 %v9454_v9  ;;  %v9485_v9 = vld [vmem:[%s11764_s15 + $0x108] sm:$0xff]  }
 0xe65   :  { %9033 = vmatprep.subr.bf16.mxu0 %v9752_v13 }
 0xf07   :  { %v5389_v11 = vpop.f32.mrf.mxu0 }
 0xf08   :  { %v5390_v7 = vadd.f32 %v5389_v11, %v5301_v53  ;;  %v9471_v53 = vld [vmem:[%s11766_s17 + $0x38] sm:$0xff]   ;;  %v9486_v11 = vld [vmem:[%s11764_s15 + $0x100] sm:$0xff]  }
 0xf09   :  { %v8985_v15 = vpop.f32.mrf.mxu0 }
 0xf0a   :  { %v5403_v45 = vadd.f32 %v7143_v12, %v5390_v7 }
 0xf0b   :  { %v5392_v46 = vpop.f32.mrf.mxu0 }
 0xf0c   :  { %v5404_v17 = vmax.f32 %v5403_v45, 0.0 }
 0xf0d   :  { %v8986_v20 = vpop.f32.mrf.mxu0 }
 0xf0e   :  { %v5405_v25 = vadd.f32 %v5404_v17, %v11241_v51  ;;  %v9456_v51 = vld [vmem:[%s11762_s13 + $0x130] sm:$0xff]  }
 0xf10   :  { %v5406_v26 = vmax.f32 %v5405_v25, 0.0 }
 0xf12   :  { %v11409_v29 = vpack.c.bf16 %v5406_v26, %v5406_v26 }
 0xf14   :  { %9010 = vmatmul.mubr.bf16.vlgmr.msra.gmra.mxu0 %v11409_v29  ;;  %v5414_v42 = vsel %vm4342_vm3, %v11409_v29, 0 }
 0xf15   :  { %8988 = vmatpush3.bf16.msra.mxu1 %v5414_v42  ;;  %9035 = vmatprep.mubr.msk.bf16.mxu0 %vm9753_vm10, %v9752_v13 }
 0xf16   :  { %9013 = vmatprep.subr.bf16.mxu1 %v9752_v13 }
 0xf18   :  { %8990 = vmatmul.mubr.msk.bf16.vlgmr.msra.gmra.mxu1 %vm4338_vm4, %v11417_v52 }
 0xf19   :  { %9014 = vmatpush3.bf16.msra.mxu1 %v9455_v54  ;;  %9029 = vmatprep.mubr.msk.bf16.mxu1 %vm9753_vm10, %v9752_v13 }
 0xf1a   :  { %9015 = vmatprep.subr.bf16.mxu1 %v9752_v13 }
 0xf1d   :  { %9016 = vmatpush3.bf16.msra.mxu1 %v9456_v51  ;;  %v9495_v51 = vld [vmem:[%s11762_s13 + $0x1b8] sm:$0xff]  }
 0xf1e   :  { %9017 = vmatprep.subr.bf16.mxu1 %v9752_v13 }
 0xf21   :  { %9018 = vmatpush3.bf16.msra.mxu1 %v9457_v55  ;;  %v9496_v55 = vld [vmem:[%s11762_s13 + $0x1b0] sm:$0xff]  }
 0xf22   :  { %9019 = vmatprep.subr.bf16.mxu1 %v9752_v13 }
 0xf25   :  { %9020 = vmatpush3.bf16.msra.mxu1 %v9458_v57  ;;  %v9497_v57 = vld [vmem:[%s11762_s13 + $0x1a8] sm:$0xff]  }
 0xf26   :  { %9021 = vmatprep.subr.bf16.mxu1 %v9752_v13 }
 0xf29   :  { %9022 = vmatpush3.bf16.msra.mxu1 %v9459_v63  ;;  %v9498_v63 = vld [vmem:[%s11762_s13 + $0x1a0] sm:$0xff]  }
 0xf2a   :  { %9023 = vmatprep.subr.bf16.mxu1 %v9752_v13 }
 0xf2d   :  { %9024 = vmatpush3.bf16.msra.mxu1 %v9460_v59  ;;  %v9499_v59 = vld [vmem:[%s11762_s13 + $0x198] sm:$0xff]  }
 0xf2e   :  { %9025 = vmatprep.subr.bf16.mxu1 %v9752_v13 }
 0xf31   :  { %9026 = vmatpush3.bf16.msra.mxu1 %v9461_v23  ;;  %v9500_v23 = vld [vmem:[%s11762_s13 + $0x190] sm:$0xff]  }
 0xf32   :  { %9027 = vmatprep.subr.bf16.mxu1 %v9752_v13 }
 0xf35   :  { %9028 = vmatpush3.bf16.msra.mxu1 %v9462_v27  ;;  %v9501_v27 = vld [vmem:[%s11762_s13 + $0x188] sm:$0xff]  }
 0xf36   :  { %9039 = vmatprep.subr.bf16.mxu1 %v9752_v13 }
 0xfd4   :  { %v5573_v58 = vpop.f32.mrf.mxu0 }
 0xfd6   :  { %v9011_v62 = vpop.f32.mrf.mxu0 }
 0xfd7   :  { %v7246_v62 = vld [vmem:[%s11765_s16 + $0x2] ss:$0 sm:$0xff] }
 0xfd8   :  { %v5450_v24 = vpop.f32.mrf.mxu1  ;;  %v5576_v18 = vpop.f32.mrf.mxu0 }
 0xfd9   :  { %v5456_v10 = vpack.c.bf16 %v5450_v24, %v5450_v24  ;;  %v7247_v18 = vld [vmem:[%s11767_s18] ss:$0 sm:$0xff] }
 0xfda   :  { %v8991_v16 = vpop.f32.mrf.mxu1  ;;  %v9012_v31 = vpop.f32.mrf.mxu0 }
 0xfdb   :  { %9030 = vmatmul.mubr.bf16.vlgmr.msra.gmra.mxu1 %v5456_v10 }
 0xfdc   :  { %v5453_v33 = vpop.f32.mrf.mxu1  ;;  %9040 = vmatpush3.bf16.msra.mxu1 %v9463_v1  ;;  %9055 = vmatprep.mubr.msk.bf16.mxu1 %vm9753_vm10, %v9752_v13 }
 0xfdd   :  { %9041 = vmatprep.subr.bf16.mxu1 %v9752_v13 }
 0xfde   :  { %v8992_v5 = vpop.f32.mrf.mxu1 }
 0xfe0   :  { %9042 = vmatpush3.bf16.msra.mxu1 %v9464_v28 }
 0xfe1   :  { %9043 = vmatprep.subr.bf16.mxu1 %v9752_v13 }
 0xfe4   :  { %9044 = vmatpush3.bf16.msra.mxu1 %v9465_v34 }
 0xfe5   :  { %9045 = vmatprep.subr.bf16.mxu1 %v9752_v13 }
 0xfe8   :  { %9046 = vmatpush3.bf16.msra.mxu1 %v9466_v37 }
 0xfe9   :  { %9047 = vmatprep.subr.bf16.mxu1 %v9752_v13 }
 0xfec   :  { %9048 = vmatpush3.bf16.msra.mxu1 %v9467_v19 }
 0xfed   :  { %9049 = vmatprep.subr.bf16.mxu1 %v9752_v13 }
 0xff0   :  { %9050 = vmatpush3.bf16.msra.mxu1 %v9468_v35  ;;  %v11614_v35 = vld [vmem:[%s11761_s12 + $0xc] sm:$0xf] }
 0xff1   :  { %9051 = vmatprep.subr.bf16.mxu1 %v9752_v13 }
 0xff4   :  { %9052 = vmatpush3.bf16.msra.mxu1 %v9469_v39  ;;  %v9487_v39 = vld [vmem:[%s11762_s13 + $0x1f8] sm:$0xff]  }
 0xff5   :  { %9053 = vmatprep.subr.bf16.mxu1 %v9752_v13 }
 0xff8   :  { %9054 = vmatpush3.bf16.msra.mxu1 %v9470_v56  ;;  %v9488_v56 = vld [vmem:[%s11762_s13 + $0x1f0] sm:$0xff]  }
 0xff9   :  { %9079 = vmatprep.subr.bf16.mxu1 %v9752_v13 }
0x109b   :  { %v5661_v0 = vpop.f32.mrf.mxu1 }
0x109c   :  { %v5662_v41 = vadd.f32 %v5661_v0, %v5573_v58  ;;  %v9489_v0 = vld [vmem:[%s11762_s13 + $0x1e8] sm:$0xff]  }
0x109d   :  { %v9031_v21 = vpop.f32.mrf.mxu1 }
0x109e   :  { %v5675_v44 = vadd.f32 %v7195_v38, %v5662_v41  ;;  %v9490_v38 = vld [vmem:[%s11762_s13 + $0x1e0] sm:$0xff]   ;;  %v9491_v41 = vld [vmem:[%s11762_s13 + $0x1d8] sm:$0xff]   ;;  %v9492_v21 = vld [vmem:[%s11762_s13 + $0x1d0] sm:$0xff]  }
0x109f   :  { %v5664_v60 = vpop.f32.mrf.mxu1 }
0x10a0   :  { %v5676_v30 = vmax.f32 %v5675_v44, 0.0  ;;  %v9493_v44 = vld [vmem:[%s11762_s13 + $0x1c8] sm:$0xff]   ;;  %v9494_v60 = vld [vmem:[%s11762_s13 + $0x1c0] sm:$0xff]  }
0x10a1   :  { %v9032_v50 = vpop.f32.mrf.mxu1 }
0x10a2   :  { %v5677_v47 = vpack.c.bf16 %v5676_v30, %v5676_v30  ;;  %v9502_v30 = vld [vmem:[%s11762_s13 + $0x180] sm:$0xff]  }
0x10a4   :  { %9056 = vmatmul.mubr.bf16.vlgmr.msra.gmra.mxu1 %v5677_v47  ;;  %v5679_v48 = vsel %vm4342_vm3, %v5677_v47, 0 }
0x10a5   :  { %9080 = vmatpush3.bf16.msra.mxu1 %v9471_v53  ;;  %9034 = vmatpush3.bf16.msra.mxu0 %v5679_v48 }
0x10a6   :  { %9081 = vmatprep.subr.bf16.mxu1 %v9752_v13  ;;  %9095 = vmatprep.mubr.msk.bf16.mxu1 %vm9753_vm10, %v9752_v13 }
0x10a7   :  { %9059 = vmatprep.subr.bf16.mxu0 %v9752_v13 }
0x10a8   :  { %9036 = vmatmul.mubr.msk.bf16.vlgmr.msra.gmra.mxu0 %vm4338_vm4, %v11417_v52 }
0x10a9   :  { %9082 = vmatpush3.bf16.msra.mxu1 %v9472_v2  ;;  %9060 = vmatpush3.bf16.msra.mxu0 %v9479_v14 }
0x10aa   :  { %9083 = vmatprep.subr.bf16.mxu1 %v9752_v13  ;;  %9061 = vmatprep.subr.bf16.mxu0 %v9752_v13 }
0x10ab   :  { %9075 = vmatprep.mubr.msk.bf16.mxu0 %vm9753_vm10, %v9752_v13 }
0x10ad   :  { %9084 = vmatpush3.bf16.msra.mxu1 %v9473_v3  ;;  %9062 = vmatpush3.bf16.msra.mxu0 %v9480_v22 }
0x10ae   :  { %9085 = vmatprep.subr.bf16.mxu1 %v9752_v13  ;;  %9063 = vmatprep.subr.bf16.mxu0 %v9752_v13 }
0x10b1   :  { %9086 = vmatpush3.bf16.msra.mxu1 %v9474_v6  ;;  %9064 = vmatpush3.bf16.msra.mxu0 %v9481_v32  ;;  %v9511_v32 = vld [vmem:[%s11764_s15 + $0x1b8] sm:$0xff]  }
0x10b2   :  { %9087 = vmatprep.subr.bf16.mxu1 %v9752_v13  ;;  %9065 = vmatprep.subr.bf16.mxu0 %v9752_v13 }
0x10b5   :  { %9088 = vmatpush3.bf16.msra.mxu1 %v9475_v61  ;;  %9066 = vmatpush3.bf16.msra.mxu0 %v9482_v43  ;;  %v9512_v61 = vld [vmem:[%s11764_s15 + $0x1b0] sm:$0xff]   ;;  %v9513_v43 = vld [vmem:[%s11764_s15 + $0x1a8] sm:$0xff]  }
0x10b6   :  { %9089 = vmatprep.subr.bf16.mxu1 %v9752_v13  ;;  %9067 = vmatprep.subr.bf16.mxu0 %v9752_v13 }
0x10b9   :  { %9090 = vmatpush3.bf16.msra.mxu1 %v9476_v36  ;;  %9068 = vmatpush3.bf16.msra.mxu0 %v9483_v8  ;;  %v9514_v36 = vld [vmem:[%s11764_s15 + $0x1a0] sm:$0xff]   ;;  %v9515_v8 = vld [vmem:[%s11764_s15 + $0x198] sm:$0xff]  }
0x10ba   :  { %9091 = vmatprep.subr.bf16.mxu1 %v9752_v13  ;;  %9069 = vmatprep.subr.bf16.mxu0 %v9752_v13 }
0x10bd   :  { %9092 = vmatpush3.bf16.msra.mxu1 %v9477_v40  ;;  %9070 = vmatpush3.bf16.msra.mxu0 %v9484_v49  ;;  %v9516_v40 = vld [vmem:[%s11764_s15 + $0x190] sm:$0xff]   ;;  %v9517_v49 = vld [vmem:[%s11764_s15 + $0x188] sm:$0xff]  }
0x10be   :  { %9093 = vmatprep.subr.bf16.mxu1 %v9752_v13  ;;  %9071 = vmatprep.subr.bf16.mxu0 %v9752_v13 }
0x10c1   :  { %9094 = vmatpush3.bf16.msra.mxu1 %v9478_v4  ;;  %9072 = vmatpush3.bf16.msra.mxu0 %v9485_v9  ;;  %v7307_v9 = vld [vmem:[%s11763_s14 + $0x3] ss:$0 sm:$0xff] }
0x10c2   :  { %9125 = vmatprep.subr.bf16.mxu1 %v9752_v13  ;;  %9073 = vmatprep.subr.bf16.mxu0 %v9752_v13 }
0x10c4   :  { %9096 = vmatmul.mubr.bf16.vlgmr.msra.gmra.mxu1 %v11409_v29 }
0x10c5   :  { %9141 = vmatprep.mubr.msk.bf16.mxu1 %vm9753_vm10, %v9752_v13  ;;  %9074 = vmatpush3.bf16.msra.mxu0 %v9486_v11 }
0x10c6   :  { %9099 = vmatprep.subr.bf16.mxu0 %v9752_v13  ;;  %9126 = vmatpush3.bf16.msra.mxu1 %v9495_v51  ;;  %v9509_v51 = vld [vmem:[%s11764_s15 + $0x1c8] sm:$0xff]  }
0x10c7   :  { %9127 = vmatprep.subr.bf16.mxu1 %v9752_v13 }
0x10ca   :  { %9128 = vmatpush3.bf16.msra.mxu1 %v9496_v55  ;;  %v9510_v55 = vld [vmem:[%s11764_s15 + $0x1c0] sm:$0xff]  }
0x10cb   :  { %9129 = vmatprep.subr.bf16.mxu1 %v9752_v13 }
0x10ce   :  { %9130 = vmatpush3.bf16.msra.mxu1 %v9497_v57  ;;  %v9518_v57 = vld [vmem:[%s11764_s15 + $0x180] sm:$0xff]  }
0x10cf   :  { %9131 = vmatprep.subr.bf16.mxu1 %v9752_v13 }
0x10d2   :  { %9132 = vmatpush3.bf16.msra.mxu1 %v9498_v63  ;;  %v9519_v63 = vld [vmem:[#allocation15 + $0x38] sm:$0xff]  }
0x10d3   :  { %9133 = vmatprep.subr.bf16.mxu1 %v9752_v13 }
0x10d6   :  { %9134 = vmatpush3.bf16.msra.mxu1 %v9499_v59  ;;  %v9520_v59 = vld [vmem:[#allocation15 + $0x30] sm:$0xff]  }
0x10d7   :  { %9135 = vmatprep.subr.bf16.mxu1 %v9752_v13 }
0x10da   :  { %9136 = vmatpush3.bf16.msra.mxu1 %v9500_v23  ;;  %v9521_v23 = vld [vmem:[#allocation15 + $0x28] sm:$0xff]  }
0x10db   :  { %9137 = vmatprep.subr.bf16.mxu1 %v9752_v13 }
0x10de   :  { %9138 = vmatpush3.bf16.msra.mxu1 %v9501_v27  ;;  %v9522_v27 = vld [vmem:[#allocation15 + $0x20] sm:$0xff]  }
0x10df   :  { %9139 = vmatprep.subr.bf16.mxu1 %v9752_v13 }
0x10e2   :  { %9140 = vmatpush3.bf16.msra.mxu1 %v9502_v30 }
0x10e3   :  { %9171 = vmatprep.subr.bf16.mxu1 %v9752_v13 }
0x1164   :  { %v5838_v12 = vpop.f32.mrf.mxu1 }
0x1166   :  { %v9057_v7 = vpop.f32.mrf.mxu1 }
0x1168   :  { %v5715_v15 = vpop.f32.mrf.mxu0  ;;  %v5841_v45 = vpop.f32.mrf.mxu1 }
0x1169   :  { %v5721_v46 = vpack.c.bf16 %v5715_v15, %v5715_v15 }
0x116a   :  { %v9037_v17 = vpop.f32.mrf.mxu0  ;;  %v9058_v20 = vpop.f32.mrf.mxu1 }
0x116b   :  { %9076 = vmatmul.mubr.bf16.vlgmr.msra.gmra.mxu0 %v5721_v46 }
0x116c   :  { %v5718_v25 = vpop.f32.mrf.mxu0  ;;  %9101 = vmatprep.mubr.msk.bf16.mxu0 %vm9753_vm10, %v9752_v13 }
0x116d   :  { %v9503_v25 = vld [vmem:[%s11764_s15 + $0x1f8] sm:$0xff]  }
0x116e   :  { %v9038_v26 = vpop.f32.mrf.mxu0 }
0x116f   :  { %v9504_v26 = vld [vmem:[%s11764_s15 + $0x1f0] sm:$0xff]  }
0x1184   :  { %v6047_v29 = vpop.f32.mrf.mxu1 }
0x1185   :  { %v6048_v31 = vadd.f32 %v7247_v18, %v6047_v29  ;;  %v9505_v29 = vld [vmem:[%s11764_s15 + $0x1e8] sm:$0xff]  }
0x1186   :  { %v9097_v42 = vpop.f32.mrf.mxu1 }
0x1187   :  { %v9506_v42 = vld [vmem:[%s11764_s15 + $0x1e0] sm:$0xff]  }
0x1188   :  { %v6050_v52 = vpop.f32.mrf.mxu1 }
0x1189   :  { %v9507_v52 = vld [vmem:[%s11764_s15 + $0x1d8] sm:$0xff]  }
0x118a   :  { %v9098_v54 = vpop.f32.mrf.mxu1 }
0x118b   :  { %v9508_v54 = vld [vmem:[%s11764_s15 + $0x1d0] sm:$0xff]  }
0x122b   :  { %v5926_v58 = vpop.f32.mrf.mxu0 }
0x122c   :  { %v5927_v24 = vadd.f32 %v5926_v58, %v5838_v12  ;;  %v9523_v58 = vld [vmem:[#allocation15 + $0x18] sm:$0xff]  }
0x122d   :  { %v9077_v1 = vpop.f32.mrf.mxu0 }
0x122e   :  { %v5940_v10 = vadd.f32 %v7246_v62, %v5927_v24 }
0x122f   :  { %v5929_v16 = vpop.f32.mrf.mxu0 }
0x1230   :  { %v5941_v33 = vmax.f32 %v5940_v10, 0.0 }
0x1231   :  { %v9078_v28 = vpop.f32.mrf.mxu0 }
0x1232   :  { %v6053_v5 = vadd.f32 %v6048_v31, %v5941_v33 }
0x1234   :  { %v11606_v34 = vmax.f32 %v6053_v5, 0.0  ;;  %v9524_v5 = vld [vmem:[#allocation15 + $0x10] sm:$0xff]  }
0x1236   :  { %v6055_v37 = vpack.c.bf16 %v11606_v34, %v11606_v34 }
0x1238   :  { %v6062_v19 = vsel %vm4342_vm3, %v6055_v37, 0 }
0x1239   :  { %9100 = vmatpush3.bf16.msra.mxu0 %v6062_v19  ;;  %v9526_v19 = vld [vmem:[#allocation15] sm:$0xff]  }
0x123a   :  { %9105 = vmatprep.subr.bf16.mxu0 %v9752_v13 }
0x123c   :  { %9102 = vmatmul.mubr.msk.bf16.vlgmr.msra.gmra.mxu0 %vm4338_vm4, %v11614_v35 }
0x123d   :  { %9106 = vmatpush3.bf16.msra.mxu0 %v9487_v39  ;;  %9121 = vmatprep.mubr.msk.bf16.mxu0 %vm9753_vm10, %v9752_v13  ;;  %v7358_v39 = vld [vmem:[%s11765_s16 + $0x3] ss:$0 sm:$0xff] }
0x123e   :  { %9107 = vmatprep.subr.bf16.mxu0 %v9752_v13 }
0x1241   :  { %9108 = vmatpush3.bf16.msra.mxu0 %v9488_v56 }
0x1242   :  { %9109 = vmatprep.subr.bf16.mxu0 %v9752_v13 }
0x1245   :  { %9110 = vmatpush3.bf16.msra.mxu0 %v9489_v0 }
0x1246   :  { %9111 = vmatprep.subr.bf16.mxu0 %v9752_v13 }
0x1249   :  { %9112 = vmatpush3.bf16.msra.mxu0 %v9490_v38 }
0x124a   :  { %9113 = vmatprep.subr.bf16.mxu0 %v9752_v13 }
0x124d   :  { %9114 = vmatpush3.bf16.msra.mxu0 %v9491_v41 }
0x124e   :  { %9115 = vmatprep.subr.bf16.mxu0 %v9752_v13 }
0x1251   :  { %9116 = vmatpush3.bf16.msra.mxu0 %v9492_v21 }
0x1252   :  { %9117 = vmatprep.subr.bf16.mxu0 %v9752_v13 }
0x1255   :  { %9118 = vmatpush3.bf16.msra.mxu0 %v9493_v44 }
0x1256   :  { %9119 = vmatprep.subr.bf16.mxu0 %v9752_v13 }
0x1259   :  { %9120 = vmatpush3.bf16.msra.mxu0 %v9494_v60 }
0x125a   :  { %9145 = vmatprep.subr.bf16.mxu0 %v9752_v13 }
0x125c   :  { %9122 = vmatmul.mubr.bf16.vlgmr.msra.gmra.mxu0 %v6055_v37  ;;  %v9525_v37 = vld [vmem:[#allocation15 + $0x8] sm:$0xff]  }
0x125d   :  { %9147 = vmatprep.mubr.msk.bf16.mxu0 %vm9753_vm10, %v9752_v13 }
0x12fc   :  { %v6098_v50 = vpop.f32.mrf.mxu0 }
0x12fd   :  { %v6104_v53 = vpack.c.bf16 %v6098_v50, %v6098_v50 }
0x12fe   :  { %v9103_v47 = vpop.f32.mrf.mxu0 }
0x12ff   :  { %9142 = vmatmul.mubr.bf16.vlgmr.msra.gmra.mxu1 %v6104_v53  ;;  %v7359_v53 = vld [vmem:[#allocation16] ss:$0 sm:$0xff] }
0x1300   :  { %v6101_v48 = vpop.f32.mrf.mxu0  ;;  %9187 = vmatprep.mubr.msk.bf16.mxu1 %vm9753_vm10, %v9752_v13  ;;  %9172 = vmatpush3.bf16.msra.mxu1 %v9511_v32 }
0x1301   :  { %9173 = vmatprep.subr.bf16.mxu1 %v9752_v13 }
0x1302   :  { %v9104_v2 = vpop.f32.mrf.mxu0 }
0x1304   :  { %9174 = vmatpush3.bf16.msra.mxu1 %v9512_v61 }
0x1305   :  { %9175 = vmatprep.subr.bf16.mxu1 %v9752_v13 }
0x1308   :  { %9176 = vmatpush3.bf16.msra.mxu1 %v9513_v43 }
0x1309   :  { %9177 = vmatprep.subr.bf16.mxu1 %v9752_v13 }
0x130c   :  { %9178 = vmatpush3.bf16.msra.mxu1 %v9514_v36 }
0x130d   :  { %9179 = vmatprep.subr.bf16.mxu1 %v9752_v13 }
0x1310   :  { %9180 = vmatpush3.bf16.msra.mxu1 %v9515_v8 }
0x1311   :  { %9181 = vmatprep.subr.bf16.mxu1 %v9752_v13 }
0x1314   :  { %9182 = vmatpush3.bf16.msra.mxu1 %v9516_v40 }
0x1315   :  { %9183 = vmatprep.subr.bf16.mxu1 %v9752_v13 }
0x1318   :  { %9184 = vmatpush3.bf16.msra.mxu1 %v9517_v49 }
0x1319   :  { %9185 = vmatprep.subr.bf16.mxu1 %v9752_v13 }
0x131c   :  { %v6221_v14 = vpop.f32.mrf.mxu0  ;;  %9186 = vmatpush3.bf16.msra.mxu1 %v9518_v57 }
0x131e   :  { %v9123_v3 = vpop.f32.mrf.mxu0 }
0x1320   :  { %v6224_v22 = vpop.f32.mrf.mxu0 }
0x1322   :  { %v9124_v6 = vpop.f32.mrf.mxu0 }
0x13bf   :  { %v6309_v4 = vpop.f32.mrf.mxu1 }
0x13c0   :  { %v6310_v11 = vadd.f32 %v6309_v4, %v6221_v14 }
0x13c1   :  { %v9143_v12 = vpop.f32.mrf.mxu1 }
0x13c2   :  { %v6323_v7 = vadd.f32 %v7307_v9, %v6310_v11 }
0x13c3   :  { %v6312_v15 = vpop.f32.mrf.mxu1 }
0x13c4   :  { %v6324_v45 = vmax.f32 %v6323_v7, 0.0 }
0x13c5   :  { %v9144_v46 = vpop.f32.mrf.mxu1 }
0x13c6   :  { %v6325_v17 = vpack.c.bf16 %v6324_v45, %v6324_v45 }
0x13c8   :  { %v6327_v20 = vsel %vm4342_vm3, %v6325_v17, 0 }
0x13c9   :  { %9146 = vmatpush3.bf16.msra.mxu0 %v6327_v20 }
0x13ca   :  { %9151 = vmatprep.subr.bf16.mxu0 %v9752_v13 }
0x13cc   :  { %9148 = vmatmul.mubr.msk.bf16.vlgmr.msra.gmra.mxu0 %vm4338_vm4, %v11614_v35 }
0x13cd   :  { %9152 = vmatpush3.bf16.msra.mxu0 %v9503_v25  ;;  %9167 = vmatprep.mubr.msk.bf16.mxu0 %vm9753_vm10, %v9752_v13 }
0x13ce   :  { %9153 = vmatprep.subr.bf16.mxu0 %v9752_v13 }
0x13d1   :  { %9154 = vmatpush3.bf16.msra.mxu0 %v9504_v26 }
0x13d2   :  { %9155 = vmatprep.subr.bf16.mxu0 %v9752_v13 }
0x13d5   :  { %9156 = vmatpush3.bf16.msra.mxu0 %v9505_v29 }
0x13d6   :  { %9157 = vmatprep.subr.bf16.mxu0 %v9752_v13 }
0x13d9   :  { %9158 = vmatpush3.bf16.msra.mxu0 %v9506_v42 }
0x13da   :  { %9159 = vmatprep.subr.bf16.mxu0 %v9752_v13 }
0x13dd   :  { %9160 = vmatpush3.bf16.msra.mxu0 %v9507_v52 }
0x13de   :  { %9161 = vmatprep.subr.bf16.mxu0 %v9752_v13 }
0x13e1   :  { %9162 = vmatpush3.bf16.msra.mxu0 %v9508_v54 }
0x13e2   :  { %9163 = vmatprep.subr.bf16.mxu0 %v9752_v13 }
0x13e5   :  { %9164 = vmatpush3.bf16.msra.mxu0 %v9509_v51 }
0x13e6   :  { %9165 = vmatprep.subr.bf16.mxu0 %v9752_v13 }
0x13e9   :  { %9166 = vmatpush3.bf16.msra.mxu0 %v9510_v55 }
0x13ea   :  { %9191 = vmatprep.subr.bf16.mxu0 %v9752_v13 }
0x13ec   :  { %9168 = vmatmul.mubr.bf16.vlgmr.msra.gmra.mxu0 %v6325_v17 }
0x13ed   :  { %9207 = vmatprep.mubr.msk.bf16.mxu0 %vm9753_vm10, %v9752_v13  ;;  %9192 = vmatpush3.bf16.msra.mxu0 %v9519_v63 }
0x13ee   :  { %9193 = vmatprep.subr.bf16.mxu0 %v9752_v13 }
0x13f1   :  { %9194 = vmatpush3.bf16.msra.mxu0 %v9520_v59 }
0x13f2   :  { %9195 = vmatprep.subr.bf16.mxu0 %v9752_v13 }
0x13f5   :  { %9196 = vmatpush3.bf16.msra.mxu0 %v9521_v23 }
0x13f6   :  { %9197 = vmatprep.subr.bf16.mxu0 %v9752_v13 }
0x13f9   :  { %9198 = vmatpush3.bf16.msra.mxu0 %v9522_v27 }
0x13fa   :  { %9199 = vmatprep.subr.bf16.mxu0 %v9752_v13 }
0x13fd   :  { %9200 = vmatpush3.bf16.msra.mxu0 %v9523_v58 }
0x13fe   :  { %9201 = vmatprep.subr.bf16.mxu0 %v9752_v13 }
0x1401   :  { %9202 = vmatpush3.bf16.msra.mxu0 %v9524_v5 }
0x1402   :  { %9203 = vmatprep.subr.bf16.mxu0 %v9752_v13 }
0x1405   :  { %9204 = vmatpush3.bf16.msra.mxu0 %v9525_v37 }
0x1406   :  { %9205 = vmatprep.subr.bf16.mxu0 %v9752_v13 }
0x1409   :  { %9206 = vmatpush3.bf16.msra.mxu0 %v9526_v19 }
0x148c   :  { %v6363_v62 = vpop.f32.mrf.mxu0 }
0x148d   :  { %v6369_v24 = vpack.c.bf16 %v6363_v62, %v6363_v62 }
0x148e   :  { %v9149_v18 = vpop.f32.mrf.mxu0 }
0x148f   :  { %9188 = vmatmul.mubr.bf16.vlgmr.msra.gmra.mxu1 %v6369_v24 }
0x1490   :  { %v6366_v1 = vpop.f32.mrf.mxu0 }
0x1492   :  { %v9150_v10 = vpop.f32.mrf.mxu0 }
0x14ac   :  { %v6486_v16 = vpop.f32.mrf.mxu0 }
0x14ae   :  { %v9169_v31 = vpop.f32.mrf.mxu0 }
0x14b0   :  { %v6489_v33 = vpop.f32.mrf.mxu0 }
0x14b2   :  { %v9170_v28 = vpop.f32.mrf.mxu0 }
0x154f   :  { %v6574_v35 = vpop.f32.mrf.mxu1 }
0x1550   :  { %v6575_v56 = vadd.f32 %v6574_v35, %v6486_v16 }
0x1551   :  { %v9189_v0 = vpop.f32.mrf.mxu1 }
0x1552   :  { %v6588_v38 = vadd.f32 %v7358_v39, %v6575_v56 }
0x1553   :  { %v6577_v41 = vpop.f32.mrf.mxu1 }
0x1554   :  { %v6589_v21 = vmax.f32 %v6588_v38, 0.0 }
0x1555   :  { %v9190_v44 = vpop.f32.mrf.mxu1 }
0x1556   :  { %v6590_v60 = vadd.f32 %v6589_v21, %v11606_v34 }
0x1558   :  { %v6591_v30 = vmax.f32 %v6590_v60, 0.0 }
0x155a   :  { %v6592_v50 = vpack.c.bf16 %v6591_v30, %v6591_v30 }
0x155c   :  { %9208 = vmatmul.mubr.bf16.vlgmr.msra.gmra.mxu0 %v6592_v50 }
0x161c   :  { %v6698_v13 = vpop.f32.mrf.mxu0 }
0x161d   :  { %v6699_v47 = vadd.f32 %v7359_v53, %v6698_v13 }
0x161e   :  { %v9209_v48 = vpop.f32.mrf.mxu0 }
0x161f   :  { %6704 = vst [vmem:[%s11770_s21] sm:$0xff] %v6699_v47 }
0x1620   :  { %v6701_v2 = vpop.f32.mrf.mxu0 }
0x1622   :  { %v9210_v14 = vpop.f32.mrf.mxu0 }
0x1623   :  { %6709 = vsyncpa [#allocation3], 1 }
0x1624   :  { %6710 = vsyncpa [#allocation5], 1 }
0x1625   :  { %6711 = vsyncpa [#allocation8], 1 }
0x1626   :  { %6712 = vsyncpa [#allocation11], 1 }
0x1627   :  { %6713 = vsyncpa [#allocation14], 1 }
0x1628   :  { %6714 = vsyncpa [#allocation17], 1 }

</bundles_post_ra>
